<compile_context>
chip_gen: v6e
topology: v6e:2x2x1
jax: 0.10.0
libtpu: 0.0.40
codegen_flags: <defaults>
</compile_context>

<pallas_src>
import jax
import jax.numpy as jnp
from jax import lax
from jax.experimental import pallas as pl
from jax.experimental.pallas import tpu as pltpu

C_STEM = 32
BLOCK_CH = [(32, 32), (32, 32), (32, 64), (64, 64)]
C_OUT = 64
EMB = 512
K_STEM, K_RES = 7, 3
STRIDE, PAD_STEM = 2, 3
BN_EPS = 1e-5


# ----------------------------------------------------------------------------
# Kernel
# ----------------------------------------------------------------------------
def make_kernel(TB, L1):
    R = TB * L1

    def kernel(xw_ref, w1_ref, b1_ref,
               wa1, ta1, wb1, tb1,
               wa2, ta2, wb2, tb2,
               wr3, br3, wa3, ta3, wb3, tb3,
               wa4, ta4, wb4, tb4,
               wd_ref, bd_ref, o_ref):
        f32 = jnp.float32

        # Per-sample boundary masks, generated in-kernel (no (R,1) operands) and
        # hoisted to the preamble at full channel width so they are built once
        # per grid step instead of once per conv.
        def make_masks(c):
            rid = lax.broadcasted_iota(jnp.int32, (R, c), 0) % L1
            return (rid != 0), (rid != L1 - 1)

        masks = {32: make_masks(32), 64: make_masks(64)}

        def conv3(x, w_ref):
            """k=3 'same' conv as ONE (R, 3*Cin) @ (3*Cin, Cout) matmul.

            w_ref rows are [tap0(Cin); tap1(Cin); tap2(Cin)]."""
            cin = x.shape[1]
            keep_dn, keep_up = masks[cin]
            # jnp.roll lowers to XLU rotates under Mosaic; the masks zero the
            # wrap-around row and cross-sample leakage in the batched slab.
            x_dn = jnp.where(keep_dn, jnp.roll(x, 1, axis=0), 0.0)   # row r -> x[r-1]
            x_up = jnp.where(keep_up, jnp.roll(x, -1, axis=0), 0.0)  # row r -> x[r+1]
            x3 = jnp.concatenate([x_dn, x, x_up], axis=1)            # (R, 3*Cin)
            return jnp.dot(x3, w_ref[...], preferred_element_type=f32)

        def resblock(x, wa_ref, ta_ref, wb_ref, tb_ref, res):
            y = jnp.maximum(conv3(x, wa_ref) + ta_ref[...], 0.0)   # conv+BN+ReLU
            y = conv3(y, wb_ref) + tb_ref[...]                     # conv+BN
            return jnp.maximum(y + res, 0.0)                       # +residual, ReLU

        # stem: stride-2 k=7 conv, im2col'ed in the wrapper -> a single matmul
        h = jnp.dot(xw_ref[...], w1_ref[...],
                    preferred_element_type=f32) + b1_ref[...]      # (R, 32)

        h = resblock(h, wa1, ta1, wb1, tb1, h)                     # 32 -> 32
        h = resblock(h, wa2, ta2, wb2, tb2, h)                     # 32 -> 32
        res3 = jnp.dot(h, wr3[...], preferred_element_type=f32) + br3[...]
        h = resblock(h, wa3, ta3, wb3, tb3, res3)                  # 32 -> 64
        h = resblock(h, wa4, ta4, wb4, tb4, h)                     # 64 -> 64

        # adaptive avg pool -> per-sample row sum (1/L1 folded into wd)
        pooled = jnp.sum(h.reshape(TB, L1, h.shape[-1]), axis=1)   # (TB, 64)

        emb = jnp.dot(pooled, wd_ref[...],
                      preferred_element_type=f32) + bd_ref[...]    # (TB, 512)
        ss = jnp.sum(emb * emb, axis=1, keepdims=True)
        o_ref[...] = emb * lax.rsqrt(jnp.maximum(ss, 1e-24))       # ||.|| clamp 1e-12

    return kernel


# ----------------------------------------------------------------------------
# Wrapper
# ----------------------------------------------------------------------------
def _vmem_capacity_bytes():
    try:
        return int(pltpu.get_tpu_info().vmem_capacity_bytes)
    except Exception:
        return 64 << 20   # conservative (v7x per-TC) fallback


def model_2_feature_forward(x_ncw, kparams, *, tb=None):
    """x_ncw: (B, 1, L) float32 (PyTorch NCW).  Returns (B, 512) L2-normalized."""
    B, cin, L = x_ncw.shape
    assert cin == 1
    L1 = (L + 2 * PAD_STEM - K_STEM) // STRIDE + 1

    # ---- stem im2col (layout plumbing only, done once in XLA) ----------------
    xp = jnp.pad(x_ncw[:, 0, :].astype(jnp.float32), ((0, 0), (PAD_STEM, PAD_STEM)))
    cols = [xp[:, k:k + STRIDE * (L1 - 1) + 1:STRIDE] for k in range(K_STEM)]
    cols.append(jnp.zeros_like(cols[0]))                  # pad taps 7 -> 8 lanes
    xw = jnp.stack(cols, axis=-1)                         # (B, L1, 8)

    # ---- batch tile sizing ----------------------------------------------------
    # Large batch tile to amortize the ~0.35us/step pipeline overhead.  Row budget
    # from VMEM capacity (peak in-kernel working set ~5 KB/row: lane-padded
    # activations + fused (R,3*Cin) im2col + double-buffered lane-padded xw).
    vmem_cap = _vmem_capacity_bytes()
    rows_target = min(16384, max(512, vmem_cap // (16 * 1024)))  # ~4K v7x, ~8K v5e/v6e
    if tb is None:
        tb_rows = rows_target // L1
        if B <= 8 or tb_rows < 8:
            tb = B        # single grid step; output block == full output dims
        else:
            # multiple of 8 (unmasked full-sublane stores on the (tb,512) output)
            # and >= 2 grid steps so both v7x TensorCores get work.
            tb = max(8, min(tb_rows, B // 2) // 8 * 8)
    Bp = ((B + tb - 1) // tb) * tb
    if Bp != B:
        xw = jnp.pad(xw, ((0, Bp - B), (0, 0), (0, 0)))
    R = tb * L1
    xw = xw.reshape(Bp * L1, K_STEM + 1)

    in_specs = [pl.BlockSpec((R, K_STEM + 1), lambda b: (b, 0))]
    in_specs += [pl.BlockSpec(w.shape, lambda b: (0, 0)) for w in kparams]

    out = pl.pallas_call(
        make_kernel(tb, L1),
        out_shape=jax.ShapeDtypeStruct((Bp, EMB), jnp.float32),
        grid=(Bp // tb,),
        in_specs=in_specs,
        out_specs=pl.BlockSpec((tb, EMB), lambda b: (b, 0)),
        compiler_params=pltpu.CompilerParams(
            dimension_semantics=("parallel",),
            vmem_limit_bytes=int(min(vmem_cap, 128 << 20) * 3 // 4)),
    )(xw, *kparams)
    return out[:B]


# ----------------------------------------------------------------------------
# Parameters (PyTorch layouts) and kernel-layout preparation (BN folding etc.)
# ----------------------------------------------------------------------------
def init_raw_params(key):
    ks = iter(jax.random.split(key, 64))

    def u(shape, fan_in):
        bound = 1.0 / jnp.sqrt(jnp.float32(fan_in))
        return jax.random.uniform(next(ks), shape, jnp.float32, -bound, bound)

    def bn(c):  # deterministic, non-trivial BN params / running stats
        g = 1.0 + 0.1 * jax.random.normal(next(ks), (c,), jnp.float32)
        be = 0.1 * jax.random.normal(next(ks), (c,), jnp.float32)
        m = 0.1 * jax.random.normal(next(ks), (c,), jnp.float32)
        v = 1.0 + 0.1 * jax.random.uniform(next(ks), (c,), jnp.float32)
        return (g, be, m, v)

    raw = {'w1': u((C_STEM, 1, K_STEM), 1 * K_STEM),
           'b1': u((C_STEM,), 1 * K_STEM),
           'blocks': []}
    for cin, cout in BLOCK_CH:
        blk = {'wa': u((cout, cin, K_RES), cin * K_RES),
               'ba': u((cout,), cin * K_RES),
               'bna': bn(cout),
               'wb': u((cout, cout, K_RES), cout * K_RES),
               'bb': u((cout,), cout * K_RES),
               'bnb': bn(cout)}
        if cin != cout:
            blk['wr'] = u((cout, cin, 1), cin)
            blk['br'] = u((cout,), cin)
        raw['blocks'].append(blk)
    raw['wd'] = u((EMB, C_OUT), C_OUT)
    raw['bd'] = u((EMB,), C_OUT)
    return raw


def prepare_kernel_params(raw, L1):
    def conv_w(w_oik):  # torch (Cout, Cin, K) -> kernel (K*Cin, Cout)
        cout, cin, k = w_oik.shape
        return jnp.transpose(w_oik, (2, 1, 0)).reshape(k * cin, cout)

    def fold_conv_bn(w_oik, b, bnp):
        g, be, m, v = bnp
        s = g / jnp.sqrt(v + BN_EPS)                        # per-output-channel scale
        w = conv_w(w_oik) * s[None, :]                      # fold scale into weights
        t = ((b - m) * s + be).reshape(1, -1)               # remaining shift
        return w, t

    w1 = conv_w(raw['w1'])                                  # (7, 32)
    w1 = jnp.concatenate([w1, jnp.zeros((1, w1.shape[1]), w1.dtype)], axis=0)  # K 7->8
    params = [w1, raw['b1'].reshape(1, -1)]
    for blk in raw['blocks']:
        wa, ta = fold_conv_bn(blk['wa'], blk['ba'], blk['bna'])
        wb, tb_ = fold_conv_bn(blk['wb'], blk['bb'], blk['bnb'])
        if 'wr' in blk:
            params += [conv_w(blk['wr']), blk['br'].reshape(1, -1)]
        params += [wa, ta, wb, tb_]
    params += [jnp.transpose(raw['wd']) / jnp.float32(L1),   # fold avg-pool 1/L
               raw['bd'].reshape(1, -1)]
    return tuple(params)


# ----------------------------------------------------------------------------
# Pure-JAX reference (original, unfolded semantics)
# ----------------------------------------------------------------------------
def reference(x_ncw, raw):
    def conv1d(x_nwc, w_oik, b, stride, pad):
        w_wio = jnp.transpose(w_oik, (2, 1, 0))
        y = lax.conv_general_dilated(x_nwc, w_wio, window_strides=(stride,),
                                     padding=[(pad, pad)],
                                     dimension_numbers=('NWC', 'WIO', 'NWC'))
        return y + b[None, None, :]

    def bn_inf(x, bnp):
        g, be, m, v = bnp
        return (x - m) / jnp.sqrt(v + BN_EPS) * g + be

    def resblock(x, blk):
        y = jnp.maximum(bn_inf(conv1d(x, blk['wa'], blk['ba'], 1, 1), blk['bna']), 0.0)
        y = bn_inf(conv1d(y, blk['wb'], blk['bb'], 1, 1), blk['bnb'])
        res = conv1d(x, blk['wr'], blk['br'], 1, 0) if 'wr' in blk else x
        return jnp.maximum(y + res, 0.0)

    x = jnp.transpose(x_ncw, (0, 2, 1)).astype(jnp.float32)     # (B, L, 1)
    h = conv1d(x, raw['w1'], raw['b1'], STRIDE, PAD_STEM)
    for blk in raw['blocks']:
        h = resblock(h, blk)
    pooled = jnp.mean(h, axis=1)                                 # (B, 64)
    emb = pooled @ raw['wd'].T + raw['bd']
    nrm = jnp.sqrt(jnp.sum(emb * emb, axis=1, keepdims=True))
    return emb / jnp.maximum(nrm, 1e-12)


# ----------------------------------------------------------------------------
if __name__ == "__main__":
    key = jax.random.PRNGKey(0)
    k_x, k_p, k_x2 = jax.random.split(key, 3)

    B, L = 2, 64                      # conv1 (k7, s2, p3) -> L1 = 32
    x = jax.random.normal(k_x, (B, 1, L), jnp.float32)
    raw = init_raw_params(k_p)
    L1 = (L + 2 * PAD_STEM - K_STEM) // STRIDE + 1
    kparams = prepare_kernel_params(raw, L1)

    # small-batch path (single grid step, block == full dims)
    out = jax.block_until_ready(model_2_feature_forward(x, kparams))
    ref = jax.block_until_ready(reference(x, raw))
    assert out.shape == (B, EMB)
    err = jnp.max(jnp.abs(out - ref))
    assert jnp.allclose(out, ref, atol=1e-4, rtol=1e-4), f"max abs err {err}"

    # multi-step path (tb multiple of 8, grid >= 2) to exercise the tiled route
    B2 = 32
    x2 = jax.random.normal(k_x2, (B2, 1, L), jnp.float32)
    out2 = jax.block_until_ready(model_2_feature_forward(x2, kparams))
    ref2 = jax.block_until_ready(reference(x2, raw))
    err2 = jnp.max(jnp.abs(out2 - ref2))
    assert jnp.allclose(out2, ref2, atol=1e-4, rtol=1e-4), f"max abs err {err2}"

    print("KERNEL_OK")
</pallas_src>

<mosaic_0001>
module attributes {stable_mosaic.version = 11 : i64} {
  func.func @kernel(%arg0: i32, %arg1: memref<64x8xf32, #tpu.memory_space<vmem>>, %arg2: memref<8x32xf32, #tpu.memory_space<vmem>>, %arg3: memref<1x32xf32, #tpu.memory_space<vmem>>, %arg4: memref<96x32xf32, #tpu.memory_space<vmem>>, %arg5: memref<1x32xf32, #tpu.memory_space<vmem>>, %arg6: memref<96x32xf32, #tpu.memory_space<vmem>>, %arg7: memref<1x32xf32, #tpu.memory_space<vmem>>, %arg8: memref<96x32xf32, #tpu.memory_space<vmem>>, %arg9: memref<1x32xf32, #tpu.memory_space<vmem>>, %arg10: memref<96x32xf32, #tpu.memory_space<vmem>>, %arg11: memref<1x32xf32, #tpu.memory_space<vmem>>, %arg12: memref<32x64xf32, #tpu.memory_space<vmem>>, %arg13: memref<1x64xf32, #tpu.memory_space<vmem>>, %arg14: memref<96x64xf32, #tpu.memory_space<vmem>>, %arg15: memref<1x64xf32, #tpu.memory_space<vmem>>, %arg16: memref<192x64xf32, #tpu.memory_space<vmem>>, %arg17: memref<1x64xf32, #tpu.memory_space<vmem>>, %arg18: memref<192x64xf32, #tpu.memory_space<vmem>>, %arg19: memref<1x64xf32, #tpu.memory_space<vmem>>, %arg20: memref<192x64xf32, #tpu.memory_space<vmem>>, %arg21: memref<1x64xf32, #tpu.memory_space<vmem>>, %arg22: memref<64x512xf32, #tpu.memory_space<vmem>>, %arg23: memref<1x512xf32, #tpu.memory_space<vmem>>, %arg24: memref<2x512xf32, #tpu.memory_space<vmem>>) attributes {dimension_semantics = [#tpu.dimension_semantics<parallel>], iteration_bounds = array<i64: 1>, scalar_prefetch = 0 : i64, scratch_operands = 0 : i64, tpu.core_type = #tpu.core_type<tc>, window_params = [{transform_indices = @transform_0, window_bounds = array<i64: 64, 8>}, {pipeline_mode = #tpu.pipeline_mode<synchronous>, transform_indices = @transform_1, window_bounds = array<i64: 8, 32>}, {pipeline_mode = #tpu.pipeline_mode<synchronous>, transform_indices = @transform_2, window_bounds = array<i64: 1, 32>}, {pipeline_mode = #tpu.pipeline_mode<synchronous>, transform_indices = @transform_3, window_bounds = array<i64: 96, 32>}, {pipeline_mode = #tpu.pipeline_mode<synchronous>, transform_indices = @transform_4, window_bounds = array<i64: 1, 32>}, {pipeline_mode = #tpu.pipeline_mode<synchronous>, transform_indices = @transform_5, window_bounds = array<i64: 96, 32>}, {pipeline_mode = #tpu.pipeline_mode<synchronous>, transform_indices = @transform_6, window_bounds = array<i64: 1, 32>}, {pipeline_mode = #tpu.pipeline_mode<synchronous>, transform_indices = @transform_7, window_bounds = array<i64: 96, 32>}, {pipeline_mode = #tpu.pipeline_mode<synchronous>, transform_indices = @transform_8, window_bounds = array<i64: 1, 32>}, {pipeline_mode = #tpu.pipeline_mode<synchronous>, transform_indices = @transform_9, window_bounds = array<i64: 96, 32>}, {pipeline_mode = #tpu.pipeline_mode<synchronous>, transform_indices = @transform_10, window_bounds = array<i64: 1, 32>}, {pipeline_mode = #tpu.pipeline_mode<synchronous>, transform_indices = @transform_11, window_bounds = array<i64: 32, 64>}, {pipeline_mode = #tpu.pipeline_mode<synchronous>, transform_indices = @transform_12, window_bounds = array<i64: 1, 64>}, {pipeline_mode = #tpu.pipeline_mode<synchronous>, transform_indices = @transform_13, window_bounds = array<i64: 96, 64>}, {pipeline_mode = #tpu.pipeline_mode<synchronous>, transform_indices = @transform_14, window_bounds = array<i64: 1, 64>}, {pipeline_mode = #tpu.pipeline_mode<synchronous>, transform_indices = @transform_15, window_bounds = array<i64: 192, 64>}, {pipeline_mode = #tpu.pipeline_mode<synchronous>, transform_indices = @transform_16, window_bounds = array<i64: 1, 64>}, {pipeline_mode = #tpu.pipeline_mode<synchronous>, transform_indices = @transform_17, window_bounds = array<i64: 192, 64>}, {pipeline_mode = #tpu.pipeline_mode<synchronous>, transform_indices = @transform_18, window_bounds = array<i64: 1, 64>}, {pipeline_mode = #tpu.pipeline_mode<synchronous>, transform_indices = @transform_19, window_bounds = array<i64: 192, 64>}, {pipeline_mode = #tpu.pipeline_mode<synchronous>, transform_indices = @transform_20, window_bounds = array<i64: 1, 64>}, {pipeline_mode = #tpu.pipeline_mode<synchronous>, transform_indices = @transform_21, window_bounds = array<i64: 64, 512>}, {pipeline_mode = #tpu.pipeline_mode<synchronous>, transform_indices = @transform_22, window_bounds = array<i64: 1, 512>}, {transform_indices = @transform_23, window_bounds = array<i64: 2, 512>}]} {
    %0 = tpu.iota {dimensions = array<i32: 0>} : vector<64x32xi32>
    %c32_i32 = arith.constant 32 : i32
    %c0_i32 = arith.constant 0 : i32
    %1 = arith.cmpi eq, %c32_i32, %c0_i32 : i32
    %c1_i32 = arith.constant 1 : i32
    %2 = arith.select %1, %c1_i32, %c32_i32 : i32
    %3 = vector.broadcast %2 : i32 to vector<64x32xi32>
    %4 = arith.remsi %0, %3 : vector<64x32xi32>
    %c0_i32_0 = arith.constant 0 : i32
    %5 = vector.broadcast %c0_i32_0 : i32 to vector<64x32xi32>
    %6 = arith.cmpi ne, %4, %5 : vector<64x32xi32>
    %c0_i32_1 = arith.constant 0 : i32
    %7 = vector.broadcast %c0_i32_1 : i32 to vector<64x32xi32>
    %8 = arith.cmpi slt, %4, %7 : vector<64x32xi32>
    %c0_i32_2 = arith.constant 0 : i32
    %9 = arith.cmpi slt, %2, %c0_i32_2 : i32
    %10 = vector.broadcast %9 : i1 to vector<64x32xi1>
    %11 = vector.broadcast %10 : vector<64x32xi1> to vector<64x32xi1>
    %12 = arith.xori %8, %11 : vector<64x32xi1>
    %13 = arith.andi %12, %6 : vector<64x32xi1>
    %14 = vector.broadcast %2 : i32 to vector<64x32xi32>
    %15 = arith.addi %4, %14 : vector<64x32xi32>
    %16 = arith.select %13, %15, %4 : vector<64x32xi1>, vector<64x32xi32>
    %c0_i32_3 = arith.constant 0 : i32
    %17 = vector.broadcast %c0_i32_3 : i32 to vector<64x32xi32>
    %18 = arith.cmpi ne, %16, %17 : vector<64x32xi32>
    %c31_i32 = arith.constant 31 : i32
    %19 = vector.broadcast %c31_i32 : i32 to vector<64x32xi32>
    %20 = arith.cmpi ne, %16, %19 : vector<64x32xi32>
    %21 = tpu.iota {dimensions = array<i32: 0>} : vector<64x64xi32>
    %c32_i32_4 = arith.constant 32 : i32
    %c0_i32_5 = arith.constant 0 : i32
    %22 = arith.cmpi eq, %c32_i32_4, %c0_i32_5 : i32
    %c1_i32_6 = arith.constant 1 : i32
    %23 = arith.select %22, %c1_i32_6, %c32_i32_4 : i32
    %24 = vector.broadcast %23 : i32 to vector<64x64xi32>
    %25 = arith.remsi %21, %24 : vector<64x64xi32>
    %c0_i32_7 = arith.constant 0 : i32
    %26 = vector.broadcast %c0_i32_7 : i32 to vector<64x64xi32>
    %27 = arith.cmpi ne, %25, %26 : vector<64x64xi32>
    %c0_i32_8 = arith.constant 0 : i32
    %28 = vector.broadcast %c0_i32_8 : i32 to vector<64x64xi32>
    %29 = arith.cmpi slt, %25, %28 : vector<64x64xi32>
    %c0_i32_9 = arith.constant 0 : i32
    %30 = arith.cmpi slt, %23, %c0_i32_9 : i32
    %31 = vector.broadcast %30 : i1 to vector<64x64xi1>
    %32 = vector.broadcast %31 : vector<64x64xi1> to vector<64x64xi1>
    %33 = arith.xori %29, %32 : vector<64x64xi1>
    %34 = arith.andi %33, %27 : vector<64x64xi1>
    %35 = vector.broadcast %23 : i32 to vector<64x64xi32>
    %36 = arith.addi %25, %35 : vector<64x64xi32>
    %37 = arith.select %34, %36, %25 : vector<64x64xi1>, vector<64x64xi32>
    %c0_i32_10 = arith.constant 0 : i32
    %38 = vector.broadcast %c0_i32_10 : i32 to vector<64x64xi32>
    %39 = arith.cmpi ne, %37, %38 : vector<64x64xi32>
    %c31_i32_11 = arith.constant 31 : i32
    %40 = vector.broadcast %c31_i32_11 : i32 to vector<64x64xi32>
    %41 = arith.cmpi ne, %37, %40 : vector<64x64xi32>
    %c0 = arith.constant 0 : index
    %c0_12 = arith.constant 0 : index
    %42 = vector.load %arg1[%c0, %c0_12] : memref<64x8xf32, #tpu.memory_space<vmem>>, vector<64x8xf32>
    %c0_13 = arith.constant 0 : index
    %c0_14 = arith.constant 0 : index
    %43 = vector.load %arg2[%c0_13, %c0_14] : memref<8x32xf32, #tpu.memory_space<vmem>>, vector<8x32xf32>
    %cst = arith.constant dense<0.000000e+00> : vector<64x32xf32>
    %44 = tpu.matmul %42, %43, %cst {dimension_numbers = #tpu.dot_dimension_numbers<[1], [0], [0], [1], [0, 0, 1, 1], [], []>} : vector<64x8xf32>, vector<8x32xf32>, vector<64x32xf32> -> vector<64x32xf32>
    %c0_15 = arith.constant 0 : index
    %c0_16 = arith.constant 0 : index
    %45 = vector.load %arg3[%c0_15, %c0_16] : memref<1x32xf32, #tpu.memory_space<vmem>>, vector<1x32xf32>
    %46 = vector.broadcast %45 : vector<1x32xf32> to vector<64x32xf32>
    %47 = arith.addf %44, %46 : vector<64x32xf32>
    %48 = vector.extract_strided_slice %47 {offsets = [63, 0], sizes = [1, 32], strides = [1, 1]} : vector<64x32xf32> to vector<1x32xf32>
    %49 = vector.extract_strided_slice %47 {offsets = [0, 0], sizes = [63, 32], strides = [1, 1]} : vector<64x32xf32> to vector<63x32xf32>
    %50 = tpu.concatenate %48, %49 in 0 : vector<1x32xf32>, vector<63x32xf32> -> vector<64x32xf32>
    %cst_17 = arith.constant 0.000000e+00 : f32
    %51 = vector.broadcast %cst_17 : f32 to vector<64x32xf32>
    %52 = arith.select %18, %50, %51 : vector<64x32xi1>, vector<64x32xf32>
    %53 = vector.extract_strided_slice %47 {offsets = [1, 0], sizes = [63, 32], strides = [1, 1]} : vector<64x32xf32> to vector<63x32xf32>
    %54 = vector.extract_strided_slice %47 {offsets = [0, 0], sizes = [1, 32], strides = [1, 1]} : vector<64x32xf32> to vector<1x32xf32>
    %55 = tpu.concatenate %53, %54 in 0 : vector<63x32xf32>, vector<1x32xf32> -> vector<64x32xf32>
    %cst_18 = arith.constant 0.000000e+00 : f32
    %56 = vector.broadcast %cst_18 : f32 to vector<64x32xf32>
    %57 = arith.select %20, %55, %56 : vector<64x32xi1>, vector<64x32xf32>
    %58 = tpu.concatenate %52, %47, %57 in 1 : vector<64x32xf32>, vector<64x32xf32>, vector<64x32xf32> -> vector<64x96xf32>
    %c0_19 = arith.constant 0 : index
    %c0_20 = arith.constant 0 : index
    %59 = vector.load %arg4[%c0_19, %c0_20] : memref<96x32xf32, #tpu.memory_space<vmem>>, vector<96x32xf32>
    %cst_21 = arith.constant dense<0.000000e+00> : vector<64x32xf32>
    %60 = tpu.matmul %58, %59, %cst_21 {dimension_numbers = #tpu.dot_dimension_numbers<[1], [0], [0], [1], [0, 0, 1, 1], [], []>} : vector<64x96xf32>, vector<96x32xf32>, vector<64x32xf32> -> vector<64x32xf32>
    %c0_22 = arith.constant 0 : index
    %c0_23 = arith.constant 0 : index
    %61 = vector.load %arg5[%c0_22, %c0_23] : memref<1x32xf32, #tpu.memory_space<vmem>>, vector<1x32xf32>
    %62 = vector.broadcast %61 : vector<1x32xf32> to vector<64x32xf32>
    %63 = arith.addf %60, %62 : vector<64x32xf32>
    %cst_24 = arith.constant 0.000000e+00 : f32
    %64 = vector.broadcast %cst_24 : f32 to vector<64x32xf32>
    %65 = arith.maximumf %63, %64 : vector<64x32xf32>
    %66 = vector.extract_strided_slice %65 {offsets = [63, 0], sizes = [1, 32], strides = [1, 1]} : vector<64x32xf32> to vector<1x32xf32>
    %67 = vector.extract_strided_slice %65 {offsets = [0, 0], sizes = [63, 32], strides = [1, 1]} : vector<64x32xf32> to vector<63x32xf32>
    %68 = tpu.concatenate %66, %67 in 0 : vector<1x32xf32>, vector<63x32xf32> -> vector<64x32xf32>
    %cst_25 = arith.constant 0.000000e+00 : f32
    %69 = vector.broadcast %cst_25 : f32 to vector<64x32xf32>
    %70 = arith.select %18, %68, %69 : vector<64x32xi1>, vector<64x32xf32>
    %71 = vector.extract_strided_slice %65 {offsets = [1, 0], sizes = [63, 32], strides = [1, 1]} : vector<64x32xf32> to vector<63x32xf32>
    %72 = vector.extract_strided_slice %65 {offsets = [0, 0], sizes = [1, 32], strides = [1, 1]} : vector<64x32xf32> to vector<1x32xf32>
    %73 = tpu.concatenate %71, %72 in 0 : vector<63x32xf32>, vector<1x32xf32> -> vector<64x32xf32>
    %cst_26 = arith.constant 0.000000e+00 : f32
    %74 = vector.broadcast %cst_26 : f32 to vector<64x32xf32>
    %75 = arith.select %20, %73, %74 : vector<64x32xi1>, vector<64x32xf32>
    %76 = tpu.concatenate %70, %65, %75 in 1 : vector<64x32xf32>, vector<64x32xf32>, vector<64x32xf32> -> vector<64x96xf32>
    %c0_27 = arith.constant 0 : index
    %c0_28 = arith.constant 0 : index
    %77 = vector.load %arg6[%c0_27, %c0_28] : memref<96x32xf32, #tpu.memory_space<vmem>>, vector<96x32xf32>
    %cst_29 = arith.constant dense<0.000000e+00> : vector<64x32xf32>
    %78 = tpu.matmul %76, %77, %cst_29 {dimension_numbers = #tpu.dot_dimension_numbers<[1], [0], [0], [1], [0, 0, 1, 1], [], []>} : vector<64x96xf32>, vector<96x32xf32>, vector<64x32xf32> -> vector<64x32xf32>
    %c0_30 = arith.constant 0 : index
    %c0_31 = arith.constant 0 : index
    %79 = vector.load %arg7[%c0_30, %c0_31] : memref<1x32xf32, #tpu.memory_space<vmem>>, vector<1x32xf32>
    %80 = vector.broadcast %79 : vector<1x32xf32> to vector<64x32xf32>
    %81 = arith.addf %78, %80 : vector<64x32xf32>
    %82 = arith.addf %81, %47 : vector<64x32xf32>
    %cst_32 = arith.constant 0.000000e+00 : f32
    %83 = vector.broadcast %cst_32 : f32 to vector<64x32xf32>
    %84 = arith.maximumf %82, %83 : vector<64x32xf32>
    %85 = vector.extract_strided_slice %84 {offsets = [63, 0], sizes = [1, 32], strides = [1, 1]} : vector<64x32xf32> to vector<1x32xf32>
    %86 = vector.extract_strided_slice %84 {offsets = [0, 0], sizes = [63, 32], strides = [1, 1]} : vector<64x32xf32> to vector<63x32xf32>
    %87 = tpu.concatenate %85, %86 in 0 : vector<1x32xf32>, vector<63x32xf32> -> vector<64x32xf32>
    %cst_33 = arith.constant 0.000000e+00 : f32
    %88 = vector.broadcast %cst_33 : f32 to vector<64x32xf32>
    %89 = arith.select %18, %87, %88 : vector<64x32xi1>, vector<64x32xf32>
    %90 = vector.extract_strided_slice %84 {offsets = [1, 0], sizes = [63, 32], strides = [1, 1]} : vector<64x32xf32> to vector<63x32xf32>
    %91 = vector.extract_strided_slice %84 {offsets = [0, 0], sizes = [1, 32], strides = [1, 1]} : vector<64x32xf32> to vector<1x32xf32>
    %92 = tpu.concatenate %90, %91 in 0 : vector<63x32xf32>, vector<1x32xf32> -> vector<64x32xf32>
    %cst_34 = arith.constant 0.000000e+00 : f32
    %93 = vector.broadcast %cst_34 : f32 to vector<64x32xf32>
    %94 = arith.select %20, %92, %93 : vector<64x32xi1>, vector<64x32xf32>
    %95 = tpu.concatenate %89, %84, %94 in 1 : vector<64x32xf32>, vector<64x32xf32>, vector<64x32xf32> -> vector<64x96xf32>
    %c0_35 = arith.constant 0 : index
    %c0_36 = arith.constant 0 : index
    %96 = vector.load %arg8[%c0_35, %c0_36] : memref<96x32xf32, #tpu.memory_space<vmem>>, vector<96x32xf32>
    %cst_37 = arith.constant dense<0.000000e+00> : vector<64x32xf32>
    %97 = tpu.matmul %95, %96, %cst_37 {dimension_numbers = #tpu.dot_dimension_numbers<[1], [0], [0], [1], [0, 0, 1, 1], [], []>} : vector<64x96xf32>, vector<96x32xf32>, vector<64x32xf32> -> vector<64x32xf32>
    %c0_38 = arith.constant 0 : index
    %c0_39 = arith.constant 0 : index
    %98 = vector.load %arg9[%c0_38, %c0_39] : memref<1x32xf32, #tpu.memory_space<vmem>>, vector<1x32xf32>
    %99 = vector.broadcast %98 : vector<1x32xf32> to vector<64x32xf32>
    %100 = arith.addf %97, %99 : vector<64x32xf32>
    %cst_40 = arith.constant 0.000000e+00 : f32
    %101 = vector.broadcast %cst_40 : f32 to vector<64x32xf32>
    %102 = arith.maximumf %100, %101 : vector<64x32xf32>
    %103 = vector.extract_strided_slice %102 {offsets = [63, 0], sizes = [1, 32], strides = [1, 1]} : vector<64x32xf32> to vector<1x32xf32>
    %104 = vector.extract_strided_slice %102 {offsets = [0, 0], sizes = [63, 32], strides = [1, 1]} : vector<64x32xf32> to vector<63x32xf32>
    %105 = tpu.concatenate %103, %104 in 0 : vector<1x32xf32>, vector<63x32xf32> -> vector<64x32xf32>
    %cst_41 = arith.constant 0.000000e+00 : f32
    %106 = vector.broadcast %cst_41 : f32 to vector<64x32xf32>
    %107 = arith.select %18, %105, %106 : vector<64x32xi1>, vector<64x32xf32>
    %108 = vector.extract_strided_slice %102 {offsets = [1, 0], sizes = [63, 32], strides = [1, 1]} : vector<64x32xf32> to vector<63x32xf32>
    %109 = vector.extract_strided_slice %102 {offsets = [0, 0], sizes = [1, 32], strides = [1, 1]} : vector<64x32xf32> to vector<1x32xf32>
    %110 = tpu.concatenate %108, %109 in 0 : vector<63x32xf32>, vector<1x32xf32> -> vector<64x32xf32>
    %cst_42 = arith.constant 0.000000e+00 : f32
    %111 = vector.broadcast %cst_42 : f32 to vector<64x32xf32>
    %112 = arith.select %20, %110, %111 : vector<64x32xi1>, vector<64x32xf32>
    %113 = tpu.concatenate %107, %102, %112 in 1 : vector<64x32xf32>, vector<64x32xf32>, vector<64x32xf32> -> vector<64x96xf32>
    %c0_43 = arith.constant 0 : index
    %c0_44 = arith.constant 0 : index
    %114 = vector.load %arg10[%c0_43, %c0_44] : memref<96x32xf32, #tpu.memory_space<vmem>>, vector<96x32xf32>
    %cst_45 = arith.constant dense<0.000000e+00> : vector<64x32xf32>
    %115 = tpu.matmul %113, %114, %cst_45 {dimension_numbers = #tpu.dot_dimension_numbers<[1], [0], [0], [1], [0, 0, 1, 1], [], []>} : vector<64x96xf32>, vector<96x32xf32>, vector<64x32xf32> -> vector<64x32xf32>
    %c0_46 = arith.constant 0 : index
    %c0_47 = arith.constant 0 : index
    %116 = vector.load %arg11[%c0_46, %c0_47] : memref<1x32xf32, #tpu.memory_space<vmem>>, vector<1x32xf32>
    %117 = vector.broadcast %116 : vector<1x32xf32> to vector<64x32xf32>
    %118 = arith.addf %115, %117 : vector<64x32xf32>
    %119 = arith.addf %118, %84 : vector<64x32xf32>
    %cst_48 = arith.constant 0.000000e+00 : f32
    %120 = vector.broadcast %cst_48 : f32 to vector<64x32xf32>
    %121 = arith.maximumf %119, %120 : vector<64x32xf32>
    %c0_49 = arith.constant 0 : index
    %c0_50 = arith.constant 0 : index
    %122 = vector.load %arg12[%c0_49, %c0_50] : memref<32x64xf32, #tpu.memory_space<vmem>>, vector<32x64xf32>
    %cst_51 = arith.constant dense<0.000000e+00> : vector<64x64xf32>
    %123 = tpu.matmul %121, %122, %cst_51 {dimension_numbers = #tpu.dot_dimension_numbers<[1], [0], [0], [1], [0, 0, 1, 1], [], []>} : vector<64x32xf32>, vector<32x64xf32>, vector<64x64xf32> -> vector<64x64xf32>
    %c0_52 = arith.constant 0 : index
    %c0_53 = arith.constant 0 : index
    %124 = vector.load %arg13[%c0_52, %c0_53] : memref<1x64xf32, #tpu.memory_space<vmem>>, vector<1x64xf32>
    %125 = vector.broadcast %124 : vector<1x64xf32> to vector<64x64xf32>
    %126 = arith.addf %123, %125 : vector<64x64xf32>
    %127 = vector.extract_strided_slice %121 {offsets = [63, 0], sizes = [1, 32], strides = [1, 1]} : vector<64x32xf32> to vector<1x32xf32>
    %128 = vector.extract_strided_slice %121 {offsets = [0, 0], sizes = [63, 32], strides = [1, 1]} : vector<64x32xf32> to vector<63x32xf32>
    %129 = tpu.concatenate %127, %128 in 0 : vector<1x32xf32>, vector<63x32xf32> -> vector<64x32xf32>
    %cst_54 = arith.constant 0.000000e+00 : f32
    %130 = vector.broadcast %cst_54 : f32 to vector<64x32xf32>
    %131 = arith.select %18, %129, %130 : vector<64x32xi1>, vector<64x32xf32>
    %132 = vector.extract_strided_slice %121 {offsets = [1, 0], sizes = [63, 32], strides = [1, 1]} : vector<64x32xf32> to vector<63x32xf32>
    %133 = vector.extract_strided_slice %121 {offsets = [0, 0], sizes = [1, 32], strides = [1, 1]} : vector<64x32xf32> to vector<1x32xf32>
    %134 = tpu.concatenate %132, %133 in 0 : vector<63x32xf32>, vector<1x32xf32> -> vector<64x32xf32>
    %cst_55 = arith.constant 0.000000e+00 : f32
    %135 = vector.broadcast %cst_55 : f32 to vector<64x32xf32>
    %136 = arith.select %20, %134, %135 : vector<64x32xi1>, vector<64x32xf32>
    %137 = tpu.concatenate %131, %121, %136 in 1 : vector<64x32xf32>, vector<64x32xf32>, vector<64x32xf32> -> vector<64x96xf32>
    %c0_56 = arith.constant 0 : index
    %c0_57 = arith.constant 0 : index
    %138 = vector.load %arg14[%c0_56, %c0_57] : memref<96x64xf32, #tpu.memory_space<vmem>>, vector<96x64xf32>
    %cst_58 = arith.constant dense<0.000000e+00> : vector<64x64xf32>
    %139 = tpu.matmul %137, %138, %cst_58 {dimension_numbers = #tpu.dot_dimension_numbers<[1], [0], [0], [1], [0, 0, 1, 1], [], []>} : vector<64x96xf32>, vector<96x64xf32>, vector<64x64xf32> -> vector<64x64xf32>
    %c0_59 = arith.constant 0 : index
    %c0_60 = arith.constant 0 : index
    %140 = vector.load %arg15[%c0_59, %c0_60] : memref<1x64xf32, #tpu.memory_space<vmem>>, vector<1x64xf32>
    %141 = vector.broadcast %140 : vector<1x64xf32> to vector<64x64xf32>
    %142 = arith.addf %139, %141 : vector<64x64xf32>
    %cst_61 = arith.constant 0.000000e+00 : f32
    %143 = vector.broadcast %cst_61 : f32 to vector<64x64xf32>
    %144 = arith.maximumf %142, %143 : vector<64x64xf32>
    %145 = vector.extract_strided_slice %144 {offsets = [63, 0], sizes = [1, 64], strides = [1, 1]} : vector<64x64xf32> to vector<1x64xf32>
    %146 = vector.extract_strided_slice %144 {offsets = [0, 0], sizes = [63, 64], strides = [1, 1]} : vector<64x64xf32> to vector<63x64xf32>
    %147 = tpu.concatenate %145, %146 in 0 : vector<1x64xf32>, vector<63x64xf32> -> vector<64x64xf32>
    %cst_62 = arith.constant 0.000000e+00 : f32
    %148 = vector.broadcast %cst_62 : f32 to vector<64x64xf32>
    %149 = arith.select %39, %147, %148 : vector<64x64xi1>, vector<64x64xf32>
    %150 = vector.extract_strided_slice %144 {offsets = [1, 0], sizes = [63, 64], strides = [1, 1]} : vector<64x64xf32> to vector<63x64xf32>
    %151 = vector.extract_strided_slice %144 {offsets = [0, 0], sizes = [1, 64], strides = [1, 1]} : vector<64x64xf32> to vector<1x64xf32>
    %152 = tpu.concatenate %150, %151 in 0 : vector<63x64xf32>, vector<1x64xf32> -> vector<64x64xf32>
    %cst_63 = arith.constant 0.000000e+00 : f32
    %153 = vector.broadcast %cst_63 : f32 to vector<64x64xf32>
    %154 = arith.select %41, %152, %153 : vector<64x64xi1>, vector<64x64xf32>
    %155 = tpu.concatenate %149, %144, %154 in 1 : vector<64x64xf32>, vector<64x64xf32>, vector<64x64xf32> -> vector<64x192xf32>
    %c0_64 = arith.constant 0 : index
    %c0_65 = arith.constant 0 : index
    %156 = vector.load %arg16[%c0_64, %c0_65] : memref<192x64xf32, #tpu.memory_space<vmem>>, vector<192x64xf32>
    %cst_66 = arith.constant dense<0.000000e+00> : vector<64x64xf32>
    %157 = tpu.matmul %155, %156, %cst_66 {dimension_numbers = #tpu.dot_dimension_numbers<[1], [0], [0], [1], [0, 0, 1, 1], [], []>} : vector<64x192xf32>, vector<192x64xf32>, vector<64x64xf32> -> vector<64x64xf32>
    %c0_67 = arith.constant 0 : index
    %c0_68 = arith.constant 0 : index
    %158 = vector.load %arg17[%c0_67, %c0_68] : memref<1x64xf32, #tpu.memory_space<vmem>>, vector<1x64xf32>
    %159 = vector.broadcast %158 : vector<1x64xf32> to vector<64x64xf32>
    %160 = arith.addf %157, %159 : vector<64x64xf32>
    %161 = arith.addf %160, %126 : vector<64x64xf32>
    %cst_69 = arith.constant 0.000000e+00 : f32
    %162 = vector.broadcast %cst_69 : f32 to vector<64x64xf32>
    %163 = arith.maximumf %161, %162 : vector<64x64xf32>
    %164 = vector.extract_strided_slice %163 {offsets = [63, 0], sizes = [1, 64], strides = [1, 1]} : vector<64x64xf32> to vector<1x64xf32>
    %165 = vector.extract_strided_slice %163 {offsets = [0, 0], sizes = [63, 64], strides = [1, 1]} : vector<64x64xf32> to vector<63x64xf32>
    %166 = tpu.concatenate %164, %165 in 0 : vector<1x64xf32>, vector<63x64xf32> -> vector<64x64xf32>
    %cst_70 = arith.constant 0.000000e+00 : f32
    %167 = vector.broadcast %cst_70 : f32 to vector<64x64xf32>
    %168 = arith.select %39, %166, %167 : vector<64x64xi1>, vector<64x64xf32>
    %169 = vector.extract_strided_slice %163 {offsets = [1, 0], sizes = [63, 64], strides = [1, 1]} : vector<64x64xf32> to vector<63x64xf32>
    %170 = vector.extract_strided_slice %163 {offsets = [0, 0], sizes = [1, 64], strides = [1, 1]} : vector<64x64xf32> to vector<1x64xf32>
    %171 = tpu.concatenate %169, %170 in 0 : vector<63x64xf32>, vector<1x64xf32> -> vector<64x64xf32>
    %cst_71 = arith.constant 0.000000e+00 : f32
    %172 = vector.broadcast %cst_71 : f32 to vector<64x64xf32>
    %173 = arith.select %41, %171, %172 : vector<64x64xi1>, vector<64x64xf32>
    %174 = tpu.concatenate %168, %163, %173 in 1 : vector<64x64xf32>, vector<64x64xf32>, vector<64x64xf32> -> vector<64x192xf32>
    %c0_72 = arith.constant 0 : index
    %c0_73 = arith.constant 0 : index
    %175 = vector.load %arg18[%c0_72, %c0_73] : memref<192x64xf32, #tpu.memory_space<vmem>>, vector<192x64xf32>
    %cst_74 = arith.constant dense<0.000000e+00> : vector<64x64xf32>
    %176 = tpu.matmul %174, %175, %cst_74 {dimension_numbers = #tpu.dot_dimension_numbers<[1], [0], [0], [1], [0, 0, 1, 1], [], []>} : vector<64x192xf32>, vector<192x64xf32>, vector<64x64xf32> -> vector<64x64xf32>
    %c0_75 = arith.constant 0 : index
    %c0_76 = arith.constant 0 : index
    %177 = vector.load %arg19[%c0_75, %c0_76] : memref<1x64xf32, #tpu.memory_space<vmem>>, vector<1x64xf32>
    %178 = vector.broadcast %177 : vector<1x64xf32> to vector<64x64xf32>
    %179 = arith.addf %176, %178 : vector<64x64xf32>
    %cst_77 = arith.constant 0.000000e+00 : f32
    %180 = vector.broadcast %cst_77 : f32 to vector<64x64xf32>
    %181 = arith.maximumf %179, %180 : vector<64x64xf32>
    %182 = vector.extract_strided_slice %181 {offsets = [63, 0], sizes = [1, 64], strides = [1, 1]} : vector<64x64xf32> to vector<1x64xf32>
    %183 = vector.extract_strided_slice %181 {offsets = [0, 0], sizes = [63, 64], strides = [1, 1]} : vector<64x64xf32> to vector<63x64xf32>
    %184 = tpu.concatenate %182, %183 in 0 : vector<1x64xf32>, vector<63x64xf32> -> vector<64x64xf32>
    %cst_78 = arith.constant 0.000000e+00 : f32
    %185 = vector.broadcast %cst_78 : f32 to vector<64x64xf32>
    %186 = arith.select %39, %184, %185 : vector<64x64xi1>, vector<64x64xf32>
    %187 = vector.extract_strided_slice %181 {offsets = [1, 0], sizes = [63, 64], strides = [1, 1]} : vector<64x64xf32> to vector<63x64xf32>
    %188 = vector.extract_strided_slice %181 {offsets = [0, 0], sizes = [1, 64], strides = [1, 1]} : vector<64x64xf32> to vector<1x64xf32>
    %189 = tpu.concatenate %187, %188 in 0 : vector<63x64xf32>, vector<1x64xf32> -> vector<64x64xf32>
    %cst_79 = arith.constant 0.000000e+00 : f32
    %190 = vector.broadcast %cst_79 : f32 to vector<64x64xf32>
    %191 = arith.select %41, %189, %190 : vector<64x64xi1>, vector<64x64xf32>
    %192 = tpu.concatenate %186, %181, %191 in 1 : vector<64x64xf32>, vector<64x64xf32>, vector<64x64xf32> -> vector<64x192xf32>
    %c0_80 = arith.constant 0 : index
    %c0_81 = arith.constant 0 : index
    %193 = vector.load %arg20[%c0_80, %c0_81] : memref<192x64xf32, #tpu.memory_space<vmem>>, vector<192x64xf32>
    %cst_82 = arith.constant dense<0.000000e+00> : vector<64x64xf32>
    %194 = tpu.matmul %192, %193, %cst_82 {dimension_numbers = #tpu.dot_dimension_numbers<[1], [0], [0], [1], [0, 0, 1, 1], [], []>} : vector<64x192xf32>, vector<192x64xf32>, vector<64x64xf32> -> vector<64x64xf32>
    %c0_83 = arith.constant 0 : index
    %c0_84 = arith.constant 0 : index
    %195 = vector.load %arg21[%c0_83, %c0_84] : memref<1x64xf32, #tpu.memory_space<vmem>>, vector<1x64xf32>
    %196 = vector.broadcast %195 : vector<1x64xf32> to vector<64x64xf32>
    %197 = arith.addf %194, %196 : vector<64x64xf32>
    %198 = arith.addf %197, %163 : vector<64x64xf32>
    %cst_85 = arith.constant 0.000000e+00 : f32
    %199 = vector.broadcast %cst_85 : f32 to vector<64x64xf32>
    %200 = arith.maximumf %198, %199 : vector<64x64xf32>
    %201 = vector.shape_cast %200 : vector<64x64xf32> to vector<2x32x64xf32>
    %cst_86 = arith.constant dense<0.000000e+00> : vector<2x64xf32>
    %202 = vector.multi_reduction <add>, %201, %cst_86 [1] : vector<2x32x64xf32> to vector<2x64xf32>
    %c0_87 = arith.constant 0 : index
    %c0_88 = arith.constant 0 : index
    %203 = vector.load %arg22[%c0_87, %c0_88] : memref<64x512xf32, #tpu.memory_space<vmem>>, vector<64x512xf32>
    %cst_89 = arith.constant dense<0.000000e+00> : vector<2x512xf32>
    %204 = tpu.matmul %202, %203, %cst_89 {dimension_numbers = #tpu.dot_dimension_numbers<[1], [0], [0], [1], [0, 0, 1, 1], [], []>} : vector<2x64xf32>, vector<64x512xf32>, vector<2x512xf32> -> vector<2x512xf32>
    %c0_90 = arith.constant 0 : index
    %c0_91 = arith.constant 0 : index
    %205 = vector.load %arg23[%c0_90, %c0_91] : memref<1x512xf32, #tpu.memory_space<vmem>>, vector<1x512xf32>
    %206 = vector.broadcast %205 : vector<1x512xf32> to vector<2x512xf32>
    %207 = arith.addf %204, %206 : vector<2x512xf32>
    %208 = arith.mulf %207, %207 : vector<2x512xf32>
    %cst_92 = arith.constant dense<0.000000e+00> : vector<2xf32>
    %209 = vector.multi_reduction <add>, %208, %cst_92 [1] : vector<2x512xf32> to vector<2xf32>
    %210 = vector.shape_cast %209 : vector<2xf32> to vector<2x1xf32>
    %cst_93 = arith.constant 1.000000e-24 : f32
    %211 = vector.broadcast %cst_93 : f32 to vector<2x1xf32>
    %212 = arith.maximumf %210, %211 : vector<2x1xf32>
    %213 = math.rsqrt %212 : vector<2x1xf32>
    %214 = vector.broadcast %213 : vector<2x1xf32> to vector<2x512xf32>
    %215 = arith.mulf %207, %214 : vector<2x512xf32>
    %c0_94 = arith.constant 0 : index
    %c0_95 = arith.constant 0 : index
    %216 = vector.load %arg24[%c0_94, %c0_95] : memref<2x512xf32, #tpu.memory_space<vmem>>, vector<2x512xf32>
    tpu.vector_store %arg24[%c0_94, %c0_95], %215 {strides = array<i32>} : memref<2x512xf32, #tpu.memory_space<vmem>>, vector<2x512xf32>,
    return
  }
  func.func @transform_0(%arg0: i32) -> (i32, i32) {
    %c0_i32 = arith.constant 0 : i32
    %c0_i32_0 = arith.constant 0 : i32
    return %arg0, %c0_i32 : i32, i32
  }
  func.func @transform_1(%arg0: i32) -> (i32, i32) {
    %c0_i32 = arith.constant 0 : i32
    %c0_i32_0 = arith.constant 0 : i32
    %c0_i32_1 = arith.constant 0 : i32
    return %c0_i32, %c0_i32_0 : i32, i32
  }
  func.func @transform_2(%arg0: i32) -> (i32, i32) {
    %c0_i32 = arith.constant 0 : i32
    %c0_i32_0 = arith.constant 0 : i32
    %c0_i32_1 = arith.constant 0 : i32
    return %c0_i32, %c0_i32_0 : i32, i32
  }
  func.func @transform_3(%arg0: i32) -> (i32, i32) {
    %c0_i32 = arith.constant 0 : i32
    %c0_i32_0 = arith.constant 0 : i32
    %c0_i32_1 = arith.constant 0 : i32
    return %c0_i32, %c0_i32_0 : i32, i32
  }
  func.func @transform_4(%arg0: i32) -> (i32, i32) {
    %c0_i32 = arith.constant 0 : i32
    %c0_i32_0 = arith.constant 0 : i32
    %c0_i32_1 = arith.constant 0 : i32
    return %c0_i32, %c0_i32_0 : i32, i32
  }
  func.func @transform_5(%arg0: i32) -> (i32, i32) {
    %c0_i32 = arith.constant 0 : i32
    %c0_i32_0 = arith.constant 0 : i32
    %c0_i32_1 = arith.constant 0 : i32
    return %c0_i32, %c0_i32_0 : i32, i32
  }
  func.func @transform_6(%arg0: i32) -> (i32, i32) {
    %c0_i32 = arith.constant 0 : i32
    %c0_i32_0 = arith.constant 0 : i32
    %c0_i32_1 = arith.constant 0 : i32
    return %c0_i32, %c0_i32_0 : i32, i32
  }
  func.func @transform_7(%arg0: i32) -> (i32, i32) {
    %c0_i32 = arith.constant 0 : i32
    %c0_i32_0 = arith.constant 0 : i32
    %c0_i32_1 = arith.constant 0 : i32
    return %c0_i32, %c0_i32_0 : i32, i32
  }
  func.func @transform_8(%arg0: i32) -> (i32, i32) {
    %c0_i32 = arith.constant 0 : i32
    %c0_i32_0 = arith.constant 0 : i32
    %c0_i32_1 = arith.constant 0 : i32
    return %c0_i32, %c0_i32_0 : i32, i32
  }
  func.func @transform_9(%arg0: i32) -> (i32, i32) {
    %c0_i32 = arith.constant 0 : i32
    %c0_i32_0 = arith.constant 0 : i32
    %c0_i32_1 = arith.constant 0 : i32
    return %c0_i32, %c0_i32_0 : i32, i32
  }
  func.func @transform_10(%arg0: i32) -> (i32, i32) {
    %c0_i32 = arith.constant 0 : i32
    %c0_i32_0 = arith.constant 0 : i32
    %c0_i32_1 = arith.constant 0 : i32
    return %c0_i32, %c0_i32_0 : i32, i32
  }
  func.func @transform_11(%arg0: i32) -> (i32, i32) {
    %c0_i32 = arith.constant 0 : i32
    %c0_i32_0 = arith.constant 0 : i32
    %c0_i32_1 = arith.constant 0 : i32
    return %c0_i32, %c0_i32_0 : i32, i32
  }
  func.func @transform_12(%arg0: i32) -> (i32, i32) {
    %c0_i32 = arith.constant 0 : i32
    %c0_i32_0 = arith.constant 0 : i32
    %c0_i32_1 = arith.constant 0 : i32
    return %c0_i32, %c0_i32_0 : i32, i32
  }
  func.func @transform_13(%arg0: i32) -> (i32, i32) {
    %c0_i32 = arith.constant 0 : i32
    %c0_i32_0 = arith.constant 0 : i32
    %c0_i32_1 = arith.constant 0 : i32
    return %c0_i32, %c0_i32_0 : i32, i32
  }
  func.func @transform_14(%arg0: i32) -> (i32, i32) {
    %c0_i32 = arith.constant 0 : i32
    %c0_i32_0 = arith.constant 0 : i32
    %c0_i32_1 = arith.constant 0 : i32
    return %c0_i32, %c0_i32_0 : i32, i32
  }
  func.func @transform_15(%arg0: i32) -> (i32, i32) {
    %c0_i32 = arith.constant 0 : i32
    %c0_i32_0 = arith.constant 0 : i32
    %c0_i32_1 = arith.constant 0 : i32
    return %c0_i32, %c0_i32_0 : i32, i32
  }
  func.func @transform_16(%arg0: i32) -> (i32, i32) {
    %c0_i32 = arith.constant 0 : i32
    %c0_i32_0 = arith.constant 0 : i32
    %c0_i32_1 = arith.constant 0 : i32
    return %c0_i32, %c0_i32_0 : i32, i32
  }
  func.func @transform_17(%arg0: i32) -> (i32, i32) {
    %c0_i32 = arith.constant 0 : i32
    %c0_i32_0 = arith.constant 0 : i32
    %c0_i32_1 = arith.constant 0 : i32
    return %c0_i32, %c0_i32_0 : i32, i32
  }
  func.func @transform_18(%arg0: i32) -> (i32, i32) {
    %c0_i32 = arith.constant 0 : i32
    %c0_i32_0 = arith.constant 0 : i32
    %c0_i32_1 = arith.constant 0 : i32
    return %c0_i32, %c0_i32_0 : i32, i32
  }
  func.func @transform_19(%arg0: i32) -> (i32, i32) {
    %c0_i32 = arith.constant 0 : i32
    %c0_i32_0 = arith.constant 0 : i32
    %c0_i32_1 = arith.constant 0 : i32
    return %c0_i32, %c0_i32_0 : i32, i32
  }
  func.func @transform_20(%arg0: i32) -> (i32, i32) {
    %c0_i32 = arith.constant 0 : i32
    %c0_i32_0 = arith.constant 0 : i32
    %c0_i32_1 = arith.constant 0 : i32
    return %c0_i32, %c0_i32_0 : i32, i32
  }
  func.func @transform_21(%arg0: i32) -> (i32, i32) {
    %c0_i32 = arith.constant 0 : i32
    %c0_i32_0 = arith.constant 0 : i32
    %c0_i32_1 = arith.constant 0 : i32
    return %c0_i32, %c0_i32_0 : i32, i32
  }
  func.func @transform_22(%arg0: i32) -> (i32, i32) {
    %c0_i32 = arith.constant 0 : i32
    %c0_i32_0 = arith.constant 0 : i32
    %c0_i32_1 = arith.constant 0 : i32
    return %c0_i32, %c0_i32_0 : i32, i32
  }
  func.func @transform_23(%arg0: i32) -> (i32, i32) {
    %c0_i32 = arith.constant 0 : i32
    %c0_i32_0 = arith.constant 0 : i32
    return %arg0, %c0_i32 : i32, i32
  }
}

</mosaic_0001>

<bundles_post_ra>
// kernel: tpu_custom_call.1
= control target key start
LH: loop header
LB: loop body
LE: loop exit
PB: predicated region body
PF: predicated region fallthrough
CT: control target
= control target key end

     0   :  { %s5107_s0 = inlined_call_operand.vmem [shape: f32[64,8], index: 0, kind: input, shape index: {}]   ;;  %s5108_s1 = inlined_call_operand.vmem [shape: f32[8,32], index: 1, kind: input, shape index: {}]   ;;  %s5109_s2 = inlined_call_operand.vmem [shape: f32[1,32], index: 2, kind: input, shape index: {}]   ;;  %s5110_s3 = inlined_call_operand.vmem [shape: f32[96,32], index: 3, kind: input, shape index: {}]   ;;  %s5111_s4 = inlined_call_operand.vmem [shape: f32[1,32], index: 4, kind: input, shape index: {}]   ;;  %s5112_s5 = inlined_call_operand.vmem [shape: f32[96,32], index: 5, kind: input, shape index: {}]   ;;  %s5113_s6 = inlined_call_operand.vmem [shape: f32[1,32], index: 6, kind: input, shape index: {}]   ;;  %s5114_s7 = inlined_call_operand.vmem [shape: f32[96,32], index: 7, kind: input, shape index: {}]   ;;  %s5115_s8 = inlined_call_operand.vmem [shape: f32[1,32], index: 8, kind: input, shape index: {}]   ;;  %s5116_s9 = inlined_call_operand.vmem [shape: f32[96,32], index: 9, kind: input, shape index: {}]   ;;  %s5117_s10 = inlined_call_operand.vmem [shape: f32[1,32], index: 10, kind: input, shape index: {}]   ;;  %s5118_s11 = inlined_call_operand.vmem [shape: f32[32,64], index: 11, kind: input, shape index: {}]   ;;  %s5119_s12 = inlined_call_operand.vmem [shape: f32[1,64], index: 12, kind: input, shape index: {}]   ;;  %s5120_s13 = inlined_call_operand.vmem [shape: f32[96,64], index: 13, kind: input, shape index: {}]   ;;  %s5121_s14 = inlined_call_operand.vmem [shape: f32[1,64], index: 14, kind: input, shape index: {}]   ;;  %s5122_s15 = inlined_call_operand.vmem [shape: f32[192,64], index: 15, kind: input, shape index: {}]   ;;  %s5123_s16 = inlined_call_operand.vmem [shape: f32[1,64], index: 16, kind: input, shape index: {}]   ;;  %s5124_s17 = inlined_call_operand.vmem [shape: f32[192,64], index: 17, kind: input, shape index: {}]   ;;  %s5125_s18 = inlined_call_operand.vmem [shape: f32[1,64], index: 18, kind: input, shape index: {}]   ;;  %s5126_s19 = inlined_call_operand.vmem [shape: f32[192,64], index: 19, kind: input, shape index: {}]   ;;  %s5127_s20 = inlined_call_operand.vmem [shape: f32[1,64], index: 20, kind: input, shape index: {}]   ;;  %s5128_s21 = inlined_call_operand.vmem [shape: f32[64,512], index: 21, kind: input, shape index: {}]   ;;  %s5129_s22 = inlined_call_operand.vmem [shape: f32[1,512], index: 22, kind: input, shape index: {}]   ;;  %s5130_s23 = inlined_call_operand.hbm [shape: f32[2,512], index: 23, kind: output, shape index: {}]  }
   0x1   :  { %5135 = sst [smem:[#allocation5_spill]] %s5107_s0 }
   0x2   :  { %5136 = sst [smem:[#allocation6_spill]] %s5108_s1 }
   0x3   :  { %5137 = sst [smem:[#allocation7_spill]] %s5109_s2 }
   0x4   :  { %5138 = sst [smem:[#allocation8_spill]] %s5110_s3 }
   0x5   :  { %5139 = sst [smem:[#allocation9_spill]] %s5111_s4 }
   0x6   :  { %5140 = sst [smem:[#allocation10_spill]] %s5112_s5 }
   0x7   :  { %5141 = sst [smem:[#allocation11_spill]] %s5113_s6 }
   0x8   :  { %5142 = sst [smem:[#allocation12_spill]] %s5114_s7 }
   0x9   :  { %5143 = sst [smem:[#allocation13_spill]] %s5125_s18 }
   0xa   :  { %s5144_s24 = sld [smem:[#allocation6_spill]]  ;;  %vm212_vm0 = vcmask 64512  }
   0xb   :  { %s5145_s18 = sld [smem:[#allocation5_spill]] }
  0x10   :  { %v204_v0 = vld [vmem:[%s5144_s24] sm:$0xff] }
  0x11   :  { %v196_v1 = vld [vmem:[%s5145_s18] sm:$0xff]  ;;  %v197_v2 = vld [vmem:[%s5145_s18 + $0x8] sm:$0xff]  ;;  %3341 = vmatprep.subr.mxu0 %v204_v0  ;;  %v198_v3 = vld [vmem:[%s5145_s18 + $0x10] sm:$0xff] }
  0x12   :  { %3343 = vmatprep.mubr.msk.f32.mxu0 %vm212_vm0, %v196_v1  ;;  %3342 = vmatpush3.msra.mxu0 %v204_v0 }
  0x13   :  { %3344 = vmatmul.mubr.msk.f32.vlgmr.msra.gmra.mxu0 %vm212_vm0, %v197_v2 }
  0x14   :  { %28 = vsyncpa [#allocation3], 0  ;;  %3346 = vmatprep.mubr.msk.f32.mxu0 %vm212_vm0, %v198_v3  ;;  %v199_v4 = vld [vmem:[%s5145_s18 + $0x18] sm:$0xff]  ;;  %v200_v5 = vld [vmem:[%s5145_s18 + $0x20] sm:$0xff]  ;;  %s5146_s26 = sld [smem:[#allocation8_spill]]  ;;  %s3584_s30 = smov 32   ;;  %v75_v26 = vlaneseq }
  0x15   :  { %v201_v6 = vld [vmem:[%s5145_s18 + $0x28] sm:$0xff]  ;;  %v202_v7 = vld [vmem:[%s5145_s18 + $0x30] sm:$0xff]  ;;  %v203_v8 = vld [vmem:[%s5145_s18 + $0x38] sm:$0xff]  ;;  %s5147_s6 = sld [smem:[#allocation7_spill]]  ;;  %vm384_vm1 = vcmask 1046528   ;;  %vm352_vm4 = vcmask 1040384  }
  0x16   :  { %v3798_v32 = vshrl.u32 %v75_v26, 7  ;;  %vm483_vm6 = vcmask 523264   ;;  %vm474_vm7 = vcmask 261120   ;;  %vm511_vm8 = vcmask 785408   ;;  %s5156_s5 = sld [smem:[#allocation10_spill]]  ;;  %v2894_v61 = vld [vmem:[%s5128_s21 + $0xc8] sm:$0xff] }
  0x17   :  { %3347 = vmatmul.mubr.msk.f32.gmra.mxu0 %vm212_vm0, %v199_v4  ;;  %s5157_s28 = sld [smem:[#allocation9_spill]]  ;;  %vm2925_vm10 = vcmask 1041409   ;;  %vm3075_vm11 = vcmask 1041408  }
  0x18   :  { %3349 = vmatprep.mubr.msk.f32.mxu0 %vm212_vm0, %v200_v5  ;;  %v79_v40 = vadd.s32 24, %v3798_v32  ;;  %v83_v56 = vadd.s32 56, %v3798_v32  ;;  %v88_v2 = vand.u32 31, %v3798_v32  ;;  %s5158_s1 = sld [smem:[#allocation12_spill]] }
  0x19   :  { %s5159_s25 = sld [smem:[#allocation11_spill]] }
  0x1a   :  { %v503_v9 = vld [vmem:[%s5146_s26 + $0x58] sm:$0xff]  ;;  %v502_v10 = vld [vmem:[%s5146_s26 + $0x50] sm:$0xff]  ;;  %v501_v11 = vld [vmem:[%s5146_s26 + $0x48] sm:$0xff]  ;;  %v109_v46 = vand.u32 31, %v79_v40  ;;  %v137_v59 = vand.u32 31, %v83_v56  ;;  %vm3858_vm5 = vcmp.ne.s32.totalorder %v88_v2, 0 }
  0x1b   :  { %3350 = vmatmul.mubr.msk.f32.gmra.mxu0 %vm212_vm0, %v201_v6  ;;  %3355 = vmatprep.subr.mxu1 %v503_v9  ;;  %v500_v12 = vld [vmem:[%s5146_s26 + $0x40] sm:$0xff]  ;;  %v499_v13 = vld [vmem:[%s5146_s26 + $0x38] sm:$0xff]  ;;  %v498_v14 = vld [vmem:[%s5146_s26 + $0x30] sm:$0xff] }
  0x1c   :  { %3352 = vmatprep.mubr.msk.f32.mxu0 %vm212_vm0, %v202_v7  ;;  %3356 = vmatpush3.msra.mxu1 %v503_v9  ;;  %v497_v15 = vld [vmem:[%s5146_s26 + $0x28] sm:$0xff]  ;;  %v496_v16 = vld [vmem:[%s5146_s26 + $0x20] sm:$0xff]  ;;  %v495_v18 = vld [vmem:[%s5146_s26 + $0x18] sm:$0xff]  ;;  %vm3824_vm2 = vcmp.ne.s32.totalorder %v109_v46, 31  ;;  %vm3847_vm3 = vcmp.ne.s32.totalorder %v137_v59, 31 }
  0x1d   :  { %3357 = vmatprep.subr.mxu1 %v502_v10  ;;  %v3128_v17 = vld [vmem:[%s5147_s6] ss:$0 sm:$0xff]  ;;  %v494_v19 = vld [vmem:[%s5146_s26 + $0x10] sm:$0xff]  ;;  %v493_v23 = vld [vmem:[%s5146_s26 + $0x8] sm:$0xff] }
  0x1e   :  { %3358 = vmatpush3.msra.mxu1 %v502_v10  ;;  %v492_v24 = vld [vmem:[%s5146_s26] sm:$0xff]  ;;  %s3585_s26 = smov 64  }
  0x1f   :  { %3353 = vmatmul.mubr.msk.f32.gmra.mxu0 %vm212_vm0, %v203_v8  ;;  %3359 = vmatprep.subr.mxu1 %v501_v11 }
  0x20   :  { %3360 = vmatpush3.msra.mxu1 %v501_v11 }
  0x21   :  { %3361 = vmatprep.subr.mxu1 %v500_v12 }
  0x22   :  { %3362 = vmatpush3.msra.mxu1 %v500_v12  ;;  %v80_v12 = vadd.s32 32, %v3798_v32 }
  0x23   :  { %3363 = vmatprep.subr.mxu1 %v499_v13 }
  0x24   :  { %3364 = vmatpush3.msra.mxu1 %v499_v13 }
  0x25   :  { %3365 = vmatprep.subr.mxu1 %v498_v14 }
  0x26   :  { %3366 = vmatpush3.msra.mxu1 %v498_v14 }
  0x27   :  { %3367 = vmatprep.subr.mxu1 %v497_v15 }
  0x28   :  { %3368 = vmatpush3.msra.mxu1 %v497_v15 }
  0x29   :  { %3369 = vmatprep.subr.mxu1 %v496_v16 }
  0x2a   :  { %3370 = vmatpush3.msra.mxu1 %v496_v16 }
  0x2b   :  { %3371 = vmatprep.subr.mxu1 %v495_v18 }
  0x2c   :  { %3372 = vmatpush3.msra.mxu1 %v495_v18  ;;  %v116_v18 = vand.u32 31, %v80_v12  ;;  %v3137_v12 = vld [vmem:[%s5157_s28] ss:$0 sm:$0xff] }
  0x2d   :  { %3373 = vmatprep.subr.mxu1 %v494_v19 }
  0x2e   :  { %3374 = vmatpush3.msra.mxu1 %v494_v19  ;;  %vm3879_vm9 = vcmp.ne.s32.totalorder %v116_v18, 0  ;;  %v795_v18 = vld [vmem:[%s5156_s5] sm:$0xff] }
  0x2f   :  { %3375 = vmatprep.subr.mxu1 %v493_v23 }
  0x30   :  { %3376 = vmatpush3.msra.mxu1 %v493_v23 }
  0x31   :  { %3377 = vmatprep.subr.mxu1 %v492_v24 }
  0x32   :  { %3378 = vmatpush3.msra.mxu1 %v492_v24 }
  0xd3   :  { %v3345_v20 = vpop.f32.mrf.mxu0 }
  0xd4   :  { %v3777_v21 = vadd.f32 %v3345_v20, %v3128_v17 }
  0xd5   :  { %v303_v22 = vpop.f32.mrf.mxu0 }
  0xd6   :  { %v3785_v25 = vadd.f32 %v3128_v17, %v303_v22  ;;  %420 = vrot.lane.b32.xlu0 %v3777_v21, %s3584_s30  ;;  %v386_v34 = vrot.slane %v3777_v21, 1  ;;  %v354_v19 = vrot.slane %v3777_v21, 7 }
  0xd7   :  { %v3348_v27 = vpop.f32.mrf.mxu0 }
  0xd8   :  { %v3789_v28 = vadd.f32 %v3348_v27, %v3128_v17  ;;  %v385_v30 = vrot.slane %v3785_v25, 1  ;;  %v353_v3 = vrot.slane %v3785_v25, 7 }
  0xd9   :  { %v313_v29 = vpop.f32.mrf.mxu0 }
  0xda   :  { %v3792_v31 = vadd.f32 %v3128_v17, %v313_v29  ;;  %424 = vrot.lane.b32.xlu1 %v3789_v28, %s3584_s30  ;;  %418 = vrot.lane.b32.xlu0 %v3785_v25, %s3584_s30  ;;  %v387_v36 = vsel %vm384_vm1, %v385_v30, %v386_v34  ;;  %v390_v42 = vrot.slane %v3789_v28, 1  ;;  %v358_v20 = vrot.slane %v3789_v28, 7 }
  0xdb   :  { %v3351_v33 = vpop.f32.mrf.mxu0  ;;  %v355_v22 = vsel %vm352_vm4, %v353_v3, %v354_v19 }
  0xdc   :  { %v388_v37 = vrot.slane %v3792_v31, 1  ;;  %v3803_v38 = vadd.f32 %v3351_v33, %v3128_v17  ;;  %v356_v14 = vrot.slane %v3792_v31, 7 }
  0xdd   :  { %v323_v35 = vpop.f32.mrf.mxu0 }
  0xde   :  { %v3805_v39 = vadd.f32 %v3128_v17, %v323_v35  ;;  %422 = vrot.lane.b32.xlu0 %v3792_v31, %s3584_s30  ;;  %450 = vrot.lane.b32.xlu1 %v387_v36, %s3585_s26  ;;  %v391_v43 = vsel %vm384_vm1, %v388_v37, %v390_v42  ;;  %v389_v48 = vsel %vm384_vm1, %v386_v34, %v388_v37  ;;  %v394_v49 = vrot.slane %v3803_v38, 1 }
  0xdf   :  { %v3354_v41 = vpop.f32.mrf.mxu0  ;;  %v357_v24 = vsel %vm352_vm4, %v354_v19, %v356_v14  ;;  %v359_v36 = vsel %vm352_vm4, %v356_v14, %v358_v20  ;;  %v362_v37 = vrot.slane %v3803_v38, 7 }
  0xe0   :  { %v392_v45 = vrot.slane %v3805_v39, 1  ;;  %v3833_v55 = vadd.f32 %v3354_v41, %v3128_v17  ;;  %v360_v16 = vrot.slane %v3805_v39, 7 }
  0xe1   :  { %v333_v44 = vpop.f32.mrf.mxu0 }
  0xe2   :  { %454 = vrot.lane.b32.xlu0 %v391_v43, %s3585_s26  ;;  %428 = vrot.lane.b32.xlu1 %v3803_v38, %s3584_s30  ;;  %v3817_v47 = vadd.f32 %v3128_v17, %v333_v44  ;;  %v393_v51 = vsel %vm384_vm1, %v390_v42, %v392_v45  ;;  %v395_v52 = vsel %vm384_vm1, %v392_v45, %v394_v49  ;;  %v398_v58 = vrot.slane %v3833_v55, 1 }
  0xe3   :  { %v413_v53 = vsel %vm3824_vm2, %v393_v51, 0.0  ;;  %v343_v0 = vrot.slane %v3833_v55, 7  ;;  %v361_v26 = vsel %vm352_vm4, %v358_v20, %v360_v16 }
  0xe4   :  { %v396_v54 = vrot.slane %v3817_v47, 1  ;;  %v409_v62 = vsel %vm384_vm1, %v398_v58, %v385_v30  ;;  %v380_v40 = vsel %vm3879_vm9, %v361_v26, 0.0 }
  0xe5   :  { %v417_v63 = vsel %vm3847_vm3, %v409_v62, 0.0  ;;  %v375_v7 = vsel %vm352_vm4, %v343_v0, %v353_v3  ;;  %v806_v3 = vld [vmem:[%s5156_s5 + $0x58] sm:$0xff] }
  0xe6   :  { %426 = vrot.lane.b32.xlu0 %v3805_v39, %s3584_s30  ;;  %452 = vrot.lane.b32.xlu1 %v389_v48, %s3585_s26  ;;  %v397_v57 = vsel %vm384_vm1, %v394_v49, %v396_v54  ;;  %v399_v60 = vsel %vm384_vm1, %v396_v54, %v398_v58  ;;  %v376_v8 = vsel %vm3858_vm5, %v375_v7, 0.0  ;;  %v363_v48 = vsel %vm352_vm4, %v360_v16, %v362_v37  ;;  %v802_v7 = vld [vmem:[%s5156_s5 + $0x38] sm:$0xff] }
  0xe7   :  { %v364_v49 = vrot.slane %v3817_v47, 7  ;;  %3391 = vmatprep.subr.mxu0 %v806_v3 }
  0xe8   :  { %3392 = vmatpush3.msra.mxu0 %v806_v3 }
  0xe9   :  { %v365_v56 = vsel %vm352_vm4, %v362_v37, %v364_v49  ;;  %v366_v62 = vsel %vm352_vm4, %v364_v49, %v343_v0  ;;  %v804_v0 = vld [vmem:[%s5156_s5 + $0x48] sm:$0xff] }
  0xea   :  { %458 = vrot.lane.b32.xlu0 %v395_v52, %s3585_s26  ;;  %456 = vrot.lane.b32.xlu1 %v413_v53, %s3585_s26 }
  0xee   :  { %430 = vrot.lane.b32.xlu0 %v3817_v47, %s3584_s30  ;;  %460 = vrot.lane.b32.xlu1 %v397_v57, %s3585_s26 }
  0xf2   :  { %462 = vrot.lane.b32.xlu0 %v399_v60, %s3585_s26  ;;  %432 = vrot.lane.b32.xlu1 %v3833_v55, %s3584_s30 }
  0xf6   :  { %464 = vrot.lane.b32.xlu1 %v417_v63, %s3585_s26 }
 0x148   :  { %v421_v1 = vpop.permute.xlu0 %420 }
 0x149   :  { %v476_v23 = vsel %vm474_vm7, %v355_v22, %v421_v1 }
 0x14c   :  { %v425_v4 = vpop.permute.xlu1 %424  ;;  %v419_v5 = vpop.permute.xlu0 %418 }
 0x14d   :  { %v475_v9 = vsel %vm474_vm7, %v376_v8, %v419_v5  ;;  %v478_v41 = vsel %vm474_vm7, %v359_v36, %v425_v4  ;;  %v805_v4 = vld [vmem:[%s5156_s5 + $0x50] sm:$0xff]  ;;  %v803_v5 = vld [vmem:[%s5156_s5 + $0x40] sm:$0xff] }
 0x14e   :  { %3393 = vmatprep.subr.mxu0 %v805_v4  ;;  %v801_v8 = vld [vmem:[%s5156_s5 + $0x30] sm:$0xff] }
 0x14f   :  { %3394 = vmatpush3.msra.mxu0 %v805_v4 }
 0x150   :  { %v423_v10 = vpop.permute.xlu0 %422  ;;  %v451_v11 = vpop.permute.xlu1 %450  ;;  %3395 = vmatprep.subr.mxu0 %v804_v0 }
 0x151   :  { %v484_v13 = vsel %vm483_vm6, %v475_v9, %v451_v11  ;;  %v477_v33 = vsel %vm474_vm7, %v357_v24, %v423_v10  ;;  %3396 = vmatpush3.msra.mxu0 %v804_v0  ;;  %v800_v9 = vld [vmem:[%s5156_s5 + $0x28] sm:$0xff]  ;;  %v799_v10 = vld [vmem:[%s5156_s5 + $0x20] sm:$0xff]  ;;  %v798_v11 = vld [vmem:[%s5156_s5 + $0x18] sm:$0xff] }
 0x152   :  { %3379 = vmatprep.mubr.msk.f32.mxu1 %vm511_vm8, %v484_v13  ;;  %3397 = vmatprep.subr.mxu0 %v803_v5  ;;  %v797_v13 = vld [vmem:[%s5156_s5 + $0x10] sm:$0xff] }
 0x153   :  { %3398 = vmatpush3.msra.mxu0 %v803_v5 }
 0x154   :  { %v455_v15 = vpop.permute.xlu0 %454  ;;  %v429_v17 = vpop.permute.xlu1 %428  ;;  %3399 = vmatprep.subr.mxu0 %v802_v7 }
 0x155   :  { %v486_v35 = vsel %vm483_vm6, %v477_v33, %v455_v15  ;;  %v480_v51 = vsel %vm474_vm7, %v363_v48, %v429_v17  ;;  %3400 = vmatpush3.msra.mxu0 %v802_v7  ;;  %v796_v15 = vld [vmem:[%s5156_s5 + $0x8] sm:$0xff] }
 0x156   :  { %3401 = vmatprep.subr.mxu0 %v801_v8 }
 0x157   :  { %3402 = vmatpush3.msra.mxu0 %v801_v8 }
 0x158   :  { %v427_v27 = vpop.permute.xlu0 %426  ;;  %v453_v30 = vpop.permute.xlu1 %452  ;;  %3403 = vmatprep.subr.mxu0 %v800_v9 }
 0x159   :  { %v485_v34 = vsel %vm483_vm6, %v476_v23, %v453_v30  ;;  %v479_v42 = vsel %vm474_vm7, %v380_v40, %v427_v27  ;;  %3404 = vmatpush3.msra.mxu0 %v800_v9 }
 0x15a   :  { %3380 = vmatmul.mubr.msk.f32.vlgmr.msra.gmra.mxu1 %vm511_vm8, %v485_v34  ;;  %3405 = vmatprep.subr.mxu0 %v799_v10 }
 0x15b   :  { %3382 = vmatprep.mubr.msk.f32.mxu1 %vm511_vm8, %v486_v35  ;;  %3406 = vmatpush3.msra.mxu0 %v799_v10 }
 0x15c   :  { %v459_v43 = vpop.permute.xlu0 %458  ;;  %v457_v44 = vpop.permute.xlu1 %456  ;;  %3407 = vmatprep.subr.mxu0 %v798_v11 }
 0x15d   :  { %v488_v45 = vsel %vm483_vm6, %v479_v42, %v459_v43  ;;  %v487_v46 = vsel %vm483_vm6, %v478_v41, %v457_v44  ;;  %3408 = vmatpush3.msra.mxu0 %v798_v11 }
 0x15e   :  { %3383 = vmatmul.mubr.msk.f32.gmra.mxu1 %vm511_vm8, %v487_v46  ;;  %3409 = vmatprep.subr.mxu0 %v797_v13 }
 0x15f   :  { %3385 = vmatprep.mubr.msk.f32.mxu1 %vm511_vm8, %v488_v45  ;;  %3410 = vmatpush3.msra.mxu0 %v797_v13 }
 0x160   :  { %v431_v52 = vpop.permute.xlu0 %430  ;;  %v461_v53 = vpop.permute.xlu1 %460  ;;  %3411 = vmatprep.subr.mxu0 %v796_v15 }
 0x161   :  { %v489_v54 = vsel %vm483_vm6, %v480_v51, %v461_v53  ;;  %v481_v57 = vsel %vm474_vm7, %v365_v56, %v431_v52  ;;  %3412 = vmatpush3.msra.mxu0 %v796_v15 }
 0x162   :  { %3386 = vmatmul.mubr.msk.f32.gmra.mxu1 %vm511_vm8, %v489_v54  ;;  %3413 = vmatprep.subr.mxu0 %v795_v18 }
 0x163   :  { %3414 = vmatpush3.msra.mxu0 %v795_v18 }
 0x164   :  { %v463_v58 = vpop.permute.xlu0 %462  ;;  %v433_v59 = vpop.permute.xlu1 %432 }
 0x165   :  { %v490_v60 = vsel %vm483_vm6, %v481_v57, %v463_v58  ;;  %v482_v63 = vsel %vm474_vm7, %v366_v62, %v433_v59 }
 0x166   :  { %3388 = vmatprep.mubr.msk.f32.mxu1 %vm511_vm8, %v490_v60 }
 0x168   :  { %v465_v1 = vpop.permute.xlu1 %464 }
 0x169   :  { %v491_v2 = vsel %vm483_vm6, %v482_v63, %v465_v1 }
 0x16a   :  { %3389 = vmatmul.mubr.msk.f32.gmra.mxu1 %vm511_vm8, %v491_v2 }
 0x21a   :  { %v3381_v14 = vpop.f32.mrf.mxu1 }
 0x21b   :  { %v608_v16 = vadd.f32 %v3381_v14, %v3137_v12 }
 0x21c   :  { %v602_v17 = vpop.f32.mrf.mxu1 }
 0x21d   :  { %v642_v19 = vmax.f32 %v608_v16, 0.0  ;;  %v603_v20 = vadd.f32 %v3137_v12, %v602_v17 }
 0x21e   :  { %v3384_v22 = vpop.f32.mrf.mxu1 }
 0x21f   :  { %v3952_v23 = vmax.f32 %v603_v20, 0.0  ;;  %v618_v24 = vadd.f32 %v3384_v22, %v3137_v12  ;;  %725 = vrot.lane.b32.xlu1 %v642_v19, %s3584_s30  ;;  %v660_v35 = vrot.slane %v642_v19, 7  ;;  %v691_v36 = vrot.slane %v642_v19, 1 }
 0x220   :  { %v612_v26 = vpop.f32.mrf.mxu1 }
 0x221   :  { %v659_v27 = vrot.slane %v3952_v23, 7  ;;  %v690_v30 = vrot.slane %v3952_v23, 1  ;;  %v644_v33 = vmax.f32 %v618_v24, 0.0  ;;  %v613_v34 = vadd.f32 %v3137_v12, %v612_v26  ;;  %723 = vrot.lane.b32.xlu0 %v3952_v23, %s3584_s30 }
 0x222   :  { %v3387_v37 = vpop.f32.mrf.mxu1 }
 0x223   :  { %v643_v40 = vmax.f32 %v613_v34, 0.0  ;;  %v628_v41 = vadd.f32 %v3387_v37, %v3137_v12  ;;  %729 = vrot.lane.b32.xlu1 %v644_v33, %s3584_s30  ;;  %v692_v43 = vsel %vm384_vm1, %v690_v30, %v691_v36  ;;  %v661_v44 = vsel %vm352_vm4, %v659_v27, %v660_v35 }
 0x224   :  { %v622_v42 = vpop.f32.mrf.mxu1  ;;  %v664_v49 = vrot.slane %v644_v33, 7  ;;  %v695_v56 = vrot.slane %v644_v33, 1 }
 0x225   :  { %v662_v45 = vrot.slane %v643_v40, 7  ;;  %v646_v46 = vmax.f32 %v628_v41, 0.0  ;;  %v623_v48 = vadd.f32 %v3137_v12, %v622_v42  ;;  %755 = vrot.lane.b32.xlu0 %v692_v43, %s3585_s26  ;;  %v693_v51 = vrot.slane %v643_v40, 1 }
 0x227   :  { %v645_v52 = vmax.f32 %v623_v48, 0.0  ;;  %733 = vrot.lane.b32.xlu1 %v646_v46, %s3584_s30  ;;  %v665_v53 = vsel %vm352_vm4, %v662_v45, %v664_v49  ;;  %v663_v54 = vsel %vm352_vm4, %v660_v35, %v662_v45  ;;  %v668_v57 = vrot.slane %v646_v46, 7 }
 0x228   :  { %v694_v62 = vsel %vm384_vm1, %v691_v36, %v693_v51  ;;  %v696_v4 = vsel %vm384_vm1, %v693_v51, %v695_v56  ;;  %v699_v11 = vrot.slane %v646_v46, 1 }
 0x229   :  { %v666_v58 = vrot.slane %v645_v52, 7  ;;  %v697_v59 = vrot.slane %v645_v52, 1  ;;  %727 = vrot.lane.b32.xlu0 %v643_v40, %s3584_s30 }
 0x22a   :  { %v3390_v60 = vpop.f32.mrf.mxu1 }
 0x22b   :  { %v638_v63 = vadd.f32 %v3390_v60, %v3137_v12  ;;  %757 = vrot.lane.b32.xlu1 %v694_v62, %s3585_s26  ;;  %v698_v1 = vsel %vm384_vm1, %v695_v56, %v697_v59  ;;  %v669_v2 = vsel %vm352_vm4, %v666_v58, %v668_v57  ;;  %v667_v0 = vsel %vm352_vm4, %v664_v49, %v666_v58 }
 0x22c   :  { %v632_v3 = vpop.f32.mrf.mxu1  ;;  %v718_v8 = vsel %vm3824_vm2, %v698_v1, 0.0  ;;  %v700_v19 = vsel %vm384_vm1, %v697_v59, %v699_v11 }
 0x22d   :  { %v648_v5 = vmax.f32 %v638_v63, 0.0  ;;  %v633_v7 = vadd.f32 %v3137_v12, %v632_v3  ;;  %759 = vrot.lane.b32.xlu0 %v696_v4, %s3585_s26 }
 0x22f   :  { %v650_v9 = vrot.slane %v648_v5, 7  ;;  %v647_v10 = vmax.f32 %v633_v7, 0.0  ;;  %761 = vrot.lane.b32.xlu1 %v718_v8, %s3585_s26  ;;  %v703_v18 = vrot.slane %v648_v5, 1  ;;  %v1115_v7 = vld [vmem:[%s5158_s1 + $0x50] sm:$0xff]  ;;  %v1114_v8 = vld [vmem:[%s5158_s1 + $0x48] sm:$0xff] }
 0x231   :  { %v670_v13 = vrot.slane %v647_v10, 7  ;;  %v701_v14 = vrot.slane %v647_v10, 1  ;;  %731 = vrot.lane.b32.xlu0 %v645_v52, %s3584_s30  ;;  %v681_v15 = vsel %vm352_vm4, %v650_v9, %v659_v27  ;;  %v714_v20 = vsel %vm384_vm1, %v703_v18, %v690_v30 }
 0x232   :  { %v722_v22 = vsel %vm3847_vm3, %v714_v20, 0.0  ;;  %v682_v33 = vsel %vm3858_vm5, %v681_v15, 0.0 }
 0x233   :  { %v702_v16 = vsel %vm384_vm1, %v699_v11, %v701_v14  ;;  %v672_v12 = vsel %vm352_vm4, %v670_v13, %v650_v9  ;;  %v671_v17 = vsel %vm352_vm4, %v668_v57, %v670_v13  ;;  %v704_v23 = vsel %vm384_vm1, %v701_v14, %v703_v18  ;;  %v1113_v9 = vld [vmem:[%s5158_s1 + $0x40] sm:$0xff]  ;;  %v1111_v11 = vld [vmem:[%s5158_s1 + $0x30] sm:$0xff]  ;;  %v1110_v14 = vld [vmem:[%s5158_s1 + $0x28] sm:$0xff] }
 0x234   :  { %765 = vrot.lane.b32.xlu1 %v702_v16, %s3585_s26  ;;  %v4042_v13 = vld [vmem:[%s5159_s25] ss:$0 sm:$0xff] }
 0x235   :  { %763 = vrot.lane.b32.xlu0 %v700_v19, %s3585_s26  ;;  %v1109_v16 = vld [vmem:[%s5158_s1 + $0x20] sm:$0xff] }
 0x238   :  { %737 = vrot.lane.b32.xlu1 %v648_v5, %s3584_s30  ;;  %v1116_v5 = vld [vmem:[%s5158_s1 + $0x58] sm:$0xff] }
 0x239   :  { %735 = vrot.lane.b32.xlu0 %v647_v10, %s3584_s30  ;;  %3427 = vmatprep.subr.mxu1 %v1116_v5  ;;  %v1112_v10 = vld [vmem:[%s5158_s1 + $0x38] sm:$0xff] }
 0x23a   :  { %3428 = vmatpush3.msra.mxu1 %v1116_v5 }
 0x23b   :  { %3429 = vmatprep.subr.mxu1 %v1115_v7 }
 0x23c   :  { %769 = vrot.lane.b32.xlu1 %v722_v22, %s3585_s26  ;;  %3430 = vmatpush3.msra.mxu1 %v1115_v7 }
 0x23d   :  { %767 = vrot.lane.b32.xlu0 %v704_v23, %s3585_s26  ;;  %3431 = vmatprep.subr.mxu1 %v1114_v8  ;;  %v1107_v23 = vld [vmem:[%s5158_s1 + $0x10] sm:$0xff] }
 0x23e   :  { %3432 = vmatpush3.msra.mxu1 %v1114_v8 }
 0x23f   :  { %3433 = vmatprep.subr.mxu1 %v1113_v9 }
 0x240   :  { %3434 = vmatpush3.msra.mxu1 %v1113_v9 }
 0x241   :  { %3435 = vmatprep.subr.mxu1 %v1112_v10 }
 0x242   :  { %3436 = vmatpush3.msra.mxu1 %v1112_v10 }
 0x243   :  { %3437 = vmatprep.subr.mxu1 %v1111_v11 }
 0x244   :  { %3438 = vmatpush3.msra.mxu1 %v1111_v11 }
 0x245   :  { %3439 = vmatprep.subr.mxu1 %v1110_v14 }
 0x246   :  { %3440 = vmatpush3.msra.mxu1 %v1110_v14 }
 0x247   :  { %3441 = vmatprep.subr.mxu1 %v1109_v16 }
 0x248   :  { %3442 = vmatpush3.msra.mxu1 %v1109_v16 }
 0x291   :  { %v726_v24 = vpop.permute.xlu1 %725 }
 0x292   :  { %v780_v40 = vsel %vm474_vm7, %v661_v44, %v726_v24  ;;  %v686_v44 = vsel %vm3879_vm9, %v667_v0, 0.0 }
 0x293   :  { %v724_v26 = vpop.permute.xlu0 %723 }
 0x294   :  { %v779_v34 = vsel %vm474_vm7, %v682_v33, %v724_v26 }
 0x295   :  { %v730_v27 = vpop.permute.xlu1 %729 }
 0x296   :  { %v782_v48 = vsel %vm474_vm7, %v665_v53, %v730_v27 }
 0x297   :  { %v756_v30 = vpop.permute.xlu0 %755 }
 0x298   :  { %v787_v35 = vsel %vm483_vm6, %v779_v34, %v756_v30 }
 0x299   :  { %3415 = vmatprep.mubr.msk.f32.mxu0 %vm511_vm8, %v787_v35  ;;  %v734_v36 = vpop.permute.xlu1 %733 }
 0x29a   :  { %v784_v58 = vsel %vm474_vm7, %v669_v2, %v734_v36 }
 0x29b   :  { %v728_v37 = vpop.permute.xlu0 %727 }
 0x29c   :  { %v781_v43 = vsel %vm474_vm7, %v663_v54, %v728_v37 }
 0x29d   :  { %v758_v41 = vpop.permute.xlu1 %757 }
 0x29e   :  { %v788_v42 = vsel %vm483_vm6, %v780_v40, %v758_v41 }
 0x29f   :  { %v760_v45 = vpop.permute.xlu0 %759  ;;  %3416 = vmatmul.mubr.msk.f32.vlgmr.msra.gmra.mxu0 %vm511_vm8, %v788_v42 }
 0x2a0   :  { %v789_v46 = vsel %vm483_vm6, %v781_v43, %v760_v45 }
 0x2a1   :  { %3418 = vmatprep.mubr.msk.f32.mxu0 %vm511_vm8, %v789_v46  ;;  %v762_v49 = vpop.permute.xlu1 %761 }
 0x2a2   :  { %v790_v51 = vsel %vm483_vm6, %v782_v48, %v762_v49 }
 0x2a3   :  { %v732_v52 = vpop.permute.xlu0 %731  ;;  %3419 = vmatmul.mubr.msk.f32.gmra.mxu0 %vm511_vm8, %v790_v51 }
 0x2a4   :  { %v783_v54 = vsel %vm474_vm7, %v686_v44, %v732_v52 }
 0x2a6   :  { %v766_v56 = vpop.permute.xlu1 %765 }
 0x2a7   :  { %v764_v57 = vpop.permute.xlu0 %763  ;;  %v792_v53 = vsel %vm483_vm6, %v784_v58, %v766_v56 }
 0x2a8   :  { %v791_v59 = vsel %vm483_vm6, %v783_v54, %v764_v57 }
 0x2a9   :  { %3421 = vmatprep.mubr.msk.f32.mxu0 %vm511_vm8, %v791_v59 }
 0x2aa   :  { %3422 = vmatmul.mubr.msk.f32.gmra.mxu0 %vm511_vm8, %v792_v53  ;;  %v738_v60 = vpop.permute.xlu1 %737 }
 0x2ab   :  { %v736_v62 = vpop.permute.xlu0 %735  ;;  %v786_v4 = vsel %vm474_vm7, %v672_v12, %v738_v60 }
 0x2ac   :  { %v785_v1 = vsel %vm474_vm7, %v671_v17, %v736_v62  ;;  %v1108_v17 = vld [vmem:[%s5158_s1 + $0x18] sm:$0xff] }
 0x2ad   :  { %3443 = vmatprep.subr.mxu1 %v1108_v17 }
 0x2ae   :  { %v770_v63 = vpop.permute.xlu1 %769  ;;  %3444 = vmatpush3.msra.mxu1 %v1108_v17 }
 0x2af   :  { %v768_v3 = vpop.permute.xlu0 %767  ;;  %v794_v2 = vsel %vm483_vm6, %v786_v4, %v770_v63  ;;  %3445 = vmatprep.subr.mxu1 %v1107_v23 }
 0x2b0   :  { %v793_v0 = vsel %vm483_vm6, %v785_v1, %v768_v3  ;;  %3446 = vmatpush3.msra.mxu1 %v1107_v23 }
 0x2b1   :  { %3424 = vmatprep.mubr.msk.f32.mxu0 %vm511_vm8, %v793_v0 }
 0x2b2   :  { %3425 = vmatmul.mubr.msk.f32.gmra.mxu0 %vm511_vm8, %v794_v2 }
 0x35f   :  { %v3417_v15 = vpop.f32.mrf.mxu0 }
 0x360   :  { %v910_v12 = vadd.f32 %v3417_v15, %v4042_v13 }
 0x361   :  { %v904_v18 = vpop.f32.mrf.mxu0 }
 0x362   :  { %v944_v19 = vadd.f32 %v910_v12, %v3777_v21  ;;  %v905_v20 = vadd.f32 %v4042_v13, %v904_v18  ;;  %v1106_v21 = vld [vmem:[%s5158_s1 + $0x8] sm:$0xff] }
 0x363   :  { %v3420_v22 = vpop.f32.mrf.mxu0  ;;  %3447 = vmatprep.subr.mxu1 %v1106_v21 }
 0x364   :  { %v4059_v24 = vmax.f32 %v944_v19, 0.0  ;;  %v943_v26 = vadd.f32 %v905_v20, %v3785_v25  ;;  %v920_v27 = vadd.f32 %v3420_v22, %v4042_v13  ;;  %3448 = vmatpush3.msra.mxu1 %v1106_v21  ;;  %v1105_v25 = vld [vmem:[%s5158_s1] sm:$0xff] }
 0x365   :  { %v914_v33 = vpop.f32.mrf.mxu0  ;;  %3449 = vmatprep.subr.mxu1 %v1105_v25 }
 0x366   :  { %v4066_v34 = vmax.f32 %v943_v26, 0.0  ;;  %v946_v30 = vadd.f32 %v920_v27, %v3789_v28  ;;  %v915_v35 = vadd.f32 %v4042_v13, %v914_v33  ;;  %1035 = vrot.lane.b32.xlu1 %v4059_v24, %s3584_s30  ;;  %v1001_v40 = vrot.slane %v4059_v24, 1  ;;  %3450 = vmatpush3.msra.mxu1 %v1105_v25 }
 0x367   :  { %v970_v26 = vrot.slane %v4059_v24, 7 }
 0x368   :  { %v4075_v36 = vmax.f32 %v946_v30, 0.0  ;;  %v945_v37 = vadd.f32 %v915_v35, %v3792_v31  ;;  %1033 = vrot.lane.b32.xlu0 %v4066_v34, %s3584_s30  ;;  %v1000_v28 = vrot.slane %v4066_v34, 1  ;;  %v969_v11 = vrot.slane %v4066_v34, 7 }
 0x36a   :  { %1039 = vrot.lane.b32.xlu1 %v4075_v36, %s3584_s30  ;;  %v3423_v41 = vpop.f32.mrf.mxu0  ;;  %v1002_v42 = vsel %vm384_vm1, %v1000_v28, %v1001_v40  ;;  %v4085_v43 = vmax.f32 %v945_v37, 0.0  ;;  %v1005_v56 = vrot.slane %v4075_v36, 1  ;;  %v971_v27 = vsel %vm352_vm4, %v969_v11, %v970_v26 }
 0x36b   :  { %v930_v45 = vadd.f32 %v3423_v41, %v4042_v13  ;;  %v974_v37 = vrot.slane %v4075_v36, 7 }
 0x36c   :  { %1065 = vrot.lane.b32.xlu0 %v1002_v42, %s3585_s26  ;;  %v924_v31 = vpop.f32.mrf.mxu0  ;;  %v1003_v52 = vrot.slane %v4085_v43, 1  ;;  %v972_v22 = vrot.slane %v4085_v43, 7 }
 0x36d   :  { %v948_v46 = vadd.f32 %v930_v45, %v3803_v38  ;;  %v925_v48 = vadd.f32 %v4042_v13, %v924_v31 }
 0x36e   :  { %v1006_v57 = vsel %vm384_vm1, %v1003_v52, %v1005_v56  ;;  %v1004_v59 = vsel %vm384_vm1, %v1001_v40, %v1003_v52  ;;  %v973_v35 = vsel %vm352_vm4, %v970_v26, %v972_v22  ;;  %v975_v42 = vsel %vm352_vm4, %v972_v22, %v974_v37  ;;  %v1407_v22 = vld [vmem:[%s5116_s9] sm:$0xff] }
 0x36f   :  { %v4091_v49 = vmax.f32 %v948_v46, 0.0  ;;  %v947_v51 = vadd.f32 %v925_v48, %v3805_v39 }
 0x370   :  { %1037 = vrot.lane.b32.xlu0 %v4085_v43, %s3584_s30 }
 0x371   :  { %v4097_v44 = vmax.f32 %v947_v51, 0.0  ;;  %1043 = vrot.lane.b32.xlu1 %v4091_v49, %s3584_s30  ;;  %v1009_v4 = vrot.slane %v4091_v49, 1  ;;  %v978_v52 = vrot.slane %v4091_v49, 7 }
 0x372   :  { %v3426_v54 = vpop.f32.mrf.mxu0 }
 0x373   :  { %v940_v38 = vadd.f32 %v3426_v54, %v4042_v13  ;;  %v1007_v58 = vrot.slane %v4097_v44, 1  ;;  %v976_v21 = vrot.slane %v4097_v44, 7 }
 0x374   :  { %1069 = vrot.lane.b32.xlu0 %v1006_v57, %s3585_s26  ;;  %v934_v39 = vpop.f32.mrf.mxu0 }
 0x375   :  { %v935_v53 = vadd.f32 %v4042_v13, %v934_v39  ;;  %1067 = vrot.lane.b32.xlu1 %v1004_v59, %s3585_s26  ;;  %v1008_v60 = vsel %vm384_vm1, %v1005_v56, %v1007_v58  ;;  %v950_v62 = vadd.f32 %v940_v38, %v3833_v55  ;;  %v1010_v2 = vsel %vm384_vm1, %v1007_v58, %v1009_v4 }
 0x376   :  { %v1028_v1 = vsel %vm3824_vm2, %v1008_v60, 0.0  ;;  %v977_v31 = vsel %vm352_vm4, %v974_v37, %v976_v21  ;;  %v979_v57 = vsel %vm352_vm4, %v976_v21, %v978_v52 }
 0x377   :  { %v949_v63 = vadd.f32 %v935_v53, %v3817_v47  ;;  %v4120_v0 = vmax.f32 %v950_v62, 0.0  ;;  %v996_v56 = vsel %vm3879_vm9, %v977_v31, 0.0 }
 0x378   :  { %1041 = vrot.lane.b32.xlu0 %v4097_v44, %s3584_s30 }
 0x379   :  { %v4116_v3 = vmax.f32 %v949_v63, 0.0  ;;  %1071 = vrot.lane.b32.xlu1 %v1028_v1, %s3585_s26  ;;  %v1013_v5 = vrot.slane %v4120_v0, 1  ;;  %v960_v10 = vrot.slane %v4120_v0, 7 }
 0x37b   :  { %v1011_v55 = vrot.slane %v4116_v3, 1  ;;  %v1024_v7 = vsel %vm384_vm1, %v1013_v5, %v1000_v28  ;;  %v991_v15 = vsel %vm352_vm4, %v960_v10, %v969_v11  ;;  %v980_v60 = vrot.slane %v4116_v3, 7  ;;  %v1417_v11 = vld [vmem:[%s5116_s9 + $0x50] sm:$0xff] }
 0x37c   :  { %1073 = vrot.lane.b32.xlu0 %v1010_v2, %s3585_s26  ;;  %v1032_v9 = vsel %vm3847_vm3, %v1024_v7, 0.0  ;;  %v992_v16 = vsel %vm3858_vm5, %v991_v15, 0.0  ;;  %v1413_v15 = vld [vmem:[%s5116_s9 + $0x30] sm:$0xff] }
 0x37d   :  { %v1012_v47 = vsel %vm384_vm1, %v1009_v4, %v1011_v55  ;;  %v1014_v8 = vsel %vm384_vm1, %v1011_v55, %v1013_v5  ;;  %v981_v1 = vsel %vm352_vm4, %v978_v52, %v980_v60  ;;  %v982_v55 = vsel %vm352_vm4, %v980_v60, %v960_v10  ;;  %v1416_v10 = vld [vmem:[%s5116_s9 + $0x48] sm:$0xff] }
 0x37e   :  { %1075 = vrot.lane.b32.xlu1 %v1012_v47, %s3585_s26 }
 0x380   :  { %1045 = vrot.lane.b32.xlu0 %v4116_v3, %s3584_s30 }
 0x382   :  { %1047 = vrot.lane.b32.xlu1 %v4120_v0, %s3584_s30 }
 0x384   :  { %1077 = vrot.lane.b32.xlu0 %v1014_v8, %s3585_s26 }
 0x386   :  { %1079 = vrot.lane.b32.xlu1 %v1032_v9, %s3585_s26  ;;  %v1418_v9 = vld [vmem:[%s5116_s9 + $0x58] sm:$0xff] }
 0x387   :  { %3463 = vmatprep.subr.mxu0 %v1418_v9 }
 0x388   :  { %3464 = vmatpush3.msra.mxu0 %v1418_v9 }
 0x389   :  { %3465 = vmatprep.subr.mxu0 %v1417_v11 }
 0x38a   :  { %3466 = vmatpush3.msra.mxu0 %v1417_v11 }
 0x38b   :  { %3467 = vmatprep.subr.mxu0 %v1416_v10 }
 0x38c   :  { %3468 = vmatpush3.msra.mxu0 %v1416_v10 }
 0x3d8   :  { %v1036_v13 = vpop.permute.xlu1 %1035 }
 0x3d9   :  { %v1090_v30 = vsel %vm474_vm7, %v971_v27, %v1036_v13  ;;  %v1415_v13 = vld [vmem:[%s5116_s9 + $0x40] sm:$0xff] }
 0x3da   :  { %v1034_v14 = vpop.permute.xlu0 %1033  ;;  %3469 = vmatprep.subr.mxu0 %v1415_v13 }
 0x3db   :  { %v1089_v12 = vsel %vm474_vm7, %v992_v16, %v1034_v14  ;;  %v1414_v14 = vld [vmem:[%s5116_s9 + $0x38] sm:$0xff]  ;;  %3470 = vmatpush3.msra.mxu0 %v1415_v13  ;;  %v1412_v16 = vld [vmem:[%s5116_s9 + $0x28] sm:$0xff] }
 0x3dc   :  { %v1040_v18 = vpop.permute.xlu1 %1039  ;;  %3471 = vmatprep.subr.mxu0 %v1414_v14 }
 0x3dd   :  { %v1092_v46 = vsel %vm474_vm7, %v975_v42, %v1040_v18  ;;  %3472 = vmatpush3.msra.mxu0 %v1414_v14  ;;  %v1409_v18 = vld [vmem:[%s5116_s9 + $0x10] sm:$0xff] }
 0x3de   :  { %v1066_v17 = vpop.permute.xlu0 %1065  ;;  %3473 = vmatprep.subr.mxu0 %v1413_v15 }
 0x3df   :  { %v1097_v19 = vsel %vm483_vm6, %v1089_v12, %v1066_v17  ;;  %3474 = vmatpush3.msra.mxu0 %v1413_v15  ;;  %v1411_v12 = vld [vmem:[%s5116_s9 + $0x20] sm:$0xff]  ;;  %v1410_v17 = vld [vmem:[%s5116_s9 + $0x18] sm:$0xff] }
 0x3e0   :  { %3451 = vmatprep.mubr.msk.f32.mxu1 %vm511_vm8, %v1097_v19  ;;  %3475 = vmatprep.subr.mxu0 %v1412_v16  ;;  %v3155_v19 = vld [vmem:[%s5115_s8] ss:$0 sm:$0xff] }
 0x3e1   :  { %3476 = vmatpush3.msra.mxu0 %v1412_v16 }
 0x3e2   :  { %v1038_v20 = vpop.permute.xlu0 %1037  ;;  %3477 = vmatprep.subr.mxu0 %v1411_v12 }
 0x3e3   :  { %v1044_v23 = vpop.permute.xlu1 %1043  ;;  %v1091_v28 = vsel %vm474_vm7, %v973_v35, %v1038_v20  ;;  %3478 = vmatpush3.msra.mxu0 %v1411_v12  ;;  %v1408_v20 = vld [vmem:[%s5116_s9 + $0x8] sm:$0xff] }
 0x3e4   :  { %v1094_v39 = vsel %vm474_vm7, %v979_v57, %v1044_v23  ;;  %3479 = vmatprep.subr.mxu0 %v1410_v17 }
 0x3e5   :  { %3480 = vmatpush3.msra.mxu0 %v1410_v17 }
 0x3e6   :  { %v1070_v33 = vpop.permute.xlu0 %1069  ;;  %3481 = vmatprep.subr.mxu0 %v1409_v18 }
 0x3e7   :  { %v1068_v25 = vpop.permute.xlu1 %1067  ;;  %v1099_v41 = vsel %vm483_vm6, %v1091_v28, %v1070_v33  ;;  %3482 = vmatpush3.msra.mxu0 %v1409_v18 }
 0x3e8   :  { %v1098_v40 = vsel %vm483_vm6, %v1090_v30, %v1068_v25  ;;  %3483 = vmatprep.subr.mxu0 %v1408_v20 }
 0x3e9   :  { %3452 = vmatmul.mubr.msk.f32.vlgmr.msra.gmra.mxu1 %vm511_vm8, %v1098_v40  ;;  %3484 = vmatpush3.msra.mxu0 %v1408_v20 }
 0x3ea   :  { %v1042_v45 = vpop.permute.xlu0 %1041  ;;  %3454 = vmatprep.mubr.msk.f32.mxu1 %vm511_vm8, %v1099_v41  ;;  %3485 = vmatprep.subr.mxu0 %v1407_v22 }
 0x3eb   :  { %v1072_v48 = vpop.permute.xlu1 %1071  ;;  %v1093_v54 = vsel %vm474_vm7, %v996_v56, %v1042_v45  ;;  %3486 = vmatpush3.msra.mxu0 %v1407_v22 }
 0x3ec   :  { %v1100_v51 = vsel %vm483_vm6, %v1092_v46, %v1072_v48 }
 0x3ed   :  { %3455 = vmatmul.mubr.msk.f32.gmra.mxu1 %vm511_vm8, %v1100_v51 }
 0x3ee   :  { %v1074_v38 = vpop.permute.xlu0 %1073 }
 0x3ef   :  { %v1101_v58 = vsel %vm483_vm6, %v1093_v54, %v1074_v38 }
 0x3f0   :  { %3457 = vmatprep.mubr.msk.f32.mxu1 %vm511_vm8, %v1101_v58  ;;  %v1076_v59 = vpop.permute.xlu1 %1075 }
 0x3f1   :  { %v1102_v53 = vsel %vm483_vm6, %v1094_v39, %v1076_v59 }
 0x3f2   :  { %v1046_v62 = vpop.permute.xlu0 %1045  ;;  %3458 = vmatmul.mubr.msk.f32.gmra.mxu1 %vm511_vm8, %v1102_v53 }
 0x3f3   :  { %v1095_v4 = vsel %vm474_vm7, %v981_v1, %v1046_v62 }
 0x3f4   :  { %v1048_v63 = vpop.permute.xlu1 %1047 }
 0x3f5   :  { %v1096_v5 = vsel %vm474_vm7, %v982_v55, %v1048_v63 }
 0x3f6   :  { %v1078_v2 = vpop.permute.xlu0 %1077 }
 0x3f7   :  { %v1103_v47 = vsel %vm483_vm6, %v1095_v4, %v1078_v2 }
 0x3f8   :  { %3460 = vmatprep.mubr.msk.f32.mxu1 %vm511_vm8, %v1103_v47  ;;  %v1080_v7 = vpop.permute.xlu1 %1079 }
 0x3f9   :  { %v1104_v8 = vsel %vm483_vm6, %v1096_v5, %v1080_v7 }
 0x3fa   :  { %3461 = vmatmul.mubr.msk.f32.gmra.mxu1 %vm511_vm8, %v1104_v8 }
 0x4a9   :  { %v3453_v23 = vpop.f32.mrf.mxu1 }
 0x4aa   :  { %v1220_v26 = vadd.f32 %v3453_v23, %v3155_v19 }
 0x4ab   :  { %v1214_v27 = vpop.f32.mrf.mxu1 }
 0x4ac   :  { %v1254_v21 = vmax.f32 %v1220_v26, 0.0  ;;  %v1215_v33 = vadd.f32 %v3155_v19, %v1214_v27 }
 0x4ad   :  { %v3456_v30 = vpop.f32.mrf.mxu1 }
 0x4ae   :  { %v4221_v35 = vmax.f32 %v1215_v33, 0.0  ;;  %v1230_v25 = vadd.f32 %v3456_v30, %v3155_v19  ;;  %1337 = vrot.lane.b32.xlu1 %v1254_v21, %s3584_s30  ;;  %v1303_v37 = vrot.slane %v1254_v21, 1  ;;  %v1272_v31 = vrot.slane %v1254_v21, 7 }
 0x4af   :  { %v1224_v28 = vpop.f32.mrf.mxu1 }
 0x4b0   :  { %v1271_v40 = vrot.slane %v4221_v35, 7  ;;  %v1302_v41 = vrot.slane %v4221_v35, 1  ;;  %v1256_v42 = vmax.f32 %v1230_v25, 0.0  ;;  %v1225_v45 = vadd.f32 %v3155_v19, %v1224_v28  ;;  %1335 = vrot.lane.b32.xlu0 %v4221_v35, %s3584_s30 }
 0x4b2   :  { %v1255_v46 = vmax.f32 %v1225_v45, 0.0  ;;  %1341 = vrot.lane.b32.xlu1 %v1256_v42, %s3584_s30  ;;  %v3459_v48 = vpop.f32.mrf.mxu1  ;;  %v1304_v51 = vsel %vm384_vm1, %v1302_v41, %v1303_v37  ;;  %v1273_v56 = vsel %vm352_vm4, %v1271_v40, %v1272_v31  ;;  %v1276_v54 = vrot.slane %v1256_v42, 7 }
 0x4b3   :  { %v1240_v52 = vadd.f32 %v3459_v48, %v3155_v19  ;;  %v1307_v1 = vrot.slane %v1256_v42, 1 }
 0x4b4   :  { %v1274_v38 = vrot.slane %v1255_v46, 7  ;;  %v1305_v57 = vrot.slane %v1255_v46, 1  ;;  %1367 = vrot.lane.b32.xlu0 %v1304_v51, %s3585_s26  ;;  %v1234_v58 = vpop.f32.mrf.mxu1 }
 0x4b5   :  { %v1235_v39 = vadd.f32 %v3155_v19, %v1234_v58  ;;  %v1258_v59 = vmax.f32 %v1240_v52, 0.0 }
 0x4b6   :  { %v1306_v53 = vsel %vm384_vm1, %v1303_v37, %v1305_v57  ;;  %v1277_v60 = vsel %vm352_vm4, %v1274_v38, %v1276_v54  ;;  %v1275_v62 = vsel %vm352_vm4, %v1272_v31, %v1274_v38  ;;  %v1308_v7 = vsel %vm384_vm1, %v1305_v57, %v1307_v1 }
 0x4b7   :  { %v1257_v63 = vmax.f32 %v1235_v39, 0.0  ;;  %1369 = vrot.lane.b32.xlu1 %v1306_v53, %s3585_s26  ;;  %v1280_v55 = vrot.slane %v1258_v59, 7  ;;  %v1311_v17 = vrot.slane %v1258_v59, 1 }
 0x4b8   :  { %1339 = vrot.lane.b32.xlu0 %v1255_v46, %s3584_s30 }
 0x4b9   :  { %v1278_v4 = vrot.slane %v1257_v63, 7  ;;  %v1309_v2 = vrot.slane %v1257_v63, 1 }
 0x4ba   :  { %v3462_v47 = vpop.f32.mrf.mxu1 }
 0x4bb   :  { %v1250_v5 = vadd.f32 %v3462_v47, %v3155_v19  ;;  %v1310_v8 = vsel %vm384_vm1, %v1307_v1, %v1309_v2  ;;  %v1279_v9 = vsel %vm352_vm4, %v1276_v54, %v1278_v4  ;;  %v1281_v13 = vsel %vm352_vm4, %v1278_v4, %v1280_v55 }
 0x4bc   :  { %1371 = vrot.lane.b32.xlu0 %v1308_v7, %s3585_s26  ;;  %v1244_v11 = vpop.f32.mrf.mxu1  ;;  %v1330_v10 = vsel %vm3824_vm2, %v1310_v8, 0.0  ;;  %v1312_v23 = vsel %vm384_vm1, %v1309_v2, %v1311_v17  ;;  %v1298_v53 = vsel %vm3879_vm9, %v1279_v9, 0.0 }
 0x4bd   :  { %v1260_v14 = vmax.f32 %v1250_v5, 0.0  ;;  %v1245_v15 = vadd.f32 %v3155_v19, %v1244_v11  ;;  %1373 = vrot.lane.b32.xlu1 %v1330_v10, %s3585_s26 }
 0x4bf   :  { %v1262_v16 = vrot.slane %v1260_v14, 7  ;;  %v1259_v12 = vmax.f32 %v1245_v15, 0.0  ;;  %v1315_v21 = vrot.slane %v1260_v14, 1  ;;  %v1572_v15 = vld [vmem:[%s5118_s11 + $0x8] sm:$0xff] }
 0x4c0   :  { %1343 = vrot.lane.b32.xlu0 %v1257_v63, %s3584_s30 }
 0x4c1   :  { %v1282_v18 = vrot.slane %v1259_v12, 7  ;;  %v1313_v20 = vrot.slane %v1259_v12, 1  ;;  %1345 = vrot.lane.b32.xlu1 %v1258_v59, %s3584_s30  ;;  %v1293_v22 = vsel %vm352_vm4, %v1262_v16, %v1271_v40  ;;  %v1326_v33 = vsel %vm384_vm1, %v1315_v21, %v1302_v41 }
 0x4c2   :  { %v1334_v35 = vsel %vm3847_vm3, %v1326_v33, 0.0  ;;  %v1294_v40 = vsel %vm3858_vm5, %v1293_v22, 0.0 }
 0x4c3   :  { %v1314_v26 = vsel %vm384_vm1, %v1311_v17, %v1313_v20  ;;  %v1283_v27 = vsel %vm352_vm4, %v1280_v55, %v1282_v18  ;;  %v1284_v19 = vsel %vm352_vm4, %v1282_v18, %v1262_v16  ;;  %v1316_v30 = vsel %vm384_vm1, %v1313_v20, %v1315_v21  ;;  %v1571_v16 = vld [vmem:[%s5118_s11] sm:$0xff] }
 0x4c4   :  { %1375 = vrot.lane.b32.xlu0 %v1312_v23, %s3585_s26  ;;  %v4308_v17 = vld [vmem:[%s5117_s10] ss:$0 sm:$0xff] }
 0x4c5   :  { %1377 = vrot.lane.b32.xlu1 %v1314_v26, %s3585_s26 }
 0x4c8   :  { %1347 = vrot.lane.b32.xlu0 %v1259_v12, %s3584_s30  ;;  %v1860_v12 = vld [vmem:[%s5120_s13 + $0x58] sm:$0xff] }
 0x4c9   :  { %1349 = vrot.lane.b32.xlu1 %v1260_v14, %s3584_s30  ;;  %v1573_v14 = vld [vmem:[%s5118_s11 + $0x10] sm:$0xff] }
 0x4cc   :  { %1379 = vrot.lane.b32.xlu0 %v1316_v30, %s3585_s26 }
 0x4cd   :  { %1381 = vrot.lane.b32.xlu1 %v1334_v35, %s3585_s26 }
 0x520   :  { %v1338_v25 = vpop.permute.xlu1 %1337 }
 0x521   :  { %v1392_v31 = vsel %vm474_vm7, %v1273_v56, %v1338_v25 }
 0x522   :  { %v1336_v37 = vpop.permute.xlu0 %1335 }
 0x523   :  { %v1391_v42 = vsel %vm474_vm7, %v1294_v40, %v1336_v37 }
 0x524   :  { %v1342_v28 = vpop.permute.xlu1 %1341 }
 0x525   :  { %v1394_v38 = vsel %vm474_vm7, %v1277_v60, %v1342_v28 }
 0x526   :  { %v1368_v45 = vpop.permute.xlu0 %1367 }
 0x527   :  { %v1399_v41 = vsel %vm483_vm6, %v1391_v42, %v1368_v45 }
 0x528   :  { %3487 = vmatprep.mubr.msk.f32.mxu0 %vm511_vm8, %v1399_v41  ;;  %v1858_v41 = vld [vmem:[%s5120_s13 + $0x48] sm:$0xff] }
 0x529   :  { %v1370_v46 = vpop.permute.xlu1 %1369 }
 0x52a   :  { %v1400_v48 = vsel %vm483_vm6, %v1392_v31, %v1370_v46  ;;  %v1340_v51 = vpop.permute.xlu0 %1339 }
 0x52b   :  { %3488 = vmatmul.mubr.msk.f32.vlgmr.msra.gmra.mxu0 %vm511_vm8, %v1400_v48  ;;  %v1393_v52 = vsel %vm474_vm7, %v1275_v62, %v1340_v51 }
 0x52e   :  { %v1372_v54 = vpop.permute.xlu0 %1371 }
 0x52f   :  { %v1401_v57 = vsel %vm483_vm6, %v1393_v52, %v1372_v54  ;;  %v1374_v58 = vpop.permute.xlu1 %1373 }
 0x530   :  { %v1402_v39 = vsel %vm483_vm6, %v1394_v38, %v1374_v58  ;;  %3490 = vmatprep.mubr.msk.f32.mxu0 %vm511_vm8, %v1401_v57  ;;  %v1856_v58 = vld [vmem:[%s5120_s13 + $0x38] sm:$0xff] }
 0x531   :  { %3491 = vmatmul.mubr.msk.f32.gmra.mxu0 %vm511_vm8, %v1402_v39 }
 0x532   :  { %v1344_v56 = vpop.permute.xlu0 %1343 }
 0x533   :  { %v1346_v59 = vpop.permute.xlu1 %1345  ;;  %v1395_v63 = vsel %vm474_vm7, %v1298_v53, %v1344_v56 }
 0x534   :  { %v1396_v1 = vsel %vm474_vm7, %v1281_v13, %v1346_v59  ;;  %v1574_v13 = vld [vmem:[%s5118_s11 + $0x18] sm:$0xff] }
 0x535   :  { %3499 = vmatprep.subr.mxu0 %v1574_v13 }
 0x536   :  { %v1376_v62 = vpop.permute.xlu0 %1375  ;;  %3500 = vmatpush3.msra.mxu0 %v1574_v13 }
 0x537   :  { %v1403_v60 = vsel %vm483_vm6, %v1395_v63, %v1376_v62  ;;  %v1378_v4 = vpop.permute.xlu1 %1377  ;;  %3501 = vmatprep.subr.mxu0 %v1573_v14  ;;  %v1855_v62 = vld [vmem:[%s5120_s13 + $0x30] sm:$0xff] }
 0x538   :  { %v1404_v2 = vsel %vm483_vm6, %v1396_v1, %v1378_v4  ;;  %3493 = vmatprep.mubr.msk.f32.mxu0 %vm511_vm8, %v1403_v60  ;;  %3502 = vmatpush3.msra.mxu0 %v1573_v14 }
 0x539   :  { %3494 = vmatmul.mubr.msk.f32.gmra.mxu0 %vm511_vm8, %v1404_v2  ;;  %3503 = vmatprep.subr.mxu0 %v1572_v15 }
 0x53a   :  { %v1348_v55 = vpop.permute.xlu0 %1347  ;;  %3504 = vmatpush3.msra.mxu0 %v1572_v15 }
 0x53b   :  { %v1350_v47 = vpop.permute.xlu1 %1349  ;;  %v1397_v5 = vsel %vm474_vm7, %v1283_v27, %v1348_v55  ;;  %3505 = vmatprep.subr.mxu0 %v1571_v16  ;;  %v1854_v55 = vld [vmem:[%s5120_s13 + $0x28] sm:$0xff] }
 0x53c   :  { %v1398_v8 = vsel %vm474_vm7, %v1284_v19, %v1350_v47  ;;  %3506 = vmatpush3.msra.mxu0 %v1571_v16 }
 0x53d   :  { %3519 = vmatprep.subr.mxu0 %v1860_v12 }
 0x53e   :  { %v1380_v7 = vpop.permute.xlu0 %1379 }
 0x53f   :  { %v1405_v9 = vsel %vm483_vm6, %v1397_v5, %v1380_v7  ;;  %v1382_v11 = vpop.permute.xlu1 %1381 }
 0x540   :  { %v1406_v10 = vsel %vm483_vm6, %v1398_v8, %v1382_v11  ;;  %3496 = vmatprep.mubr.msk.f32.mxu0 %vm511_vm8, %v1405_v9  ;;  %v1853_v11 = vld [vmem:[%s5120_s13 + $0x20] sm:$0xff] }
 0x541   :  { %3497 = vmatmul.mubr.msk.f32.gmra.mxu0 %vm511_vm8, %v1406_v10 }
 0x5eb   :  { %v3489_v18 = vpop.f32.mrf.mxu0 }
 0x5ec   :  { %v1522_v20 = vadd.f32 %v3489_v18, %v4308_v17  ;;  %v1852_v18 = vld [vmem:[%s5120_s13 + $0x18] sm:$0xff] }
 0x5ed   :  { %v1516_v22 = vpop.f32.mrf.mxu0 }
 0x5ee   :  { %v1556_v23 = vadd.f32 %v1522_v20, %v4059_v24  ;;  %v1517_v26 = vadd.f32 %v4308_v17, %v1516_v22 }
 0x5f0   :  { %v1564_v27 = vmax.f32 %v1556_v23, 0.0  ;;  %v1555_v19 = vadd.f32 %v1517_v26, %v4066_v34  ;;  %v1859_v34 = vld [vmem:[%s5120_s13 + $0x50] sm:$0xff] }
 0x5f1   :  { %v3492_v21 = vpop.f32.mrf.mxu0 }
 0x5f2   :  { %v4314_v33 = vmax.f32 %v1555_v19, 0.0  ;;  %v1532_v30 = vadd.f32 %v3492_v21, %v4308_v17  ;;  %1779 = vrot.lane.b32.xlu1 %v1564_v27, %s3584_s30  ;;  %v1745_v25 = vrot.slane %v1564_v27, 1  ;;  %v1714_v37 = vrot.slane %v1564_v27, 7  ;;  %v1851_v19 = vld [vmem:[%s5120_s13 + $0x10] sm:$0xff] }
 0x5f3   :  { %v1526_v35 = vpop.f32.mrf.mxu0 }
 0x5f4   :  { %v1558_v28 = vadd.f32 %v1532_v30, %v4075_v36  ;;  %v1527_v40 = vadd.f32 %v4308_v17, %v1526_v35  ;;  %1777 = vrot.lane.b32.xlu0 %v4314_v33, %s3584_s30  ;;  %3507 = vmatprep.mubr.msk.f32.mxu0 %vm474_vm7, %v4314_v33  ;;  %v1744_v24 = vrot.slane %v4314_v33, 1  ;;  %v1713_v42 = vrot.slane %v4314_v33, 7  ;;  %v1850_v30 = vld [vmem:[%s5120_s13 + $0x8] sm:$0xff] }
 0x5f5   :  { %3508 = vmatmul.mubr.msk.f32.vlgmr.msra.gmra.mxu0 %vm474_vm7, %v1564_v27 }
 0x5f6   :  { %v1557_v36 = vadd.f32 %v1527_v40, %v4085_v43  ;;  %v1746_v45 = vsel %vm384_vm1, %v1744_v24, %v1745_v25  ;;  %3520 = vmatpush3.msra.mxu0 %v1860_v12  ;;  %v4340_v31 = vsel %vm352_vm4, %v1713_v42, %v1714_v37  ;;  %v1566_v46 = vmax.f32 %v1558_v28, 0.0  ;;  %v1857_v43 = vld [vmem:[%s5120_s13 + $0x40] sm:$0xff] }
 0x5f7   :  { %3521 = vmatprep.subr.mxu0 %v1859_v34 }
 0x5f8   :  { %v1565_v48 = vmax.f32 %v1557_v36, 0.0  ;;  %1809 = vrot.lane.b32.xlu0 %v1746_v45, %s3585_s26  ;;  %3522 = vmatpush3.msra.mxu0 %v1859_v34  ;;  %v1718_v39 = vrot.slane %v1566_v46, 7  ;;  %v1749_v63 = vrot.slane %v1566_v46, 1 }
 0x5f9   :  { %v3495_v51 = vpop.f32.mrf.mxu0  ;;  %3523 = vmatprep.subr.mxu0 %v1858_v41 }
 0x5fa   :  { %v1542_v52 = vadd.f32 %v3495_v51, %v4308_v17  ;;  %3510 = vmatprep.mubr.msk.f32.mxu0 %vm474_vm7, %v1565_v48  ;;  %v1747_v54 = vrot.slane %v1565_v48, 1  ;;  %3524 = vmatpush3.msra.mxu0 %v1858_v41  ;;  %v1716_v38 = vrot.slane %v1565_v48, 7 }
 0x5fb   :  { %v1536_v57 = vpop.f32.mrf.mxu0  ;;  %3511 = vmatmul.mubr.msk.f32.gmra.mxu0 %vm474_vm7, %v1566_v46  ;;  %3525 = vmatprep.subr.mxu0 %v1857_v43 }
 0x5fc   :  { %v1560_v56 = vadd.f32 %v1542_v52, %v4091_v49  ;;  %v1537_v59 = vadd.f32 %v4308_v17, %v1536_v57  ;;  %1781 = vrot.lane.b32.xlu0 %v1565_v48, %s3584_s30  ;;  %v1748_v53 = vsel %vm384_vm1, %v1745_v25, %v1747_v54  ;;  %3526 = vmatpush3.msra.mxu0 %v1857_v43 }
 0x5fd   :  { %1811 = vrot.lane.b32.xlu1 %v1748_v53, %s3585_s26  ;;  %v4361_v1 = vsel %vm352_vm4, %v1714_v37, %v1716_v38  ;;  %v4364_v60 = vsel %vm352_vm4, %v1716_v38, %v1718_v39  ;;  %3527 = vmatprep.subr.mxu0 %v1856_v58  ;;  %v1750_v2 = vsel %vm384_vm1, %v1747_v54, %v1749_v63  ;;  %v1849_v37 = vld [vmem:[%s5120_s13] sm:$0xff] }
 0x5fe   :  { %v1559_v49 = vadd.f32 %v1537_v59, %v4097_v44  ;;  %v1568_v4 = vmax.f32 %v1560_v56, 0.0  ;;  %3528 = vmatpush3.msra.mxu0 %v1856_v58 }
 0x5ff   :  { %3529 = vmatprep.subr.mxu0 %v1855_v62 }
 0x600   :  { %v1567_v47 = vmax.f32 %v1559_v49, 0.0  ;;  %1813 = vrot.lane.b32.xlu0 %v1750_v2, %s3585_s26  ;;  %3530 = vmatpush3.msra.mxu0 %v1855_v62  ;;  %v1722_v10 = vrot.slane %v1568_v4, 7  ;;  %v1753_v12 = vrot.slane %v1568_v4, 1 }
 0x601   :  { %1783 = vrot.lane.b32.xlu1 %v1566_v46, %s3584_s30  ;;  %v3498_v5 = vpop.f32.mrf.mxu0  ;;  %3531 = vmatprep.subr.mxu0 %v1854_v55 }
 0x602   :  { %v1552_v7 = vadd.f32 %v3498_v5, %v4308_v17  ;;  %3513 = vmatprep.mubr.msk.f32.mxu0 %vm474_vm7, %v1567_v47  ;;  %v1751_v44 = vrot.slane %v1567_v47, 1  ;;  %v1720_v8 = vrot.slane %v1567_v47, 7  ;;  %3532 = vmatpush3.msra.mxu0 %v1854_v55 }
 0x603   :  { %v1546_v9 = vpop.f32.mrf.mxu0  ;;  %3514 = vmatmul.mubr.msk.f32.gmra.mxu0 %vm474_vm7, %v1568_v4  ;;  %3533 = vmatprep.subr.mxu0 %v1853_v11 }
 0x604   :  { %v1562_v13 = vadd.f32 %v1552_v7, %v4120_v0  ;;  %v1547_v14 = vadd.f32 %v4308_v17, %v1546_v9  ;;  %1785 = vrot.lane.b32.xlu0 %v1567_v47, %s3584_s30  ;;  %v1752_v15 = vsel %vm384_vm1, %v1749_v63, %v1751_v44  ;;  %v4389_v20 = vsel %vm352_vm4, %v1718_v39, %v1720_v8 }
 0x605   :  { %v1772_v16 = vsel %vm3824_vm2, %v1752_v15, 0.0  ;;  %v4392_v0 = vsel %vm352_vm4, %v1720_v8, %v1722_v10  ;;  %v1754_v23 = vsel %vm384_vm1, %v1751_v44, %v1753_v12  ;;  %3534 = vmatpush3.msra.mxu0 %v1853_v11  ;;  %v3586_v15 = vmov 0.0  }
 0x606   :  { %v1570_v17 = vmax.f32 %v1562_v13, 0.0  ;;  %v1561_v22 = vadd.f32 %v1547_v14, %v4116_v3  ;;  %1815 = vrot.lane.b32.xlu1 %v1772_v16, %s3585_s26  ;;  %3535 = vmatprep.subr.mxu0 %v1852_v18  ;;  %v2126_v14 = vld [vmem:[%s5122_s15 + $0x78] sm:$0xff]  ;;  %v2125_v16 = vld [vmem:[%s5122_s15 + $0x70] sm:$0xff] }
 0x607   :  { %3536 = vmatpush3.msra.mxu0 %v1852_v18  ;;  %2166 = vmatprep.subr.mxu1 %v3586_v15  ;;  %v2123_v18 = vld [vmem:[%s5122_s15 + $0x60] sm:$0xff] }
 0x608   :  { %v1569_v26 = vmax.f32 %v1561_v22, 0.0  ;;  %1817 = vrot.lane.b32.xlu0 %v1754_v23, %s3585_s26  ;;  %v1711_v27 = vrot.slane %v1570_v17, 7  ;;  %3537 = vmatprep.subr.mxu0 %v1851_v19  ;;  %v1757_v40 = vrot.slane %v1570_v17, 1  ;;  %v2119_v22 = vld [vmem:[%s5122_s15 + $0x40] sm:$0xff]  ;;  %v2118_v23 = vld [vmem:[%s5122_s15 + $0x38] sm:$0xff] }
 0x609   :  { %3538 = vmatpush3.msra.mxu0 %v1851_v19  ;;  %2167 = vmatpush1.msra.mxu1 %v2126_v14  ;;  %v2115_v19 = vld [vmem:[%s5122_s15 + $0x20] sm:$0xff] }
 0x60a   :  { %1787 = vrot.lane.b32.xlu1 %v1568_v4, %s3584_s30  ;;  %3516 = vmatprep.mubr.msk.f32.mxu0 %vm474_vm7, %v1569_v26  ;;  %v1755_v3 = vrot.slane %v1569_v26, 1  ;;  %v1735_v21 = vsel %vm352_vm4, %v1711_v27, %v1713_v42  ;;  %v1724_v35 = vrot.slane %v1569_v26, 7  ;;  %v1768_v36 = vsel %vm384_vm1, %v1757_v40, %v1744_v24 }
 0x60b   :  { %3517 = vmatmul.mubr.msk.f32.gmra.mxu0 %vm474_vm7, %v1570_v17  ;;  %3539 = vmatprep.subr.mxu0 %v1850_v30  ;;  %v1776_v45 = vsel %vm3847_vm3, %v1768_v36, 0.0  ;;  %v1736_v46 = vsel %vm3858_vm5, %v1735_v21, 0.0  ;;  %v2113_v21 = vld [vmem:[%s5122_s15 + $0x10] sm:$0xff] }
 0x60c   :  { %1789 = vrot.lane.b32.xlu0 %v1569_v26, %s3584_s30  ;;  %v1756_v25 = vsel %vm384_vm1, %v1753_v12, %v1755_v3  ;;  %v1725_v28 = vsel %vm352_vm4, %v1722_v10, %v1724_v35  ;;  %v1726_v34 = vsel %vm352_vm4, %v1724_v35, %v1711_v27  ;;  %3540 = vmatpush3.msra.mxu0 %v1850_v30  ;;  %v2124_v12 = vld [vmem:[%s5122_s15 + $0x68] sm:$0xff]  ;;  %v2117_v26 = vld [vmem:[%s5122_s15 + $0x30] sm:$0xff]  ;;  %v2111_v35 = vld [vmem:[%s5122_s15] sm:$0xff] }
 0x60d   :  { %v1758_v42 = vsel %vm384_vm1, %v1755_v3, %v1757_v40  ;;  %3541 = vmatprep.subr.mxu0 %v1849_v37  ;;  %2168 = vmatprep.subr.mxu1 %v3586_v15  ;;  %v2116_v27 = vld [vmem:[%s5122_s15 + $0x28] sm:$0xff]  ;;  %v2114_v3 = vld [vmem:[%s5122_s15 + $0x18] sm:$0xff]  ;;  %v2131_v40 = vld [vmem:[%s5122_s15 + $0xa0] sm:$0xff] }
 0x60e   :  { %1819 = vrot.lane.b32.xlu1 %v1756_v25, %s3585_s26  ;;  %3542 = vmatpush3.msra.mxu0 %v1849_v37  ;;  %v2112_v30 = vld [vmem:[%s5122_s15 + $0x8] sm:$0xff]  ;;  %v2134_v25 = vld [vmem:[%s5122_s15 + $0xb8] sm:$0xff]  ;;  %v2133_v37 = vld [vmem:[%s5122_s15 + $0xb0] sm:$0xff] }
 0x60f   :  { %2448 = vmatprep.subr.mxu0 %v3586_v15  ;;  %2169 = vmatpush1.msra.mxu1 %v2125_v16 }
 0x610   :  { %1821 = vrot.lane.b32.xlu0 %v1758_v42, %s3585_s26  ;;  %2170 = vmatprep.subr.mxu1 %v3586_v15  ;;  %v2129_v42 = vld [vmem:[%s5122_s15 + $0x90] sm:$0xff] }
 0x611   :  { %2171 = vmatpush1.msra.mxu1 %v2124_v12 }
 0x612   :  { %1791 = vrot.lane.b32.xlu1 %v1570_v17, %s3584_s30  ;;  %2172 = vmatprep.subr.mxu1 %v3586_v15  ;;  %v2120_v17 = vld [vmem:[%s5122_s15 + $0x48] sm:$0xff] }
 0x613   :  { %2173 = vmatpush1.msra.mxu1 %v2123_v18 }
 0x614   :  { %2174 = vmatprep.subr.mxu1 %v3586_v15 }
 0x616   :  { %1823 = vrot.lane.b32.xlu1 %v1776_v45, %s3585_s26 }
 0x664   :  { %v1780_v51 = vpop.permute.xlu1 %1779 }
 0x665   :  { %v1834_v24 = vsel %vm474_vm7, %v4340_v31, %v1780_v51  ;;  %v1740_v31 = vsel %vm3879_vm9, %v4389_v20, 0.0  ;;  %v2122_v20 = vld [vmem:[%s5122_s15 + $0x58] sm:$0xff] }
 0x666   :  { %v1778_v41 = vpop.permute.xlu0 %1777  ;;  %2175 = vmatpush1.msra.mxu1 %v2122_v20 }
 0x667   :  { %v1833_v48 = vsel %vm474_vm7, %v1736_v46, %v1778_v41  ;;  %2176 = vmatprep.subr.mxu1 %v3586_v15 }
 0x66a   :  { %v1810_v43 = vpop.permute.xlu0 %1809 }
 0x66b   :  { %v1841_v52 = vsel %vm483_vm6, %v1833_v48, %v1810_v43  ;;  %v2128_v43 = vld [vmem:[%s5122_s15 + $0x88] sm:$0xff] }
 0x66c   :  { %3543 = vmatprep.mubr.msk.f32.mxu0 %vm511_vm8, %v1841_v52 }
 0x66e   :  { %v1782_v33 = vpop.permute.xlu0 %1781 }
 0x66f   :  { %v1812_v54 = vpop.permute.xlu1 %1811  ;;  %v1835_v57 = vsel %vm474_vm7, %v4361_v1, %v1782_v33  ;;  %v2127_v33 = vld [vmem:[%s5122_s15 + $0x80] sm:$0xff] }
 0x670   :  { %v1842_v38 = vsel %vm483_vm6, %v1834_v24, %v1812_v54  ;;  %v3182_v54 = vld [vmem:[%s5121_s14] ss:$0 sm:$0xff] }
 0x671   :  { %3544 = vmatmul.mubr.msk.f32.vlgmr.msra.gmra.mxu0 %vm511_vm8, %v1842_v38 }
 0x672   :  { %v1814_v58 = vpop.permute.xlu0 %1813 }
 0x673   :  { %v1843_v39 = vsel %vm483_vm6, %v1835_v57, %v1814_v58  ;;  %v1784_v56 = vpop.permute.xlu1 %1783 }
 0x674   :  { %3546 = vmatprep.mubr.msk.f32.mxu0 %vm511_vm8, %v1843_v39  ;;  %v1836_v53 = vsel %vm474_vm7, %v4364_v60, %v1784_v56 }
 0x676   :  { %v1786_v59 = vpop.permute.xlu0 %1785 }
 0x677   :  { %v1837_v49 = vsel %vm474_vm7, %v1740_v31, %v1786_v59 }
 0x678   :  { %v1816_v63 = vpop.permute.xlu1 %1815 }
 0x679   :  { %v1844_v62 = vsel %vm483_vm6, %v1836_v53, %v1816_v63 }
 0x67a   :  { %v1818_v1 = vpop.permute.xlu0 %1817  ;;  %3547 = vmatmul.mubr.msk.f32.gmra.mxu0 %vm511_vm8, %v1844_v62 }
 0x67b   :  { %v1845_v4 = vsel %vm483_vm6, %v1837_v49, %v1818_v1 }
 0x67c   :  { %3549 = vmatprep.mubr.msk.f32.mxu0 %vm511_vm8, %v1845_v4  ;;  %v1788_v2 = vpop.permute.xlu1 %1787 }
 0x67d   :  { %v1838_v60 = vsel %vm474_vm7, %v4392_v0, %v1788_v2  ;;  %v2121_v0 = vld [vmem:[%s5122_s15 + $0x50] sm:$0xff] }
 0x67e   :  { %v1790_v55 = vpop.permute.xlu0 %1789  ;;  %2177 = vmatpush1.msra.mxu1 %v2121_v0 }
 0x67f   :  { %v1839_v7 = vsel %vm474_vm7, %v1725_v28, %v1790_v55  ;;  %2178 = vmatprep.subr.mxu1 %v3586_v15  ;;  %v2132_v28 = vld [vmem:[%s5122_s15 + $0xa8] sm:$0xff] }
 0x680   :  { %v1820_v47 = vpop.permute.xlu1 %1819  ;;  %2179 = vmatpush1.msra.mxu1 %v2120_v17 }
 0x681   :  { %v1846_v5 = vsel %vm483_vm6, %v1838_v60, %v1820_v47  ;;  %2180 = vmatprep.subr.mxu1 %v3586_v15 }
 0x682   :  { %v1822_v44 = vpop.permute.xlu0 %1821  ;;  %3550 = vmatmul.mubr.msk.f32.gmra.mxu0 %vm511_vm8, %v1846_v5  ;;  %2181 = vmatpush1.msra.mxu1 %v2119_v22 }
 0x683   :  { %v1847_v8 = vsel %vm483_vm6, %v1839_v7, %v1822_v44  ;;  %2182 = vmatprep.subr.mxu1 %v3586_v15 }
 0x684   :  { %3552 = vmatprep.mubr.msk.f32.mxu0 %vm511_vm8, %v1847_v8  ;;  %v1792_v9 = vpop.permute.xlu1 %1791  ;;  %2183 = vmatpush1.msra.mxu1 %v2118_v23 }
 0x685   :  { %v1840_v11 = vsel %vm474_vm7, %v1726_v34, %v1792_v9  ;;  %2184 = vmatprep.subr.mxu1 %v3586_v15  ;;  %v2130_v34 = vld [vmem:[%s5122_s15 + $0x98] sm:$0xff] }
 0x686   :  { %2185 = vmatpush1.msra.mxu1 %v2117_v26 }
 0x687   :  { %2186 = vmatprep.subr.mxu1 %v3586_v15 }
 0x688   :  { %v1824_v10 = vpop.permute.xlu1 %1823  ;;  %2187 = vmatpush1.msra.mxu1 %v2116_v27 }
 0x689   :  { %v1848_v13 = vsel %vm483_vm6, %v1840_v11, %v1824_v10  ;;  %2188 = vmatprep.subr.mxu1 %v3586_v15 }
 0x68a   :  { %3553 = vmatmul.mubr.msk.f32.gmra.mxu0 %vm511_vm8, %v1848_v13  ;;  %2189 = vmatpush1.msra.mxu1 %v2115_v19 }
 0x68b   :  { %2190 = vmatprep.subr.mxu1 %v3586_v15 }
 0x68c   :  { %2191 = vmatpush1.msra.mxu1 %v2114_v3 }
 0x68d   :  { %2192 = vmatprep.subr.mxu1 %v3586_v15 }
 0x68e   :  { %2193 = vmatpush1.msra.mxu1 %v2113_v21 }
 0x68f   :  { %2194 = vmatprep.subr.mxu1 %v3586_v15 }
 0x690   :  { %2195 = vmatpush1.msra.mxu1 %v2112_v30 }
 0x691   :  { %2196 = vmatprep.subr.mxu1 %v3586_v15 }
 0x692   :  { %2197 = vmatpush1.msra.mxu1 %v2111_v35 }
 0x693   :  { %2214 = vmatprep.subr.mxu1 %v3586_v15 }
 0x694   :  { %2215 = vmatpush2.msra.mxu1 %v2134_v25 }
 0x695   :  { %2216 = vmatprep.subr.mxu1 %v3586_v15 }
 0x696   :  { %2217 = vmatpush2.msra.mxu1 %v2133_v37 }
 0x697   :  { %2218 = vmatprep.subr.mxu1 %v3586_v15 }
 0x698   :  { %2219 = vmatpush2.msra.mxu1 %v2132_v28 }
 0x699   :  { %2220 = vmatprep.subr.mxu1 %v3586_v15 }
 0x69a   :  { %2221 = vmatpush2.msra.mxu1 %v2131_v40 }
 0x69b   :  { %2222 = vmatprep.subr.mxu1 %v3586_v15 }
 0x69c   :  { %2223 = vmatpush2.msra.mxu1 %v2130_v34 }
 0x69d   :  { %2224 = vmatprep.subr.mxu1 %v3586_v15 }
 0x69e   :  { %2225 = vmatpush2.msra.mxu1 %v2129_v42 }
 0x69f   :  { %2226 = vmatprep.subr.mxu1 %v3586_v15 }
 0x6a0   :  { %2227 = vmatpush2.msra.mxu1 %v2128_v43 }
 0x6a1   :  { %2228 = vmatprep.subr.mxu1 %v3586_v15 }
 0x6a2   :  { %2229 = vmatpush2.msra.mxu1 %v2127_v33 }
 0x6a3   :  { %2722 = vmatprep.subr.mxu1 %v3586_v15 }
 0x6b5   :  { %v4550_v36 = vpop.f32.mrf.mxu0 }
 0x6b7   :  { %v4552_v45 = vpop.f32.mrf.mxu0 }
 0x6bb   :  { %v4554_v41 = vpop.f32.mrf.mxu0 }
 0x6bd   :  { %v4556_v46 = vpop.f32.mrf.mxu0 }
 0x6c3   :  { %v4558_v48 = vpop.f32.mrf.mxu0 }
 0x6c5   :  { %v4563_v51 = vpop.f32.mrf.mxu0 }
 0x6cb   :  { %v4566_v52 = vpop.f32.mrf.mxu0 }
 0x6cd   :  { %v4572_v24 = vpop.f32.mrf.mxu0 }
 0x731   :  { %v3545_v38 = vpop.f32.mrf.mxu0 }
 0x732   :  { %v1964_v57 = vadd.f32 %v3545_v38, %v3182_v54 }
 0x733   :  { %v1958_v58 = vpop.f32.mrf.mxu0 }
 0x734   :  { %v1998_v39 = vmax.f32 %v1964_v57, 0.0  ;;  %v1959_v56 = vadd.f32 %v3182_v54, %v1958_v58 }
 0x736   :  { %v1997_v59 = vmax.f32 %v1959_v56, 0.0  ;;  %2081 = vrot.lane.b32.xlu1 %v1998_v39, %s3585_s26  ;;  %v2016_v53 = vrot.slane %v1998_v39, 7  ;;  %v2047_v63 = vrot.slane %v1998_v39, 1 }
 0x738   :  { %v2015_v31 = vrot.slane %v1997_v59, 7  ;;  %v2046_v62 = vrot.slane %v1997_v59, 1  ;;  %2079 = vrot.lane.b32.xlu0 %v1997_v59, %s3585_s26 }
 0x73a   :  { %v3548_v49 = vpop.f32.mrf.mxu0  ;;  %v2048_v1 = vsel %vm384_vm1, %v2046_v62, %v2047_v63  ;;  %v2017_v4 = vsel %vm352_vm4, %v2015_v31, %v2016_v53 }
 0x73b   :  { %v1974_v2 = vadd.f32 %v3548_v49, %v3182_v54  ;;  %3192 = vmatprep.mubr.msk.f32.mxu1 %vm483_vm6, %v2048_v1 }
 0x73c   :  { %v1968_v55 = vpop.f32.mrf.mxu0 }
 0x73d   :  { %v2000_v60 = vmax.f32 %v1974_v2, 0.0  ;;  %v1969_v47 = vadd.f32 %v3182_v54, %v1968_v55 }
 0x73f   :  { %v1999_v5 = vmax.f32 %v1969_v47, 0.0  ;;  %2085 = vrot.lane.b32.xlu1 %v2000_v60, %s3585_s26  ;;  %v2051_v7 = vrot.slane %v2000_v60, 1  ;;  %v2020_v9 = vrot.slane %v2000_v60, 7 }
 0x741   :  { %v2018_v44 = vrot.slane %v1999_v5, 7  ;;  %v2049_v8 = vrot.slane %v1999_v5, 1  ;;  %2083 = vrot.lane.b32.xlu0 %v1999_v5, %s3585_s26 }
 0x742   :  { %v3551_v11 = vpop.f32.mrf.mxu0 }
 0x743   :  { %v1984_v10 = vadd.f32 %v3551_v11, %v3182_v54  ;;  %v2050_v13 = vsel %vm384_vm1, %v2047_v63, %v2049_v8  ;;  %v2052_v14 = vsel %vm384_vm1, %v2049_v8, %v2051_v7  ;;  %v2019_v16 = vsel %vm352_vm4, %v2016_v53, %v2018_v44 }
 0x744   :  { %v1978_v12 = vpop.f32.mrf.mxu0  ;;  %v2021_v18 = vsel %vm352_vm4, %v2018_v44, %v2020_v9 }
 0x745   :  { %v2002_v20 = vmax.f32 %v1984_v10, 0.0  ;;  %v1979_v0 = vadd.f32 %v3182_v54, %v1978_v12  ;;  %v2407_v12 = vld [vmem:[%s5124_s17 + $0x70] sm:$0xff] }
 0x747   :  { %v2001_v17 = vmax.f32 %v1979_v0, 0.0  ;;  %2089 = vrot.lane.b32.xlu1 %v2002_v20, %s3585_s26  ;;  %v2055_v22 = vrot.slane %v2002_v20, 1  ;;  %v2024_v27 = vrot.slane %v2002_v20, 7  ;;  %v2405_v20 = vld [vmem:[%s5124_s17 + $0x60] sm:$0xff]  ;;  %v2404_v0 = vld [vmem:[%s5124_s17 + $0x58] sm:$0xff] }
 0x749   :  { %v2022_v23 = vrot.slane %v2001_v17, 7  ;;  %v2053_v26 = vrot.slane %v2001_v17, 1  ;;  %2087 = vrot.lane.b32.xlu0 %v2001_v17, %s3585_s26  ;;  %v2403_v17 = vld [vmem:[%s5124_s17 + $0x50] sm:$0xff] }
 0x74a   :  { %v3554_v19 = vpop.f32.mrf.mxu0 }
 0x74b   :  { %v1994_v3 = vadd.f32 %v3554_v19, %v3182_v54  ;;  %v2054_v21 = vsel %vm384_vm1, %v2051_v7, %v2053_v26  ;;  %v2056_v30 = vsel %vm384_vm1, %v2053_v26, %v2055_v22  ;;  %v2023_v35 = vsel %vm352_vm4, %v2020_v9, %v2022_v23  ;;  %v2400_v26 = vld [vmem:[%s5124_s17 + $0x38] sm:$0xff]  ;;  %v2398_v19 = vld [vmem:[%s5124_s17 + $0x28] sm:$0xff] }
 0x74c   :  { %v1988_v25 = vpop.f32.mrf.mxu0  ;;  %v2025_v37 = vsel %vm352_vm4, %v2022_v23, %v2024_v27  ;;  %v2074_v60 = vsel %vm3824_vm2, %v2054_v21, 0.0  ;;  %v2401_v23 = vld [vmem:[%s5124_s17 + $0x40] sm:$0xff]  ;;  %v2396_v21 = vld [vmem:[%s5124_s17 + $0x18] sm:$0xff] }
 0x74d   :  { %v2004_v28 = vmax.f32 %v1994_v3, 0.0  ;;  %v1989_v40 = vadd.f32 %v3182_v54, %v1988_v25  ;;  %v2397_v3 = vld [vmem:[%s5124_s17 + $0x20] sm:$0xff] }
 0x74e   :  { %v2393_v25 = vld [vmem:[%s5124_s17] sm:$0xff] }
 0x74f   :  { %v2006_v34 = vrot.slane %v2004_v28, 7  ;;  %v2059_v42 = vrot.slane %v2004_v28, 1  ;;  %v2003_v43 = vmax.f32 %v1989_v40, 0.0  ;;  %2093 = vrot.lane.b32.xlu1 %v2004_v28, %s3585_s26  ;;  %v2415_v28 = vld [vmem:[%s5124_s17 + $0xb0] sm:$0xff]  ;;  %v2414_v40 = vld [vmem:[%s5124_s17 + $0xa8] sm:$0xff] }
 0x751   :  { %v2026_v33 = vrot.slane %v2003_v43, 7  ;;  %v2057_v38 = vrot.slane %v2003_v43, 1  ;;  %2091 = vrot.lane.b32.xlu0 %v2003_v43, %s3585_s26  ;;  %v2037_v57 = vsel %vm352_vm4, %v2006_v34, %v2015_v31  ;;  %v2070_v58 = vsel %vm384_vm1, %v2059_v42, %v2046_v62  ;;  %v2411_v43 = vld [vmem:[%s5124_s17 + $0x90] sm:$0xff] }
 0x752   :  { %v2038_v63 = vsel %vm3858_vm5, %v2037_v57, 0.0  ;;  %v3191_v57 = vld [vmem:[%s5123_s16] ss:$0 sm:$0xff] }
 0x753   :  { %v2058_v39 = vsel %vm384_vm1, %v2055_v22, %v2057_v38  ;;  %v2060_v56 = vsel %vm384_vm1, %v2057_v38, %v2059_v42  ;;  %v2027_v59 = vsel %vm352_vm4, %v2024_v27, %v2026_v33  ;;  %v2028_v54 = vsel %vm352_vm4, %v2026_v33, %v2006_v34  ;;  %v2402_v22 = vld [vmem:[%s5124_s17 + $0x48] sm:$0xff]  ;;  %v2399_v27 = vld [vmem:[%s5124_s17 + $0x30] sm:$0xff]  ;;  %v2413_v34 = vld [vmem:[%s5124_s17 + $0xa0] sm:$0xff] }
 0x754   :  { %v2412_v42 = vld [vmem:[%s5124_s17 + $0x98] sm:$0xff]  ;;  %v2410_v33 = vld [vmem:[%s5124_s17 + $0x88] sm:$0xff]  ;;  %v2409_v38 = vld [vmem:[%s5124_s17 + $0x80] sm:$0xff] }
 0x7a8   :  { %v2082_v1 = vpop.permute.xlu1 %2081 }
 0x7a9   :  { %v2104_v31 = vsel %vm483_vm6, %v2017_v4, %v2082_v1  ;;  %v2042_v4 = vsel %vm3879_vm9, %v2023_v35, 0.0  ;;  %v2394_v35 = vld [vmem:[%s5124_s17 + $0x8] sm:$0xff] }
 0x7aa   :  { %v2080_v53 = vpop.permute.xlu0 %2079 }
 0x7ab   :  { %v2103_v49 = vsel %vm483_vm6, %v2038_v63, %v2080_v53 }
 0x7ac   :  { %2231 = vmatmul.mubr.f32.vlgmr.msra.gmra.mxu1 %v2103_v49 }
 0x7ad   :  { %3193 = vmatprep.mubr.msk.f32.mxu1 %vm483_vm6, %v2050_v13  ;;  %v2078_v13 = vsel %vm3847_vm3, %v2070_v58, 0.0  ;;  %v3173_v58 = vld [vmem:[%s5119_s12] ss:$0 sm:$0xff]  ;;  %s5160_s12 = sld [smem:[#allocation13_spill]] }
 0x7ae   :  { %v1678_v49 = vadd.f32 %v4550_v36, %v3173_v58 }
 0x7b0   :  { %2236 = vmatmul.mubr.f32.gmra.mxu1 %v2104_v31 }
 0x7b1   :  { %3194 = vmatprep.mubr.msk.f32.mxu1 %vm483_vm6, %v2052_v14  ;;  %v2086_v55 = vpop.permute.xlu1 %2085 }
 0x7b2   :  { %v2106_v47 = vsel %vm483_vm6, %v2021_v18, %v2086_v55  ;;  %v2406_v18 = vld [vmem:[%s5124_s17 + $0x68] sm:$0xff] }
 0x7b3   :  { %v2084_v62 = vpop.permute.xlu0 %2083 }
 0x7b4   :  { %v2105_v2 = vsel %vm483_vm6, %v2019_v16, %v2084_v62  ;;  %v2408_v16 = vld [vmem:[%s5124_s17 + $0x78] sm:$0xff] }
 0x7b5   :  { %2241 = vmatmul.mubr.f32.gmra.mxu1 %v2105_v2  ;;  %2449 = vmatpush1.msra.mxu0 %v2408_v16  ;;  %v1693_v16 = vadd.f32 %v3173_v58, %v4563_v51 }
 0x7b6   :  { %3195 = vmatprep.mubr.msk.f32.mxu1 %vm483_vm6, %v2074_v60  ;;  %2450 = vmatprep.subr.mxu0 %v3586_v15 }
 0x7b7   :  { %2451 = vmatpush1.msra.mxu0 %v2407_v12 }
 0x7b8   :  { %2452 = vmatprep.subr.mxu0 %v3586_v15 }
 0x7b9   :  { %2246 = vmatmul.mubr.f32.gmra.mxu1 %v2106_v47  ;;  %v2090_v44 = vpop.permute.xlu1 %2089  ;;  %2453 = vmatpush1.msra.mxu0 %v2406_v18  ;;  %v1683_v47 = vadd.f32 %v3173_v58, %v4556_v46 }
 0x7ba   :  { %3196 = vmatprep.mubr.msk.f32.mxu1 %vm483_vm6, %v2056_v30  ;;  %v2108_v8 = vsel %vm483_vm6, %v2025_v37, %v2090_v44  ;;  %2454 = vmatprep.subr.mxu0 %v3586_v15  ;;  %v2395_v30 = vld [vmem:[%s5124_s17 + $0x10] sm:$0xff]  ;;  %v2416_v37 = vld [vmem:[%s5124_s17 + $0xb8] sm:$0xff] }
 0x7bb   :  { %v2088_v5 = vpop.permute.xlu0 %2087  ;;  %2455 = vmatpush1.msra.mxu0 %v2405_v20 }
 0x7bc   :  { %v2107_v7 = vsel %vm483_vm6, %v2042_v4, %v2088_v5  ;;  %2456 = vmatprep.subr.mxu0 %v3586_v15 }
 0x7bd   :  { %2251 = vmatmul.mubr.f32.gmra.mxu1 %v2107_v7  ;;  %2457 = vmatpush1.msra.mxu0 %v2404_v0 }
 0x7be   :  { %3197 = vmatprep.mubr.msk.f32.mxu1 %vm483_vm6, %v2058_v39  ;;  %2458 = vmatprep.subr.mxu0 %v3586_v15 }
 0x7bf   :  { %2459 = vmatpush1.msra.mxu0 %v2403_v17  ;;  %v1698_v17 = vadd.f32 %v4558_v48, %v3173_v58 }
 0x7c0   :  { %2460 = vmatprep.subr.mxu0 %v3586_v15 }
 0x7c1   :  { %2256 = vmatmul.mubr.f32.gmra.mxu1 %v2108_v8  ;;  %v2094_v10 = vpop.permute.xlu1 %2093  ;;  %2461 = vmatpush1.msra.mxu0 %v2402_v22 }
 0x7c2   :  { %3198 = vmatprep.mubr.msk.f32.mxu1 %vm483_vm6, %v2060_v56  ;;  %v2110_v14 = vsel %vm483_vm6, %v2028_v54, %v2094_v10  ;;  %2462 = vmatprep.subr.mxu0 %v3586_v15  ;;  %v1673_v56 = vadd.f32 %v3173_v58, %v4552_v45 }
 0x7c3   :  { %v2092_v9 = vpop.permute.xlu0 %2091  ;;  %2463 = vmatpush1.msra.mxu0 %v2401_v23 }
 0x7c4   :  { %v2109_v11 = vsel %vm483_vm6, %v2027_v59, %v2092_v9  ;;  %2464 = vmatprep.subr.mxu0 %v3586_v15  ;;  %v1688_v9 = vadd.f32 %v4554_v41, %v3173_v58 }
 0x7c5   :  { %2261 = vmatmul.mubr.f32.gmra.mxu1 %v2109_v11  ;;  %2465 = vmatpush1.msra.mxu0 %v2400_v26 }
 0x7c6   :  { %3199 = vmatprep.mubr.msk.f32.mxu1 %vm483_vm6, %v2078_v13  ;;  %2466 = vmatprep.subr.mxu0 %v3586_v15 }
 0x7c7   :  { %2467 = vmatpush1.msra.mxu0 %v2399_v27 }
 0x7c8   :  { %2468 = vmatprep.subr.mxu0 %v3586_v15 }
 0x7c9   :  { %2266 = vmatmul.mubr.f32.gmra.mxu1 %v2110_v14  ;;  %2469 = vmatpush1.msra.mxu0 %v2398_v19  ;;  %v1703_v19 = vadd.f32 %v3173_v58, %v4572_v24 }
 0x7ca   :  { %2470 = vmatprep.subr.mxu0 %v3586_v15 }
 0x7cb   :  { %2471 = vmatpush1.msra.mxu0 %v2397_v3 }
 0x7cc   :  { %2472 = vmatprep.subr.mxu0 %v3586_v15 }
 0x7cd   :  { %2473 = vmatpush1.msra.mxu0 %v2396_v21 }
 0x7ce   :  { %2474 = vmatprep.subr.mxu0 %v3586_v15 }
 0x7cf   :  { %2475 = vmatpush1.msra.mxu0 %v2395_v30 }
 0x7d0   :  { %2476 = vmatprep.subr.mxu0 %v3586_v15 }
 0x7d1   :  { %2477 = vmatpush1.msra.mxu0 %v2394_v35 }
 0x7d2   :  { %2478 = vmatprep.subr.mxu0 %v3586_v15 }
 0x7d3   :  { %2479 = vmatpush1.msra.mxu0 %v2393_v25  ;;  %v1708_v25 = vadd.f32 %v4566_v52, %v3173_v58 }
 0x7d4   :  { %2496 = vmatprep.subr.mxu0 %v3586_v15 }
 0x7d5   :  { %2497 = vmatpush2.msra.mxu0 %v2416_v37 }
 0x7d6   :  { %2498 = vmatprep.subr.mxu0 %v3586_v15 }
 0x7d7   :  { %2499 = vmatpush2.msra.mxu0 %v2415_v28 }
 0x7d8   :  { %2500 = vmatprep.subr.mxu0 %v3586_v15 }
 0x7d9   :  { %2501 = vmatpush2.msra.mxu0 %v2414_v40 }
 0x7da   :  { %2502 = vmatprep.subr.mxu0 %v3586_v15 }
 0x7db   :  { %2503 = vmatpush2.msra.mxu0 %v2413_v34 }
 0x7dc   :  { %2504 = vmatprep.subr.mxu0 %v3586_v15 }
 0x7dd   :  { %2505 = vmatpush2.msra.mxu0 %v2412_v42 }
 0x7de   :  { %2506 = vmatprep.subr.mxu0 %v3586_v15 }
 0x7df   :  { %2507 = vmatpush2.msra.mxu0 %v2411_v43 }
 0x7e0   :  { %2508 = vmatprep.subr.mxu0 %v3586_v15 }
 0x7e1   :  { %2509 = vmatpush2.msra.mxu0 %v2410_v33 }
 0x7e2   :  { %2510 = vmatprep.subr.mxu0 %v3586_v15 }
 0x7e3   :  { %2511 = vmatpush2.msra.mxu0 %v2409_v38 }
 0x86c   :  { %v2232_v39 = vpop.f32.mrf.mxu1 }
 0x86d   :  { %v2233_v59 = vadd.f32 %v3191_v57, %v2232_v39 }
 0x86e   :  { %v2234_v54 = vpop.f32.mrf.mxu1 }
 0x86f   :  { %v2271_v53 = vadd.f32 %v2233_v59, %v1673_v56 }
 0x870   :  { %v2237_v63 = vpop.f32.mrf.mxu1 }
 0x871   :  { %v4728_v1 = vmax.f32 %v2271_v53, 0.0  ;;  %v2238_v31 = vadd.f32 %v3191_v57, %v2237_v63 }
 0x872   :  { %v2239_v62 = vpop.f32.mrf.mxu1 }
 0x873   :  { %v2272_v2 = vadd.f32 %v2238_v31, %v1678_v49  ;;  %2361 = vrot.lane.b32.xlu0 %v4728_v1, %s3585_s26  ;;  %v2328_v36 = vrot.slane %v4728_v1, 1  ;;  %v2297_v43 = vrot.slane %v4728_v1, 7 }
 0x875   :  { %v4732_v55 = vmax.f32 %v2272_v2, 0.0  ;;  %v2242_v60 = vpop.f32.mrf.mxu1 }
 0x876   :  { %v2243_v45 = vadd.f32 %v3191_v57, %v2242_v60 }
 0x877   :  { %v2244_v5 = vpop.f32.mrf.mxu1  ;;  %2363 = vrot.lane.b32.xlu1 %v4732_v55, %s3585_s26  ;;  %v2329_v4 = vrot.slane %v4732_v55, 1  ;;  %v2298_v58 = vrot.slane %v4732_v55, 7 }
 0x878   :  { %v2273_v7 = vadd.f32 %v2243_v45, %v1683_v47 }
 0x879   :  { %v2247_v44 = vpop.f32.mrf.mxu1  ;;  %v2330_v8 = vsel %vm384_vm1, %v2328_v36, %v2329_v4  ;;  %v2299_v53 = vsel %vm352_vm4, %v2297_v43, %v2298_v58 }
 0x87a   :  { %v4743_v11 = vmax.f32 %v2273_v7, 0.0  ;;  %v2248_v46 = vadd.f32 %v3191_v57, %v2247_v44  ;;  %3201 = vmatprep.mubr.msk.f32.mxu0 %vm483_vm6, %v2330_v8 }
 0x87b   :  { %v2249_v10 = vpop.f32.mrf.mxu1 }
 0x87c   :  { %v2274_v13 = vadd.f32 %v2248_v46, %v1688_v9  ;;  %2365 = vrot.lane.b32.xlu0 %v4743_v11, %s3585_s26  ;;  %v2331_v52 = vrot.slane %v4743_v11, 1  ;;  %v2300_v31 = vrot.slane %v4743_v11, 7 }
 0x87d   :  { %v2252_v14 = vpop.f32.mrf.mxu1 }
 0x87e   :  { %v4749_v12 = vmax.f32 %v2274_v13, 0.0  ;;  %v2253_v18 = vadd.f32 %v3191_v57, %v2252_v14  ;;  %v2332_v56 = vsel %vm384_vm1, %v2329_v4, %v2331_v52  ;;  %v2301_v47 = vsel %vm352_vm4, %v2298_v58, %v2300_v31  ;;  %v2675_v58 = vld [vmem:[%s5126_s19 + $0x40] sm:$0xff] }
 0x87f   :  { %v2254_v20 = vpop.f32.mrf.mxu1 }
 0x880   :  { %v2275_v0 = vadd.f32 %v2253_v18, %v1693_v16  ;;  %2367 = vrot.lane.b32.xlu1 %v4749_v12, %s3585_s26  ;;  %v2333_v59 = vrot.slane %v4749_v12, 1  ;;  %v2302_v45 = vrot.slane %v4749_v12, 7 }
 0x881   :  { %v2257_v41 = vpop.f32.mrf.mxu1 }
 0x882   :  { %v4754_v22 = vmax.f32 %v2275_v0, 0.0  ;;  %v2258_v23 = vadd.f32 %v3191_v57, %v2257_v41  ;;  %v2334_v62 = vsel %vm384_vm1, %v2331_v52, %v2333_v59  ;;  %v2303_v9 = vsel %vm352_vm4, %v2300_v31, %v2302_v45  ;;  %v2678_v52 = vld [vmem:[%s5126_s19 + $0x58] sm:$0xff]  ;;  %v2667_v31 = vld [vmem:[%s5126_s19] sm:$0xff] }
 0x883   :  { %v2259_v26 = vpop.f32.mrf.mxu1 }
 0x884   :  { %v2276_v27 = vadd.f32 %v2258_v23, %v1698_v17  ;;  %2369 = vrot.lane.b32.xlu0 %v4754_v22, %s3585_s26  ;;  %v2335_v63 = vrot.slane %v4754_v22, 1  ;;  %v2304_v4 = vrot.slane %v4754_v22, 7 }
 0x885   :  { %v2262_v51 = vpop.f32.mrf.mxu1 }
 0x886   :  { %v4759_v3 = vmax.f32 %v2276_v27, 0.0  ;;  %v2263_v21 = vadd.f32 %v3191_v57, %v2262_v51  ;;  %v2336_v2 = vsel %vm384_vm1, %v2333_v59, %v2335_v63  ;;  %v2305_v10 = vsel %vm352_vm4, %v2302_v45, %v2304_v4  ;;  %v2672_v59 = vld [vmem:[%s5126_s19 + $0x28] sm:$0xff]  ;;  %v2686_v45 = vld [vmem:[%s5126_s19 + $0x98] sm:$0xff] }
 0x887   :  { %v2264_v30 = vpop.f32.mrf.mxu1  ;;  %v2356_v7 = vsel %vm3824_vm2, %v2336_v2, 0.0  ;;  %v2324_v18 = vsel %vm3879_vm9, %v2305_v10, 0.0  ;;  %v2689_v2 = vld [vmem:[%s5126_s19 + $0xb0] sm:$0xff] }
 0x888   :  { %v2277_v35 = vadd.f32 %v2263_v21, %v1703_v19  ;;  %2371 = vrot.lane.b32.xlu1 %v4759_v3, %s3585_s26  ;;  %v2337_v44 = vrot.slane %v4759_v3, 1  ;;  %v2306_v20 = vrot.slane %v4759_v3, 7 }
 0x889   :  { %v2267_v48 = vpop.f32.mrf.mxu1 }
 0x88a   :  { %v4764_v37 = vmax.f32 %v2277_v35, 0.0  ;;  %v2268_v28 = vadd.f32 %v3191_v57, %v2267_v48  ;;  %v2338_v13 = vsel %vm384_vm1, %v2335_v63, %v2337_v44  ;;  %v2307_v26 = vsel %vm352_vm4, %v2304_v4, %v2306_v20  ;;  %v2669_v63 = vld [vmem:[%s5126_s19 + $0x10] sm:$0xff]  ;;  %v2684_v4 = vld [vmem:[%s5126_s19 + $0x88] sm:$0xff] }
 0x88b   :  { %v2269_v40 = vpop.f32.mrf.mxu1 }
 0x88c   :  { %v2278_v34 = vadd.f32 %v2268_v28, %v1708_v25  ;;  %2373 = vrot.lane.b32.xlu0 %v4764_v37, %s3585_s26  ;;  %v2339_v14 = vrot.slane %v4764_v37, 1  ;;  %v2308_v27 = vrot.slane %v4764_v37, 7 }
 0x88e   :  { %v4768_v24 = vmax.f32 %v2278_v34, 0.0  ;;  %v2340_v41 = vsel %vm384_vm1, %v2337_v44, %v2339_v14  ;;  %v2309_v35 = vsel %vm352_vm4, %v2306_v20, %v2308_v27  ;;  %v3200_v44 = vld [vmem:[%s5160_s12] ss:$0 sm:$0xff] }
 0x890   :  { %2375 = vrot.lane.b32.xlu1 %v4768_v24, %s3585_s26  ;;  %v2288_v42 = vrot.slane %v4768_v24, 7  ;;  %v2341_v17 = vrot.slane %v4768_v24, 1 }
 0x892   :  { %v2319_v33 = vsel %vm352_vm4, %v2288_v42, %v2297_v43  ;;  %v2342_v19 = vsel %vm384_vm1, %v2339_v14, %v2341_v17  ;;  %v2352_v21 = vsel %vm384_vm1, %v2341_v17, %v2328_v36  ;;  %v2310_v40 = vsel %vm352_vm4, %v2308_v27, %v2288_v42  ;;  %v2682_v36 = vld [vmem:[%s5126_s19 + $0x78] sm:$0xff]  ;;  %v2681_v43 = vld [vmem:[%s5126_s19 + $0x70] sm:$0xff]  ;;  %v2680_v42 = vld [vmem:[%s5126_s19 + $0x68] sm:$0xff] }
 0x893   :  { %v2320_v57 = vsel %vm3858_vm5, %v2319_v33, 0.0  ;;  %v2360_v25 = vsel %vm3847_vm3, %v2352_v21, 0.0  ;;  %2723 = vmatpush1.msra.mxu1 %v2682_v36  ;;  %v2679_v33 = vld [vmem:[%s5126_s19 + $0x60] sm:$0xff] }
 0x894   :  { %2724 = vmatprep.subr.mxu1 %v3586_v15 }
 0x895   :  { %2725 = vmatpush1.msra.mxu1 %v2681_v43 }
 0x896   :  { %2726 = vmatprep.subr.mxu1 %v3586_v15 }
 0x897   :  { %2727 = vmatpush1.msra.mxu1 %v2680_v42 }
 0x898   :  { %2728 = vmatprep.subr.mxu1 %v3586_v15 }
 0x899   :  { %2729 = vmatpush1.msra.mxu1 %v2679_v33 }
 0x89a   :  { %2730 = vmatprep.subr.mxu1 %v3586_v15 }
 0x89b   :  { %2731 = vmatpush1.msra.mxu1 %v2678_v52 }
 0x89c   :  { %2732 = vmatprep.subr.mxu1 %v3586_v15 }
 0x8e5   :  { %v2362_v38 = vpop.permute.xlu0 %2361 }
 0x8e6   :  { %v2385_v39 = vsel %vm483_vm6, %v2320_v57, %v2362_v38  ;;  %v2677_v38 = vld [vmem:[%s5126_s19 + $0x50] sm:$0xff]  ;;  %v2676_v57 = vld [vmem:[%s5126_s19 + $0x48] sm:$0xff] }
 0x8e7   :  { %2513 = vmatmul.mubr.f32.vlgmr.msra.gmra.mxu0 %v2385_v39  ;;  %2733 = vmatpush1.msra.mxu1 %v2677_v38  ;;  %v2674_v39 = vld [vmem:[%s5126_s19 + $0x38] sm:$0xff] }
 0x8e8   :  { %3202 = vmatprep.mubr.msk.f32.mxu0 %vm483_vm6, %v2332_v56  ;;  %2734 = vmatprep.subr.mxu1 %v3586_v15  ;;  %v2673_v56 = vld [vmem:[%s5126_s19 + $0x30] sm:$0xff] }
 0x8e9   :  { %v2364_v54 = vpop.permute.xlu1 %2363  ;;  %2735 = vmatpush1.msra.mxu1 %v2676_v57 }
 0x8ea   :  { %v2386_v49 = vsel %vm483_vm6, %v2299_v53, %v2364_v54  ;;  %2736 = vmatprep.subr.mxu1 %v3586_v15  ;;  %v2671_v54 = vld [vmem:[%s5126_s19 + $0x20] sm:$0xff]  ;;  %v2670_v53 = vld [vmem:[%s5126_s19 + $0x18] sm:$0xff] }
 0x8eb   :  { %2518 = vmatmul.mubr.f32.gmra.mxu0 %v2386_v49  ;;  %2737 = vmatpush1.msra.mxu1 %v2675_v58  ;;  %v2668_v49 = vld [vmem:[%s5126_s19 + $0x8] sm:$0xff] }
 0x8ec   :  { %3203 = vmatprep.mubr.msk.f32.mxu0 %vm483_vm6, %v2334_v62  ;;  %2738 = vmatprep.subr.mxu1 %v3586_v15  ;;  %v2690_v62 = vld [vmem:[%s5126_s19 + $0xb8] sm:$0xff] }
 0x8ed   :  { %2739 = vmatpush1.msra.mxu1 %v2674_v39 }
 0x8ee   :  { %v2366_v60 = vpop.permute.xlu0 %2365  ;;  %2740 = vmatprep.subr.mxu1 %v3586_v15 }
 0x8ef   :  { %v2387_v5 = vsel %vm483_vm6, %v2301_v47, %v2366_v60  ;;  %2741 = vmatpush1.msra.mxu1 %v2673_v56  ;;  %v2688_v60 = vld [vmem:[%s5126_s19 + $0xa8] sm:$0xff]  ;;  %v2687_v47 = vld [vmem:[%s5126_s19 + $0xa0] sm:$0xff] }
 0x8f0   :  { %2523 = vmatmul.mubr.f32.gmra.mxu0 %v2387_v5  ;;  %2742 = vmatprep.subr.mxu1 %v3586_v15  ;;  %v2685_v5 = vld [vmem:[%s5126_s19 + $0x90] sm:$0xff] }
 0x8f1   :  { %3204 = vmatprep.mubr.msk.f32.mxu0 %vm483_vm6, %v2356_v7  ;;  %2743 = vmatpush1.msra.mxu1 %v2672_v59  ;;  %v2683_v7 = vld [vmem:[%s5126_s19 + $0x80] sm:$0xff] }
 0x8f2   :  { %v2368_v8 = vpop.permute.xlu1 %2367  ;;  %2744 = vmatprep.subr.mxu1 %v3586_v15 }
 0x8f3   :  { %v2388_v46 = vsel %vm483_vm6, %v2303_v9, %v2368_v8  ;;  %2745 = vmatpush1.msra.mxu1 %v2671_v54 }
 0x8f4   :  { %2528 = vmatmul.mubr.f32.gmra.mxu0 %v2388_v46  ;;  %2746 = vmatprep.subr.mxu1 %v3586_v15 }
 0x8f5   :  { %3205 = vmatprep.mubr.msk.f32.mxu0 %vm483_vm6, %v2338_v13  ;;  %2747 = vmatpush1.msra.mxu1 %v2670_v53 }
 0x8f6   :  { %v2370_v16 = vpop.permute.xlu0 %2369  ;;  %2748 = vmatprep.subr.mxu1 %v3586_v15 }
 0x8f7   :  { %v2389_v0 = vsel %vm483_vm6, %v2324_v18, %v2370_v16  ;;  %2749 = vmatpush1.msra.mxu1 %v2669_v63 }
 0x8f8   :  { %2533 = vmatmul.mubr.f32.gmra.mxu0 %v2389_v0  ;;  %2750 = vmatprep.subr.mxu1 %v3586_v15 }
 0x8f9   :  { %3206 = vmatprep.mubr.msk.f32.mxu0 %vm483_vm6, %v2340_v41  ;;  %2751 = vmatpush1.msra.mxu1 %v2668_v49 }
 0x8fa   :  { %v2372_v23 = vpop.permute.xlu1 %2371  ;;  %2752 = vmatprep.subr.mxu1 %v3586_v15 }
 0x8fb   :  { %v2390_v51 = vsel %vm483_vm6, %v2307_v26, %v2372_v23  ;;  %2753 = vmatpush1.msra.mxu1 %v2667_v31 }
 0x8fc   :  { %2538 = vmatmul.mubr.f32.gmra.mxu0 %v2390_v51  ;;  %2770 = vmatprep.subr.mxu1 %v3586_v15 }
 0x8fd   :  { %3207 = vmatprep.mubr.msk.f32.mxu0 %vm483_vm6, %v2342_v19  ;;  %2771 = vmatpush2.msra.mxu1 %v2690_v62 }
 0x8fe   :  { %v2374_v30 = vpop.permute.xlu0 %2373  ;;  %2772 = vmatprep.subr.mxu1 %v3586_v15 }
 0x8ff   :  { %v2391_v48 = vsel %vm483_vm6, %v2309_v35, %v2374_v30  ;;  %2773 = vmatpush2.msra.mxu1 %v2689_v2 }
 0x900   :  { %2543 = vmatmul.mubr.f32.gmra.mxu0 %v2391_v48  ;;  %2774 = vmatprep.subr.mxu1 %v3586_v15 }
 0x901   :  { %3208 = vmatprep.mubr.msk.f32.mxu0 %vm483_vm6, %v2360_v25  ;;  %2775 = vmatpush2.msra.mxu1 %v2688_v60 }
 0x902   :  { %v2376_v28 = vpop.permute.xlu1 %2375  ;;  %2776 = vmatprep.subr.mxu1 %v3586_v15 }
 0x903   :  { %v2392_v34 = vsel %vm483_vm6, %v2310_v40, %v2376_v28  ;;  %2777 = vmatpush2.msra.mxu1 %v2687_v47 }
 0x904   :  { %2548 = vmatmul.mubr.f32.gmra.mxu0 %v2392_v34  ;;  %2778 = vmatprep.subr.mxu1 %v3586_v15 }
 0x905   :  { %3064 = vmatprep.mubr.f32.mxu0 %v3586_v15  ;;  %2779 = vmatpush2.msra.mxu1 %v2686_v45 }
 0x906   :  { %2780 = vmatprep.subr.mxu1 %v3586_v15 }
 0x907   :  { %2781 = vmatpush2.msra.mxu1 %v2685_v5 }
 0x908   :  { %2782 = vmatprep.subr.mxu1 %v3586_v15 }
 0x909   :  { %2783 = vmatpush2.msra.mxu1 %v2684_v4 }
 0x90a   :  { %2784 = vmatprep.subr.mxu1 %v3586_v15 }
 0x90b   :  { %2785 = vmatpush2.msra.mxu1 %v2683_v7 }
 0x9a7   :  { %v2514_v8 = vpop.f32.mrf.mxu0 }
 0x9a8   :  { %v2515_v9 = vadd.f32 %v3200_v44, %v2514_v8 }
 0x9a9   :  { %v2516_v46 = vpop.f32.mrf.mxu0 }
 0x9aa   :  { %v4925_v10 = vmax.f32 %v2515_v9, 0.0 }
 0x9ab   :  { %v2519_v13 = vpop.f32.mrf.mxu0 }
 0x9ac   :  { %v2520_v14 = vadd.f32 %v3200_v44, %v2519_v13  ;;  %2635 = vrot.lane.b32.xlu0 %v4925_v10, %s3585_s26  ;;  %v2571_v20 = vrot.slane %v4925_v10, 7  ;;  %v2602_v0 = vrot.slane %v4925_v10, 1 }
 0x9ad   :  { %v2521_v16 = vpop.f32.mrf.mxu0 }
 0x9ae   :  { %v2554_v18 = vmax.f32 %v2520_v14, 0.0 }
 0x9b0   :  { %v2572_v41 = vrot.slane %v2554_v18, 7  ;;  %v2603_v17 = vrot.slane %v2554_v18, 1  ;;  %v2524_v23 = vpop.f32.mrf.mxu0  ;;  %2637 = vrot.lane.b32.xlu1 %v2554_v18, %s3585_s26 }
 0x9b1   :  { %v2525_v26 = vadd.f32 %v3200_v44, %v2524_v23 }
 0x9b2   :  { %v2526_v27 = vpop.f32.mrf.mxu0  ;;  %v2604_v51 = vsel %vm384_vm1, %v2602_v0, %v2603_v17  ;;  %v2573_v19 = vsel %vm352_vm4, %v2571_v20, %v2572_v41 }
 0x9b3   :  { %v2555_v21 = vmax.f32 %v2525_v26, 0.0  ;;  %3210 = vmatprep.mubr.msk.f32.mxu1 %vm483_vm6, %v2604_v51 }
 0x9b4   :  { %v2529_v30 = vpop.f32.mrf.mxu0 }
 0x9b5   :  { %v2574_v35 = vrot.slane %v2555_v21, 7  ;;  %v2605_v48 = vrot.slane %v2555_v21, 1  ;;  %v2530_v25 = vadd.f32 %v3200_v44, %v2529_v30  ;;  %2639 = vrot.lane.b32.xlu0 %v2555_v21, %s3585_s26 }
 0x9b6   :  { %v2531_v28 = vpop.f32.mrf.mxu0 }
 0x9b7   :  { %v2556_v40 = vmax.f32 %v2530_v25, 0.0  ;;  %v2606_v34 = vsel %vm384_vm1, %v2603_v17, %v2605_v48  ;;  %v2575_v36 = vsel %vm352_vm4, %v2572_v41, %v2574_v35 }
 0x9b8   :  { %v2534_v43 = vpop.f32.mrf.mxu0 }
 0x9b9   :  { %v2576_v42 = vrot.slane %v2556_v40, 7  ;;  %v2607_v33 = vrot.slane %v2556_v40, 1  ;;  %v2535_v52 = vadd.f32 %v3200_v44, %v2534_v43  ;;  %2641 = vrot.lane.b32.xlu1 %v2556_v40, %s3585_s26 }
 0x9ba   :  { %v2536_v38 = vpop.f32.mrf.mxu0 }
 0x9bb   :  { %v2557_v57 = vmax.f32 %v2535_v52, 0.0  ;;  %v2608_v58 = vsel %vm384_vm1, %v2605_v48, %v2607_v33  ;;  %v2577_v39 = vsel %vm352_vm4, %v2574_v35, %v2576_v42 }
 0x9bc   :  { %v2539_v56 = vpop.f32.mrf.mxu0 }
 0x9bd   :  { %v2578_v59 = vrot.slane %v2557_v57, 7  ;;  %v2609_v54 = vrot.slane %v2557_v57, 1  ;;  %v2540_v53 = vadd.f32 %v3200_v44, %v2539_v56  ;;  %2643 = vrot.lane.b32.xlu0 %v2557_v57, %s3585_s26  ;;  %v2898_v57 = vld [vmem:[%s5128_s21 + $0xe8] sm:$0xff]  ;;  %v2899_v56 = vld [vmem:[%s5128_s21 + $0xf0] sm:$0xff] }
 0x9be   :  { %v2541_v63 = vpop.f32.mrf.mxu0  ;;  %2945 = vmatprep.subr.mxu1 %v2898_v57 }
 0x9bf   :  { %v2558_v49 = vmax.f32 %v2540_v53, 0.0  ;;  %v2610_v31 = vsel %vm384_vm1, %v2607_v33, %v2609_v54  ;;  %v2579_v62 = vsel %vm352_vm4, %v2576_v42, %v2578_v59  ;;  %v2889_v53 = vld [vmem:[%s5128_s21 + $0xa0] sm:$0xff]  ;;  %v2895_v63 = vld [vmem:[%s5128_s21 + $0xd0] sm:$0xff] }
 0x9c0   :  { %v2544_v2 = vpop.f32.mrf.mxu0  ;;  %v2630_v28 = vsel %vm3824_vm2, %v2610_v31, 0.0  ;;  %v2891_v31 = vld [vmem:[%s5128_s21 + $0xb0] sm:$0xff] }
 0x9c1   :  { %v2580_v60 = vrot.slane %v2558_v49, 7  ;;  %v2611_v47 = vrot.slane %v2558_v49, 1  ;;  %v2545_v45 = vadd.f32 %v3200_v44, %v2544_v2  ;;  %2645 = vrot.lane.b32.xlu1 %v2558_v49, %s3585_s26  ;;  %v2892_v49 = vld [vmem:[%s5128_s21 + $0xb8] sm:$0xff] }
 0x9c2   :  { %v2546_v5 = vpop.f32.mrf.mxu0  ;;  %v2888_v2 = vld [vmem:[%s5128_s21 + $0x98] sm:$0xff] }
 0x9c3   :  { %v2559_v4 = vmax.f32 %v2545_v45, 0.0  ;;  %v2612_v7 = vsel %vm384_vm1, %v2609_v54, %v2611_v47  ;;  %v2581_v8 = vsel %vm352_vm4, %v2578_v59, %v2580_v60  ;;  %v2890_v59 = vld [vmem:[%s5128_s21 + $0xa8] sm:$0xff]  ;;  %v2896_v54 = vld [vmem:[%s5128_s21 + $0xd8] sm:$0xff] }
 0x9c4   :  { %v2549_v9 = vpop.f32.mrf.mxu0  ;;  %v2882_v45 = vld [vmem:[%s5128_s21 + $0x68] sm:$0xff]  ;;  %v2884_v5 = vld [vmem:[%s5128_s21 + $0x78] sm:$0xff] }
 0x9c5   :  { %v2582_v46 = vrot.slane %v2559_v4, 7  ;;  %v2613_v10 = vrot.slane %v2559_v4, 1  ;;  %v2550_v13 = vadd.f32 %v3200_v44, %v2549_v9  ;;  %2647 = vrot.lane.b32.xlu0 %v2559_v4, %s3585_s26  ;;  %v2881_v4 = vld [vmem:[%s5128_s21 + $0x60] sm:$0xff]  ;;  %v2880_v9 = vld [vmem:[%s5128_s21 + $0x58] sm:$0xff] }
 0x9c6   :  { %v2551_v14 = vpop.f32.mrf.mxu0 }
 0x9c7   :  { %v2560_v16 = vmax.f32 %v2550_v13, 0.0  ;;  %v2614_v18 = vsel %vm384_vm1, %v2611_v47, %v2613_v10  ;;  %v2583_v41 = vsel %vm352_vm4, %v2580_v60, %v2582_v46  ;;  %v2885_v60 = vld [vmem:[%s5128_s21 + $0x80] sm:$0xff]  ;;  %v2887_v47 = vld [vmem:[%s5128_s21 + $0x90] sm:$0xff]  ;;  %v2874_v13 = vld [vmem:[%s5128_s21 + $0x28] sm:$0xff] }
 0x9c8   :  { %v2876_v14 = vld [vmem:[%s5128_s21 + $0x38] sm:$0xff] }
 0x9c9   :  { %v2562_v17 = vrot.slane %v2560_v16, 7  ;;  %v2615_v23 = vrot.slane %v2560_v16, 1  ;;  %2649 = vrot.lane.b32.xlu1 %v2560_v16, %s3585_s26  ;;  %v2873_v16 = vld [vmem:[%s5128_s21 + $0x20] sm:$0xff] }
 0x9cb   :  { %v2593_v26 = vsel %vm352_vm4, %v2562_v17, %v2571_v20  ;;  %v2616_v27 = vsel %vm384_vm1, %v2613_v10, %v2615_v23  ;;  %v2626_v51 = vsel %vm384_vm1, %v2615_v23, %v2602_v0  ;;  %v2584_v44 = vsel %vm352_vm4, %v2582_v46, %v2562_v17  ;;  %v2877_v46 = vld [vmem:[%s5128_s21 + $0x40] sm:$0xff]  ;;  %v2879_v10 = vld [vmem:[%s5128_s21 + $0x50] sm:$0xff]  ;;  %v2872_v23 = vld [vmem:[%s5128_s21 + $0x18] sm:$0xff] }
 0x9cc   :  { %v2594_v30 = vsel %vm3858_vm5, %v2593_v26, 0.0  ;;  %v2634_v52 = vsel %vm3847_vm3, %v2626_v51, 0.0  ;;  %v2875_v17 = vld [vmem:[%s5128_s21 + $0x30] sm:$0xff] }
 0x9cd   :  { %v2871_v26 = vld [vmem:[%s5128_s21 + $0x10] sm:$0xff] }
 0xa1e   :  { %v2636_v21 = vpop.permute.xlu0 %2635 }
 0xa1f   :  { %v2659_v35 = vsel %vm483_vm6, %v2594_v30, %v2636_v21  ;;  %v3209_v21 = vld [vmem:[%s5127_s20] ss:$0 sm:$0xff] }
 0xa20   :  { %2787 = vmatmul.mubr.f32.vlgmr.msra.gmra.mxu1 %v2659_v35 }
 0xa21   :  { %3211 = vmatprep.mubr.msk.f32.mxu1 %vm483_vm6, %v2606_v34 }
 0xa22   :  { %v2638_v48 = vpop.permute.xlu1 %2637 }
 0xa23   :  { %v2660_v25 = vsel %vm483_vm6, %v2573_v19, %v2638_v48  ;;  %v2598_v19 = vsel %vm3879_vm9, %v2579_v62, 0.0  ;;  %v2886_v62 = vld [vmem:[%s5128_s21 + $0x88] sm:$0xff] }
 0xa24   :  { %2792 = vmatmul.mubr.f32.gmra.mxu1 %v2660_v25 }
 0xa25   :  { %3212 = vmatprep.mubr.msk.f32.mxu1 %vm483_vm6, %v2608_v58  ;;  %v2897_v58 = vld [vmem:[%s5128_s21 + $0xe0] sm:$0xff] }
 0xa26   :  { %2946 = vmatpush1.msra.mxu1 %v2897_v58 }
 0xa27   :  { %v2640_v20 = vpop.permute.xlu0 %2639  ;;  %2947 = vmatprep.subr.mxu1 %v2894_v61 }
 0xa28   :  { %v2661_v0 = vsel %vm483_vm6, %v2575_v36, %v2640_v20 }
 0xa29   :  { %2797 = vmatmul.mubr.f32.gmra.mxu1 %v2661_v0 }
 0xa2a   :  { %3213 = vmatprep.mubr.msk.f32.mxu1 %vm483_vm6, %v2630_v28 }
 0xa2b   :  { %v2642_v6 = vpop.permute.xlu1 %2641 }
 0xa2c   :  { %v2662_v40 = vsel %vm483_vm6, %v2577_v39, %v2642_v6  ;;  %v2900_v39 = vld [vmem:[%s5128_s21 + $0xf8] sm:$0xff] }
 0xa2d   :  { %2802 = vmatmul.mubr.f32.gmra.mxu1 %v2662_v40  ;;  %3016 = vmatprep.subr.mxu0 %v2900_v39 }
 0xa2e   :  { %3214 = vmatprep.mubr.msk.f32.mxu1 %vm483_vm6, %v2612_v7  ;;  %3017 = vmatpush1.msra.mxu0 %v2899_v56  ;;  %v2883_v7 = vld [vmem:[%s5128_s21 + $0x70] sm:$0xff] }
 0xa2f   :  { %v2644_v34 = vpop.permute.xlu0 %2643  ;;  %3018 = vmatprep.subr.mxu0 %v2896_v54 }
 0xa30   :  { %v2663_v43 = vsel %vm483_vm6, %v2598_v19, %v2644_v34  ;;  %3019 = vmatpush1.msra.mxu0 %v2895_v63 }
 0xa31   :  { %2807 = vmatmul.mubr.f32.gmra.mxu1 %v2663_v43  ;;  %3020 = vmatprep.subr.mxu0 %v2892_v49 }
 0xa32   :  { %3215 = vmatprep.mubr.msk.f32.mxu1 %vm483_vm6, %v2614_v18  ;;  %3021 = vmatpush1.msra.mxu0 %v2891_v31  ;;  %v2870_v18 = vld [vmem:[%s5128_s21 + $0x8] sm:$0xff] }
 0xa33   :  { %v2646_v36 = vpop.permute.xlu1 %2645  ;;  %3022 = vmatprep.subr.mxu0 %v2888_v2 }
 0xa34   :  { %v2664_v50 = vsel %vm483_vm6, %v2581_v8, %v2646_v36  ;;  %3023 = vmatpush1.msra.mxu0 %v2887_v47  ;;  %v2878_v8 = vld [vmem:[%s5128_s21 + $0x48] sm:$0xff] }
 0xa35   :  { %2812 = vmatmul.mubr.f32.gmra.mxu1 %v2664_v50  ;;  %3024 = vmatprep.subr.mxu0 %v2884_v5 }
 0xa36   :  { %3216 = vmatprep.mubr.msk.f32.mxu1 %vm483_vm6, %v2616_v27  ;;  %3025 = vmatpush1.msra.mxu0 %v2883_v7 }
 0xa37   :  { %v2648_v42 = vpop.permute.xlu0 %2647  ;;  %3026 = vmatprep.subr.mxu0 %v2880_v9 }
 0xa38   :  { %v2665_v33 = vsel %vm483_vm6, %v2583_v41, %v2648_v42  ;;  %3027 = vmatpush1.msra.mxu0 %v2879_v10  ;;  %v2869_v41 = vld [vmem:[%s5128_s21] sm:$0xff] }
 0xa39   :  { %2817 = vmatmul.mubr.f32.gmra.mxu1 %v2665_v33  ;;  %3028 = vmatprep.subr.mxu0 %v2876_v14 }
 0xa3a   :  { %3217 = vmatprep.mubr.msk.f32.mxu1 %vm483_vm6, %v2634_v52  ;;  %3029 = vmatpush1.msra.mxu0 %v2875_v17 }
 0xa3b   :  { %v2650_v29 = vpop.permute.xlu1 %2649  ;;  %3030 = vmatprep.subr.mxu0 %v2872_v23 }
 0xa3c   :  { %v2666_v38 = vsel %vm483_vm6, %v2584_v44, %v2650_v29  ;;  %3031 = vmatpush1.msra.mxu0 %v2871_v26 }
 0xa3d   :  { %2822 = vmatmul.mubr.f32.gmra.mxu1 %v2666_v38 }
 0xa3e   :  { %2993 = vmatprep.mubr.f32.mxu1 %v3586_v15  ;;  %v2893_v15 = vld [vmem:[%s5128_s21 + $0xc0] sm:$0xff] }
 0xa3f   :  { %2948 = vmatpush1.msra.mxu1 %v2893_v15 }
 0xa40   :  { %2949 = vmatprep.subr.mxu1 %v2890_v59 }
 0xa41   :  { %2950 = vmatpush1.msra.mxu1 %v2889_v53 }
 0xa42   :  { %2951 = vmatprep.subr.mxu1 %v2886_v62 }
 0xa43   :  { %2952 = vmatpush1.msra.mxu1 %v2885_v60 }
 0xa44   :  { %2953 = vmatprep.subr.mxu1 %v2882_v45 }
 0xa45   :  { %2954 = vmatpush1.msra.mxu1 %v2881_v4 }
 0xa46   :  { %2955 = vmatprep.subr.mxu1 %v2878_v8 }
 0xa47   :  { %2956 = vmatpush1.msra.mxu1 %v2877_v46 }
 0xa48   :  { %2957 = vmatprep.subr.mxu1 %v2874_v13 }
 0xa49   :  { %2958 = vmatpush1.msra.mxu1 %v2873_v16 }
 0xa4a   :  { %2959 = vmatprep.subr.mxu1 %v2870_v18 }
 0xa4b   :  { %2960 = vmatpush1.msra.mxu1 %v2869_v41 }
 0xae0   :  { %v2788_v27 = vpop.f32.mrf.mxu1 }
 0xae1   :  { %v2789_v48 = vadd.f32 %v3209_v21, %v2788_v27 }
 0xae2   :  { %v2790_v51 = vpop.f32.mrf.mxu1 }
 0xae3   :  { %v2827_v6 = vadd.f32 %v2789_v48, %v4728_v1  ;;  %v2913_v48 = vsub.s32 2, %v3798_v32 }
 0xae4   :  { %v2793_v44 = vpop.f32.mrf.mxu1 }
 0xae5   :  { %v2794_v30 = vadd.f32 %v3209_v21, %v2793_v44  ;;  %v2835_v50 = vmax.f32 %v2827_v6, 0.0 }
 0xae6   :  { %v2795_v35 = vpop.f32.mrf.mxu1 }
 0xae7   :  { %v2828_v20 = vadd.f32 %v2794_v30, %v4732_v55  ;;  %v2843_v55 = vsel %vm483_vm6, %v2835_v50, 0.0 }
 0xae9   :  { %v2798_v25 = vpop.f32.mrf.mxu1  ;;  %v2836_v19 = vmax.f32 %v2828_v20, 0.0  ;;  %v2909_v20 = vsub.s32 1, %v3798_v32 }
 0xaea   :  { %v2799_v0 = vadd.f32 %v3209_v21, %v2798_v25  ;;  %v2901_v25 = vld [vmem:[%s5129_s22] sm:$0xf]  ;;  %s3588_s22 = smov [#allocation2]  }
 0xaeb   :  { %v2800_v28 = vpop.f32.mrf.mxu1  ;;  %v2844_v29 = vsel %vm483_vm6, %v2836_v19, 0.0  ;;  %v2914_v6 = vrot.slane %v2901_v25, %v2913_v48  ;;  %s3120_s8 = sshll.u32 %s3588_s22, 4  ;;  %s3121_s8 = int_to_ptr.vmem [resolvable:$true] %s3120_s8 }
 0xaec   :  { %v2829_v40 = vadd.f32 %v2799_v0, %v4743_v11  ;;  %v2845_v61 = vadd.f32 %v2844_v29, %v2843_v55  ;;  %v2917_v0 = vsub.s32 3, %v3798_v32  ;;  %s3562_s9 = scalar_lea.vmem %s3121_s8, 128  ;;  %p3567_p1 = scmp.lt.s32.totalorder %s3121_s8, %s3121_s8 }
 0xaed   :  { %v2803_v34 = vpop.f32.mrf.mxu1  ;;  %p3563_p0 = scmp.ne.s32.totalorder %s3121_s8, %s3562_s9  ;;  %p3568_p2 = scmp.lt.s32.totalorder %s3562_s9, %s3562_s9 }
 0xaee   :  { %v2804_v43 = vadd.f32 %v3209_v21, %v2803_v34  ;;  %v2837_v42 = vmax.f32 %v2829_v40, 0.0  ;;  %v2910_v40 = vrot.slane %v2901_v25, %v2909_v20  ;;  %v2918_v34 = vrot.slane %v2901_v25, %v2917_v0 }
 0xaef   :  { %v2805_v36 = vpop.f32.mrf.mxu1  ;;  %p3569_p3 = por %p3568_p2, %p3567_p1 }
 0xaf0   :  { %v2830_v33 = vadd.f32 %v2804_v43, %v4749_v12  ;;  %v2846_v58 = vsel %vm483_vm6, %v2837_v42, 0.0 }
 0xaf1   :  { %v2808_v52 = vpop.f32.mrf.mxu1  ;;  %v2847_v56 = vadd.f32 %v2846_v58, %v2845_v61  ;;  %p3570_p4 = pnand %p3569_p3, %p3563_p0 }
 0xaf2   :  { %v2838_v38 = vmax.f32 %v2830_v33, 0.0  ;;  %v2809_v1 = vadd.f32 %v3209_v21, %v2808_v52 }
 0xaf3   :  { %v2810_v57 = vpop.f32.mrf.mxu1 }
 0xaf4   :  { %v2848_v39 = vsel %vm483_vm6, %v2838_v38, 0.0  ;;  %v2831_v54 = vadd.f32 %v2809_v1, %v4754_v22 }
 0xaf5   :  { %v2813_v11 = vpop.f32.mrf.mxu1  ;;  %v2849_v53 = vadd.f32 %v2848_v39, %v2847_v56 }
 0xaf6   :  { %v2814_v15 = vadd.f32 %v3209_v21, %v2813_v11  ;;  %v2839_v2 = vmax.f32 %v2831_v54, 0.0 }
 0xaf7   :  { %v2815_v59 = vpop.f32.mrf.mxu1  ;;  %v2850_v47 = vrot.slane %v2849_v53, 4 }
 0xaf8   :  { %v2832_v12 = vadd.f32 %v2814_v15, %v4759_v3  ;;  %v2856_v9 = vsel %vm483_vm6, %v2839_v2, 0.0 }
 0xaf9   :  { %v2818_v63 = vpop.f32.mrf.mxu1  ;;  %v2851_v46 = vadd.f32 %v2850_v47, %v2849_v53  ;;  %v3587_v53 = vmov 1983009808  }
 0xafa   :  { %v2840_v49 = vmax.f32 %v2832_v12, 0.0  ;;  %v2819_v31 = vadd.f32 %v3209_v21, %v2818_v63  ;;  %v3098_v63 = vunpack.c.l.s4 %v3587_v53 }
 0xafb   :  { %v2820_v62 = vpop.f32.mrf.mxu1 }
 0xafc   :  { %v2833_v60 = vadd.f32 %v2819_v31, %v4764_v37  ;;  %v2857_v5 = vsel %vm483_vm6, %v2840_v49, 0.0  ;;  %v2852_v37 = vrot.slane %v2851_v46, 2  ;;  %v3099_v49 = vunpack.c.0.s8 %v3098_v63 }
 0xafd   :  { %v2823_v45 = vpop.f32.mrf.mxu1  ;;  %v2858_v10 = vadd.f32 %v2857_v5, %v2856_v9 }
 0xafe   :  { %v2841_v4 = vmax.f32 %v2833_v60, 0.0  ;;  %v2824_v7 = vadd.f32 %v3209_v21, %v2823_v45  ;;  %v2853_v17 = vadd.f32 %v2852_v37, %v2851_v46  ;;  %v3102_v62 = vsub.s32 %v3099_v49, %v3798_v32 }
 0xaff   :  { %v2825_v8 = vpop.f32.mrf.mxu1 }
 0xb00   :  { %v2859_v22 = vsel %vm483_vm6, %v2841_v4, 0.0  ;;  %v2834_v3 = vadd.f32 %v2824_v7, %v4768_v24  ;;  %v2854_v27 = vrot.slane %v2853_v17, 1  ;;  %v2905_v24 = vsub.s32 0, %v3798_v32 }
 0xb01   :  { %v2860_v14 = vadd.f32 %v2859_v22, %v2858_v10 }
 0xb02   :  { %v2842_v13 = vmax.f32 %v2834_v3, 0.0  ;;  %v2855_v21 = vadd.f32 %v2854_v27, %v2853_v17  ;;  %v2906_v28 = vrot.slane %v2901_v25, %v2905_v24 }
 0xb04   :  { %v2861_v16 = vsel %vm483_vm6, %v2842_v13, 0.0 }
 0xb05   :  { %v2862_v18 = vadd.f32 %v2861_v16, %v2860_v14 }
 0xb07   :  { %v2863_v41 = vrot.slane %v2862_v18, 4 }
 0xb09   :  { %v2864_v23 = vadd.f32 %v2863_v41, %v2862_v18 }
 0xb0b   :  { %v2865_v26 = vrot.slane %v2864_v23, 2 }
 0xb0d   :  { %v2866_v51 = vadd.f32 %v2865_v26, %v2864_v23 }
 0xb0f   :  { %v2867_v44 = vrot.slane %v2866_v51, 1 }
 0xb11   :  { %v2868_v30 = vadd.f32 %v2867_v44, %v2866_v51 }
 0xb13   :  { %v2926_v35 = vsel %vm2925_vm10, %v2868_v30, %v2855_v21 }
 0xb14   :  { %3218 = vmatmul.mubr.msk.f32.vlgmr.msra.gmra.mxu1 %vm483_vm6, %v2926_v35  ;;  %3219 = vmatmul.mubr.msk.f32.vlgmr.msra.gmra.mxu0 %vm483_vm6, %v2926_v35 }
 0xbd4   :  { %v2995_v19 = vpop.f32.mrf.mxu1  ;;  %v3066_v43 = vpop.f32.mrf.mxu0 }
 0xbd5   :  { %v2996_v36 = vadd.f32 %v2995_v19, %v2906_v28  ;;  %v3067_v50 = vadd.f32 %v3066_v43, %v2914_v6 }
 0xbd6   :  { %v2997_v42 = vpop.f32.mrf.mxu1  ;;  %v3068_v33 = vpop.f32.mrf.mxu0 }
 0xbd7   :  { %v3071_v52 = vmul.f32 %v2996_v36, %v2996_v36  ;;  %v2998_v29 = vadd.f32 %v2997_v42, %v2910_v40  ;;  %v3069_v38 = vadd.f32 %v3068_v33, %v2918_v34  ;;  %v3073_v57 = vmul.f32 %v3067_v50, %v3067_v50 }
 0xbd9   :  { %v3072_v55 = vmul.f32 %v2998_v29, %v2998_v29  ;;  %v3076_v58 = vsel %vm3075_vm11, %v3071_v52, 0.0  ;;  %v3074_v61 = vmul.f32 %v3069_v38, %v3069_v38  ;;  %v3079_v39 = vsel %vm3075_vm11, %v3073_v57, 0.0 }
 0xbdb   :  { %v3077_v1 = vsel %vm3075_vm11, %v3072_v55, 0.0  ;;  %v3081_v56 = vsel %vm3075_vm11, %v3074_v61, 0.0 }
 0xbdc   :  { %v3078_v11 = vadd.f32 %v3077_v1, %v3076_v58 }
 0xbde   :  { %v3080_v15 = vadd.f32 %v3079_v39, %v3078_v11 }
 0xbe0   :  { %v3082_v59 = vadd.f32 %v3081_v56, %v3080_v15 }
 0xbe2   :  { %3083 = vadd.xlane.f32.xlu0 %v3082_v59 }
 0xc6b   :  { %v3084_v54 = vpop.xlane.xlu0 %3083 }
 0xc6c   :  { %v3085_v12 = vmax.f32 %v3084_v54, 1e-24 }
 0xc6e   :  { %3560 = vrsqrt.f32 %v3085_v12 }
 0xc7b   :  { %v3561_v31 = vpop.eup %3560 }
 0xc7c   :  { %v3087_v2 = vmul.f32 %v3561_v31, %v2996_v36  ;;  %v3088_v60 = vmul.f32 %v3561_v31, %v2998_v29  ;;  %v3089_v47 = vmul.f32 %v3561_v31, %v3067_v50  ;;  %v3090_v45 = vmul.f32 %v3561_v31, %v3069_v38 }
 0xc7e   :  { %v3095_v5 = vcombine.low %v3087_v2, %v3088_v60  ;;  %v3096_v4 = vcombine.low %v3089_v47, %v3090_v45 }
 0xc80   :  { %v3103_v7 = vrot.slane %v3095_v5, %v3102_v62  ;;  %v3110_v8 = vrot.slane %v3096_v4, %v3102_v62 }
 0xc82   :  { %v3111_v9 = vcombine.low %v3103_v7, %v3110_v8 }
 0xc84   :  { %3113 = vst [vmem:[#allocation2] sm:$0xff] %v3111_v9 }
 0xc85   :  { %3573 = shalt.err (!%p3570_p4)
}
 0xc86   :  { %3123 = dma.vmem_to_hbm [thread:$0]  %s3121_s8, 128, %s5130_s23, [#allocation3]  }
 0xc87   :  { %3582 = dma.done.wait [#allocation3], 128  }
 0xc88   :  { %3583 = vsyncadd [#allocation3], 4294967168 }
 0xc89   :  { %3127 = vsyncpa [#allocation3], 1 }

</bundles_post_ra>
